<compile_context>
chip_gen: v7x
topology: tpu7x:2x2x1
jax: 0.10.0
libtpu: 0.0.40
codegen_flags: <defaults>
</compile_context>

<pallas_src>
import jax
import jax.numpy as jnp
from jax import lax
from jax.experimental import pallas as pl
from jax.experimental.pallas import tpu as pltpu

EPS = 1e-5


def _shift_w_reflect(x, W):
    """Column-neighbour slabs of x:(H,W,C) with reflection at the borders.

    Returns (col j-1, col j+1).  Two XLU sublane rotations + selects; no
    misaligned sublane slices / relayouts.
    pltpu.roll follows jnp.roll semantics: out[:, j] = x[:, (j - shift) % W].
    """
    x_p1 = pltpu.roll(x, shift=1, axis=1)      # out[:, j] = x[:, j-1] (wraps at j=0)
    x_m1 = pltpu.roll(x, shift=W - 1, axis=1)  # out[:, j] = x[:, j+1] (wraps at j=W-1)
    col = lax.broadcasted_iota(jnp.int32, (1, W, 1), 1)
    c_m1 = jnp.where(col == 0, x_m1, x_p1)       # column j-1, reflect: j=0 -> 1
    c_p1 = jnp.where(col == W - 1, x_p1, x_m1)   # column j+1, reflect: j=W-1 -> W-2
    return c_m1, c_p1


def _shift_h_reflect(z, H):
    """Row-neighbour slabs of z:(H,W,C) with reflection.  H is the major dim,
    so these are aligned block copies (no relayout)."""
    r_m1 = jnp.concatenate([z[1:2], z[:H - 1]], axis=0)        # row i-1, reflect
    r_p1 = jnp.concatenate([z[1:], z[H - 2:H - 1]], axis=0)    # row i+1, reflect
    return r_m1, r_p1


def _conv3x3_reflect(x, wflat, b, H, W, C):
    """3x3 conv with reflection padding 1 as one im2col matmul (K = 9*C).

    x: (H, W, C) f32, wflat: (9C, C) bf16 with rows ordered (ky, kx, cin),
    b: (1, C) f32.  Returns (H*W, C) f32.
    """
    c_m1, c_p1 = _shift_w_reflect(x, W)
    cols = (c_m1, x, c_p1)                       # kx = 0, 1, 2  (dx = -1, 0, +1)
    taps = []
    for col_slab in cols:
        r_m1, r_p1 = _shift_h_reflect(col_slab, H)
        taps.append((r_m1, col_slab, r_p1))      # ky = 0, 1, 2  (dy = -1, 0, +1)
    ordered = [taps[kx][ky] for ky in range(3) for kx in range(3)]
    patches = jnp.concatenate(ordered, axis=-1)          # (H, W, 9C)
    patches = patches.reshape(H * W, 9 * C)              # view when W % 8 == 0
    y = jnp.dot(patches.astype(wflat.dtype), wflat,      # bf16 x bf16 -> f32 acc
                preferred_element_type=jnp.float32)
    return y + b


def _instance_norm_2d(y, inv_hw):
    """InstanceNorm2d (no affine, eps=1e-5, biased var), single-pass stats.
    y: (H*W, C) f32."""
    mean = jnp.sum(y, axis=0, keepdims=True) * inv_hw
    meansq = jnp.sum(y * y, axis=0, keepdims=True) * inv_hw
    var = jnp.maximum(meansq - mean * mean, 0.0)
    scale = lax.rsqrt(var + EPS)                 # EUP slot
    return (y - mean) * scale


def resnet_block_kernel(x_ref, w1_ref, b1_ref, w2_ref, b2_ref, o_ref):
    H, W, C = x_ref.shape[1], x_ref.shape[2], x_ref.shape[3]
    x = x_ref[0].astype(jnp.float32)                     # (H, W, C)
    inv_hw = jnp.float32(1.0 / (H * W))

    # reflect-pad + conv1 -> InstanceNorm -> ReLU
    y = _conv3x3_reflect(x, w1_ref[...], b1_ref[...], H, W, C)   # (H*W, C)
    y = _instance_norm_2d(y, inv_hw)
    y = jnp.maximum(y, 0.0)
    # TODO(synk): Dropout(0.5) omitted (use_dropout=False / eval => identity).

    # reflect-pad + conv2 -> InstanceNorm
    y = _conv3x3_reflect(y.reshape(H, W, C), w2_ref[...], b2_ref[...], H, W, C)
    y = _instance_norm_2d(y, inv_hw)

    # residual add
    o_ref[0] = (x + y.reshape(H, W, C)).astype(o_ref.dtype)


def _vmem_limit_bytes():
    # Raise scoped VMEM above the 16/32 MiB defaults (helps v5e/v6e at
    # production sizes) while staying well inside v7x's 64 MiB physical.
    try:
        cap = pltpu.get_tpu_info().vmem_capacity_bytes
    except Exception:
        cap = 64 * 1024 * 1024
    return int(min(cap * 3 // 4, 100 * 1024 * 1024))


def resnet_block(x_nchw, w1, b1, w2, b2):
    """x_nchw: (N, C, H, W) float32; w1/w2: (3,3,C,C) HWIO; b1/b2: (C,)."""
    x = jnp.transpose(x_nchw, (0, 2, 3, 1)).astype(jnp.float32)   # -> NHWC
    N, H, W, C = x.shape
    assert H >= 2 and W >= 2, "ReflectionPad2d(1) needs H, W >= 2"

    # MXU operands in bf16 (f32 accumulate). Rows ordered (ky, kx, cin).
    w1f = w1.astype(jnp.bfloat16).reshape(9 * C, C)
    w2f = w2.astype(jnp.bfloat16).reshape(9 * C, C)
    b1r = b1.reshape(1, C).astype(jnp.float32)
    b2r = b2.reshape(1, C).astype(jnp.float32)

    # NOTE: weights/biases have constant index_maps; Pallas still
    # double-buffers them (small at test size, ~4.7 MiB extra at C=256).
    out = pl.pallas_call(
        resnet_block_kernel,
        out_shape=jax.ShapeDtypeStruct((N, H, W, C), jnp.float32),
        grid_spec=pltpu.PrefetchScalarGridSpec(
            num_scalar_prefetch=0,
            grid=(N,),
            in_specs=[
                pl.BlockSpec((1, H, W, C), lambda n: (n, 0, 0, 0)),
                pl.BlockSpec((9 * C, C), lambda n: (0, 0)),
                pl.BlockSpec((1, C), lambda n: (0, 0)),
                pl.BlockSpec((9 * C, C), lambda n: (0, 0)),
                pl.BlockSpec((1, C), lambda n: (0, 0)),
            ],
            out_specs=pl.BlockSpec((1, H, W, C), lambda n: (n, 0, 0, 0)),
        ),
        compiler_params=pltpu.CompilerParams(
            dimension_semantics=("parallel",),
            vmem_limit_bytes=_vmem_limit_bytes()),
    )(x, w1f, b1r, w2f, b2r)

    return jnp.transpose(out, (0, 3, 1, 2))   # back to NCHW


def _reference(x_nchw, w1, b1, w2, b2):
    """Pure-JAX f32 reference for correctness checking."""
    x = jnp.transpose(x_nchw, (0, 2, 3, 1))

    def conv(z, w, b):
        zp = jnp.pad(z, ((0, 0), (1, 1), (1, 1), (0, 0)), mode="reflect")
        out = lax.conv_general_dilated(
            zp, w, (1, 1), "VALID",
            dimension_numbers=("NHWC", "HWIO", "NHWC"))
        return out + b.reshape(1, 1, 1, -1)

    def inorm(z):
        m = jnp.mean(z, axis=(1, 2), keepdims=True)
        v = jnp.mean((z - m) ** 2, axis=(1, 2), keepdims=True)
        return (z - m) / jnp.sqrt(v + EPS)

    y = jnp.maximum(inorm(conv(x, w1, b1)), 0.0)
    y = inorm(conv(y, w2, b2))
    return jnp.transpose(x + y, (0, 3, 1, 2))


if __name__ == "__main__":
    key = jax.random.PRNGKey(0)
    k1, k2, k3, k4, k5 = jax.random.split(key, 5)

    N, C, H, W = 2, 4, 16, 16
    x = jax.random.normal(k1, (N, C, H, W), jnp.float32)

    # Deterministic Conv2d-style init (uniform in +-1/sqrt(fan_in)), HWIO layout.
    fan_in = C * 3 * 3
    scale = 1.0 / (fan_in ** 0.5)
    w1 = jax.random.uniform(k2, (3, 3, C, C), jnp.float32, -scale, scale)
    b1 = jax.random.uniform(k3, (C,), jnp.float32, -scale, scale)
    w2 = jax.random.uniform(k4, (3, 3, C, C), jnp.float32, -scale, scale)
    b2 = jax.random.uniform(k5, (C,), jnp.float32, -scale, scale)

    out = resnet_block(x, w1, b1, w2, b2)
    jax.block_until_ready(out)

    ref = _reference(x, w1, b1, w2, b2)
    assert out.shape == (N, C, H, W)
    err = float(jnp.max(jnp.abs(out - ref)))
    # Tolerance relaxed vs the pure-f32 version because MXU operands are bf16
    # (f32 accumulation); expected error ~1e-2, allow 5x margin.
    assert jnp.allclose(out, ref, atol=5e-2, rtol=5e-2), f"max abs err {err}"

    print("KERNEL_OK")
</pallas_src>

<mosaic_0001>
module attributes {stable_mosaic.version = 11 : i64} {
  func.func @resnet_block_kernel(%arg0: i32, %arg1: memref<1x16x16x4xf32, #tpu.memory_space<vmem>>, %arg2: memref<36x4xbf16, #tpu.memory_space<vmem>>, %arg3: memref<1x4xf32, #tpu.memory_space<vmem>>, %arg4: memref<36x4xbf16, #tpu.memory_space<vmem>>, %arg5: memref<1x4xf32, #tpu.memory_space<vmem>>, %arg6: memref<1x16x16x4xf32, #tpu.memory_space<vmem>>) attributes {dimension_semantics = [#tpu.dimension_semantics<parallel>], iteration_bounds = array<i64: 2>, scalar_prefetch = 0 : i64, scratch_operands = 0 : i64, tpu.core_type = #tpu.core_type<tc>, window_params = [{transform_indices = @transform_0, window_bounds = array<i64: 1, 16, 16, 4>}, {pipeline_mode = #tpu.pipeline_mode<synchronous>, transform_indices = @transform_1, window_bounds = array<i64: 36, 4>}, {pipeline_mode = #tpu.pipeline_mode<synchronous>, transform_indices = @transform_2, window_bounds = array<i64: 1, 4>}, {pipeline_mode = #tpu.pipeline_mode<synchronous>, transform_indices = @transform_3, window_bounds = array<i64: 36, 4>}, {pipeline_mode = #tpu.pipeline_mode<synchronous>, transform_indices = @transform_4, window_bounds = array<i64: 1, 4>}, {transform_indices = @transform_5, window_bounds = array<i64: 1, 16, 16, 4>}]} {
    %c0 = arith.constant 0 : index
    %c0_0 = arith.constant 0 : index
    %c0_1 = arith.constant 0 : index
    %c0_2 = arith.constant 0 : index
    %0 = vector.load %arg1[%c0, %c0_0, %c0_1, %c0_2] : memref<1x16x16x4xf32, #tpu.memory_space<vmem>>, vector<1x16x16x4xf32>
    %1 = vector.shape_cast %0 : vector<1x16x16x4xf32> to vector<16x16x4xf32>
    %c0_3 = arith.constant 0 : index
    %c0_4 = arith.constant 0 : index
    %2 = vector.load %arg2[%c0_3, %c0_4] : memref<36x4xbf16, #tpu.memory_space<vmem>>, vector<36x4xbf16>
    %c0_5 = arith.constant 0 : index
    %c0_6 = arith.constant 0 : index
    %3 = vector.load %arg3[%c0_5, %c0_6] : memref<1x4xf32, #tpu.memory_space<vmem>>, vector<1x4xf32>
    %c1_i32 = arith.constant 1 : i32
    %4 = tpu.dynamic_rotate %1 by %c1_i32 dim 1 : vector<16x16x4xf32>, i32 -> vector<16x16x4xf32>
    %c15_i32 = arith.constant 15 : i32
    %5 = tpu.dynamic_rotate %1 by %c15_i32 dim 1 : vector<16x16x4xf32>, i32 -> vector<16x16x4xf32>
    %6 = tpu.iota {dimensions = array<i32: 1>} : vector<1x16x1xi32>
    %c0_i32 = arith.constant 0 : i32
    %7 = vector.broadcast %c0_i32 : i32 to vector<1x16x1xi32>
    %8 = arith.cmpi eq, %6, %7 : vector<1x16x1xi32>
    %9 = vector.shape_cast %8 : vector<1x16x1xi1> to vector<1x16x1xi1>
    %10 = vector.broadcast %9 : vector<1x16x1xi1> to vector<16x16x4xi1>
    %11 = arith.select %10, %5, %4 : vector<16x16x4xi1>, vector<16x16x4xf32>
    %c15_i32_7 = arith.constant 15 : i32
    %12 = vector.broadcast %c15_i32_7 : i32 to vector<1x16x1xi32>
    %13 = arith.cmpi eq, %6, %12 : vector<1x16x1xi32>
    %14 = vector.shape_cast %13 : vector<1x16x1xi1> to vector<1x16x1xi1>
    %15 = vector.broadcast %14 : vector<1x16x1xi1> to vector<16x16x4xi1>
    %16 = arith.select %15, %4, %5 : vector<16x16x4xi1>, vector<16x16x4xf32>
    %17 = vector.extract_strided_slice %11 {offsets = [1, 0, 0], sizes = [1, 16, 4], strides = [1, 1, 1]} : vector<16x16x4xf32> to vector<1x16x4xf32>
    %18 = vector.extract_strided_slice %11 {offsets = [0, 0, 0], sizes = [15, 16, 4], strides = [1, 1, 1]} : vector<16x16x4xf32> to vector<15x16x4xf32>
    %19 = tpu.concatenate %17, %18 in 0 : vector<1x16x4xf32>, vector<15x16x4xf32> -> vector<16x16x4xf32>
    %20 = vector.extract_strided_slice %11 {offsets = [1, 0, 0], sizes = [15, 16, 4], strides = [1, 1, 1]} : vector<16x16x4xf32> to vector<15x16x4xf32>
    %21 = vector.extract_strided_slice %11 {offsets = [14, 0, 0], sizes = [1, 16, 4], strides = [1, 1, 1]} : vector<16x16x4xf32> to vector<1x16x4xf32>
    %22 = tpu.concatenate %20, %21 in 0 : vector<15x16x4xf32>, vector<1x16x4xf32> -> vector<16x16x4xf32>
    %23 = vector.extract_strided_slice %1 {offsets = [1, 0, 0], sizes = [1, 16, 4], strides = [1, 1, 1]} : vector<16x16x4xf32> to vector<1x16x4xf32>
    %24 = vector.extract_strided_slice %1 {offsets = [0, 0, 0], sizes = [15, 16, 4], strides = [1, 1, 1]} : vector<16x16x4xf32> to vector<15x16x4xf32>
    %25 = tpu.concatenate %23, %24 in 0 : vector<1x16x4xf32>, vector<15x16x4xf32> -> vector<16x16x4xf32>
    %26 = vector.extract_strided_slice %1 {offsets = [1, 0, 0], sizes = [15, 16, 4], strides = [1, 1, 1]} : vector<16x16x4xf32> to vector<15x16x4xf32>
    %27 = vector.extract_strided_slice %1 {offsets = [14, 0, 0], sizes = [1, 16, 4], strides = [1, 1, 1]} : vector<16x16x4xf32> to vector<1x16x4xf32>
    %28 = tpu.concatenate %26, %27 in 0 : vector<15x16x4xf32>, vector<1x16x4xf32> -> vector<16x16x4xf32>
    %29 = vector.extract_strided_slice %16 {offsets = [1, 0, 0], sizes = [1, 16, 4], strides = [1, 1, 1]} : vector<16x16x4xf32> to vector<1x16x4xf32>
    %30 = vector.extract_strided_slice %16 {offsets = [0, 0, 0], sizes = [15, 16, 4], strides = [1, 1, 1]} : vector<16x16x4xf32> to vector<15x16x4xf32>
    %31 = tpu.concatenate %29, %30 in 0 : vector<1x16x4xf32>, vector<15x16x4xf32> -> vector<16x16x4xf32>
    %32 = vector.extract_strided_slice %16 {offsets = [1, 0, 0], sizes = [15, 16, 4], strides = [1, 1, 1]} : vector<16x16x4xf32> to vector<15x16x4xf32>
    %33 = vector.extract_strided_slice %16 {offsets = [14, 0, 0], sizes = [1, 16, 4], strides = [1, 1, 1]} : vector<16x16x4xf32> to vector<1x16x4xf32>
    %34 = tpu.concatenate %32, %33 in 0 : vector<15x16x4xf32>, vector<1x16x4xf32> -> vector<16x16x4xf32>
    %35 = tpu.concatenate %19, %25, %31, %11, %1, %16, %22, %28, %34 in 2 : vector<16x16x4xf32>, vector<16x16x4xf32>, vector<16x16x4xf32>, vector<16x16x4xf32>, vector<16x16x4xf32>, vector<16x16x4xf32>, vector<16x16x4xf32>, vector<16x16x4xf32>, vector<16x16x4xf32> -> vector<16x16x36xf32>
    %36 = vector.shape_cast %35 : vector<16x16x36xf32> to vector<256x36xf32>
    %37 = arith.truncf %36 : vector<256x36xf32> to vector<256x36xbf16>
    %cst = arith.constant dense<0.000000e+00> : vector<256x4xf32>
    %38 = tpu.matmul %37, %2, %cst {dimension_numbers = #tpu.dot_dimension_numbers<[1], [0], [0], [1], [0, 0, 1, 1], [], []>} : vector<256x36xbf16>, vector<36x4xbf16>, vector<256x4xf32> -> vector<256x4xf32>
    %39 = vector.broadcast %3 : vector<1x4xf32> to vector<256x4xf32>
    %40 = arith.addf %38, %39 : vector<256x4xf32>
    %cst_8 = arith.constant dense<0.000000e+00> : vector<4xf32>
    %41 = vector.multi_reduction <add>, %40, %cst_8 [0] : vector<256x4xf32> to vector<4xf32>
    %42 = vector.shape_cast %41 : vector<4xf32> to vector<1x4xf32>
    %cst_9 = arith.constant 3.906250e-03 : f32
    %43 = vector.broadcast %cst_9 : f32 to vector<1x4xf32>
    %44 = arith.mulf %42, %43 : vector<1x4xf32>
    %45 = arith.mulf %40, %40 : vector<256x4xf32>
    %cst_10 = arith.constant dense<0.000000e+00> : vector<4xf32>
    %46 = vector.multi_reduction <add>, %45, %cst_10 [0] : vector<256x4xf32> to vector<4xf32>
    %47 = vector.shape_cast %46 : vector<4xf32> to vector<1x4xf32>
    %cst_11 = arith.constant 3.906250e-03 : f32
    %48 = vector.broadcast %cst_11 : f32 to vector<1x4xf32>
    %49 = arith.mulf %47, %48 : vector<1x4xf32>
    %50 = arith.mulf %44, %44 : vector<1x4xf32>
    %51 = arith.subf %49, %50 : vector<1x4xf32>
    %cst_12 = arith.constant 0.000000e+00 : f32
    %52 = vector.broadcast %cst_12 : f32 to vector<1x4xf32>
    %53 = arith.maximumf %51, %52 : vector<1x4xf32>
    %cst_13 = arith.constant 9.99999974E-6 : f32
    %54 = vector.broadcast %cst_13 : f32 to vector<1x4xf32>
    %55 = arith.addf %53, %54 : vector<1x4xf32>
    %56 = math.rsqrt %55 : vector<1x4xf32>
    %57 = vector.broadcast %44 : vector<1x4xf32> to vector<256x4xf32>
    %58 = arith.subf %40, %57 : vector<256x4xf32>
    %59 = vector.broadcast %56 : vector<1x4xf32> to vector<256x4xf32>
    %60 = arith.mulf %58, %59 : vector<256x4xf32>
    %cst_14 = arith.constant 0.000000e+00 : f32
    %61 = vector.broadcast %cst_14 : f32 to vector<256x4xf32>
    %62 = arith.maximumf %60, %61 : vector<256x4xf32>
    %63 = vector.shape_cast %62 : vector<256x4xf32> to vector<16x16x4xf32>
    %c0_15 = arith.constant 0 : index
    %c0_16 = arith.constant 0 : index
    %64 = vector.load %arg4[%c0_15, %c0_16] : memref<36x4xbf16, #tpu.memory_space<vmem>>, vector<36x4xbf16>
    %c0_17 = arith.constant 0 : index
    %c0_18 = arith.constant 0 : index
    %65 = vector.load %arg5[%c0_17, %c0_18] : memref<1x4xf32, #tpu.memory_space<vmem>>, vector<1x4xf32>
    %c1_i32_19 = arith.constant 1 : i32
    %66 = tpu.dynamic_rotate %63 by %c1_i32_19 dim 1 : vector<16x16x4xf32>, i32 -> vector<16x16x4xf32>
    %c15_i32_20 = arith.constant 15 : i32
    %67 = tpu.dynamic_rotate %63 by %c15_i32_20 dim 1 : vector<16x16x4xf32>, i32 -> vector<16x16x4xf32>
    %68 = tpu.iota {dimensions = array<i32: 1>} : vector<1x16x1xi32>
    %c0_i32_21 = arith.constant 0 : i32
    %69 = vector.broadcast %c0_i32_21 : i32 to vector<1x16x1xi32>
    %70 = arith.cmpi eq, %68, %69 : vector<1x16x1xi32>
    %71 = vector.shape_cast %70 : vector<1x16x1xi1> to vector<1x16x1xi1>
    %72 = vector.broadcast %71 : vector<1x16x1xi1> to vector<16x16x4xi1>
    %73 = arith.select %72, %67, %66 : vector<16x16x4xi1>, vector<16x16x4xf32>
    %c15_i32_22 = arith.constant 15 : i32
    %74 = vector.broadcast %c15_i32_22 : i32 to vector<1x16x1xi32>
    %75 = arith.cmpi eq, %68, %74 : vector<1x16x1xi32>
    %76 = vector.shape_cast %75 : vector<1x16x1xi1> to vector<1x16x1xi1>
    %77 = vector.broadcast %76 : vector<1x16x1xi1> to vector<16x16x4xi1>
    %78 = arith.select %77, %66, %67 : vector<16x16x4xi1>, vector<16x16x4xf32>
    %79 = vector.extract_strided_slice %73 {offsets = [1, 0, 0], sizes = [1, 16, 4], strides = [1, 1, 1]} : vector<16x16x4xf32> to vector<1x16x4xf32>
    %80 = vector.extract_strided_slice %73 {offsets = [0, 0, 0], sizes = [15, 16, 4], strides = [1, 1, 1]} : vector<16x16x4xf32> to vector<15x16x4xf32>
    %81 = tpu.concatenate %79, %80 in 0 : vector<1x16x4xf32>, vector<15x16x4xf32> -> vector<16x16x4xf32>
    %82 = vector.extract_strided_slice %73 {offsets = [1, 0, 0], sizes = [15, 16, 4], strides = [1, 1, 1]} : vector<16x16x4xf32> to vector<15x16x4xf32>
    %83 = vector.extract_strided_slice %73 {offsets = [14, 0, 0], sizes = [1, 16, 4], strides = [1, 1, 1]} : vector<16x16x4xf32> to vector<1x16x4xf32>
    %84 = tpu.concatenate %82, %83 in 0 : vector<15x16x4xf32>, vector<1x16x4xf32> -> vector<16x16x4xf32>
    %85 = vector.extract_strided_slice %63 {offsets = [1, 0, 0], sizes = [1, 16, 4], strides = [1, 1, 1]} : vector<16x16x4xf32> to vector<1x16x4xf32>
    %86 = vector.extract_strided_slice %63 {offsets = [0, 0, 0], sizes = [15, 16, 4], strides = [1, 1, 1]} : vector<16x16x4xf32> to vector<15x16x4xf32>
    %87 = tpu.concatenate %85, %86 in 0 : vector<1x16x4xf32>, vector<15x16x4xf32> -> vector<16x16x4xf32>
    %88 = vector.extract_strided_slice %63 {offsets = [1, 0, 0], sizes = [15, 16, 4], strides = [1, 1, 1]} : vector<16x16x4xf32> to vector<15x16x4xf32>
    %89 = vector.extract_strided_slice %63 {offsets = [14, 0, 0], sizes = [1, 16, 4], strides = [1, 1, 1]} : vector<16x16x4xf32> to vector<1x16x4xf32>
    %90 = tpu.concatenate %88, %89 in 0 : vector<15x16x4xf32>, vector<1x16x4xf32> -> vector<16x16x4xf32>
    %91 = vector.extract_strided_slice %78 {offsets = [1, 0, 0], sizes = [1, 16, 4], strides = [1, 1, 1]} : vector<16x16x4xf32> to vector<1x16x4xf32>
    %92 = vector.extract_strided_slice %78 {offsets = [0, 0, 0], sizes = [15, 16, 4], strides = [1, 1, 1]} : vector<16x16x4xf32> to vector<15x16x4xf32>
    %93 = tpu.concatenate %91, %92 in 0 : vector<1x16x4xf32>, vector<15x16x4xf32> -> vector<16x16x4xf32>
    %94 = vector.extract_strided_slice %78 {offsets = [1, 0, 0], sizes = [15, 16, 4], strides = [1, 1, 1]} : vector<16x16x4xf32> to vector<15x16x4xf32>
    %95 = vector.extract_strided_slice %78 {offsets = [14, 0, 0], sizes = [1, 16, 4], strides = [1, 1, 1]} : vector<16x16x4xf32> to vector<1x16x4xf32>
    %96 = tpu.concatenate %94, %95 in 0 : vector<15x16x4xf32>, vector<1x16x4xf32> -> vector<16x16x4xf32>
    %97 = tpu.concatenate %81, %87, %93, %73, %63, %78, %84, %90, %96 in 2 : vector<16x16x4xf32>, vector<16x16x4xf32>, vector<16x16x4xf32>, vector<16x16x4xf32>, vector<16x16x4xf32>, vector<16x16x4xf32>, vector<16x16x4xf32>, vector<16x16x4xf32>, vector<16x16x4xf32> -> vector<16x16x36xf32>
    %98 = vector.shape_cast %97 : vector<16x16x36xf32> to vector<256x36xf32>
    %99 = arith.truncf %98 : vector<256x36xf32> to vector<256x36xbf16>
    %cst_23 = arith.constant dense<0.000000e+00> : vector<256x4xf32>
    %100 = tpu.matmul %99, %64, %cst_23 {dimension_numbers = #tpu.dot_dimension_numbers<[1], [0], [0], [1], [0, 0, 1, 1], [], []>} : vector<256x36xbf16>, vector<36x4xbf16>, vector<256x4xf32> -> vector<256x4xf32>
    %101 = vector.broadcast %65 : vector<1x4xf32> to vector<256x4xf32>
    %102 = arith.addf %100, %101 : vector<256x4xf32>
    %cst_24 = arith.constant dense<0.000000e+00> : vector<4xf32>
    %103 = vector.multi_reduction <add>, %102, %cst_24 [0] : vector<256x4xf32> to vector<4xf32>
    %104 = vector.shape_cast %103 : vector<4xf32> to vector<1x4xf32>
    %cst_25 = arith.constant 3.906250e-03 : f32
    %105 = vector.broadcast %cst_25 : f32 to vector<1x4xf32>
    %106 = arith.mulf %104, %105 : vector<1x4xf32>
    %107 = arith.mulf %102, %102 : vector<256x4xf32>
    %cst_26 = arith.constant dense<0.000000e+00> : vector<4xf32>
    %108 = vector.multi_reduction <add>, %107, %cst_26 [0] : vector<256x4xf32> to vector<4xf32>
    %109 = vector.shape_cast %108 : vector<4xf32> to vector<1x4xf32>
    %cst_27 = arith.constant 3.906250e-03 : f32
    %110 = vector.broadcast %cst_27 : f32 to vector<1x4xf32>
    %111 = arith.mulf %109, %110 : vector<1x4xf32>
    %112 = arith.mulf %106, %106 : vector<1x4xf32>
    %113 = arith.subf %111, %112 : vector<1x4xf32>
    %cst_28 = arith.constant 0.000000e+00 : f32
    %114 = vector.broadcast %cst_28 : f32 to vector<1x4xf32>
    %115 = arith.maximumf %113, %114 : vector<1x4xf32>
    %cst_29 = arith.constant 9.99999974E-6 : f32
    %116 = vector.broadcast %cst_29 : f32 to vector<1x4xf32>
    %117 = arith.addf %115, %116 : vector<1x4xf32>
    %118 = math.rsqrt %117 : vector<1x4xf32>
    %119 = vector.broadcast %106 : vector<1x4xf32> to vector<256x4xf32>
    %120 = arith.subf %102, %119 : vector<256x4xf32>
    %121 = vector.broadcast %118 : vector<1x4xf32> to vector<256x4xf32>
    %122 = arith.mulf %120, %121 : vector<256x4xf32>
    %123 = vector.shape_cast %122 : vector<256x4xf32> to vector<16x16x4xf32>
    %124 = arith.addf %1, %123 : vector<16x16x4xf32>
    %c0_30 = arith.constant 0 : index
    %c0_31 = arith.constant 0 : index
    %c0_32 = arith.constant 0 : index
    %c0_33 = arith.constant 0 : index
    %125 = vector.load %arg6[%c0_30, %c0_31, %c0_32, %c0_33] : memref<1x16x16x4xf32, #tpu.memory_space<vmem>>, vector<1x16x16x4xf32>
    %126 = vector.shape_cast %125 : vector<1x16x16x4xf32> to vector<16x16x4xf32>
    %127 = vector.shape_cast %124 : vector<16x16x4xf32> to vector<1x16x16x4xf32>
    tpu.vector_store %arg6[%c0_30, %c0_31, %c0_32, %c0_33], %127 {strides = array<i32>} : memref<1x16x16x4xf32, #tpu.memory_space<vmem>>, vector<1x16x16x4xf32>,
    return
  }
  func.func @transform_0(%arg0: i32) -> (i32, i32, i32, i32) {
    %c0_i32 = arith.constant 0 : i32
    %c0_i32_0 = arith.constant 0 : i32
    %c0_i32_1 = arith.constant 0 : i32
    %c0_i32_2 = arith.constant 0 : i32
    return %arg0, %c0_i32, %c0_i32_0, %c0_i32_1 : i32, i32, i32, i32
  }
  func.func @transform_1(%arg0: i32) -> (i32, i32) {
    %c0_i32 = arith.constant 0 : i32
    %c0_i32_0 = arith.constant 0 : i32
    %c0_i32_1 = arith.constant 0 : i32
    return %c0_i32, %c0_i32_0 : i32, i32
  }
  func.func @transform_2(%arg0: i32) -> (i32, i32) {
    %c0_i32 = arith.constant 0 : i32
    %c0_i32_0 = arith.constant 0 : i32
    %c0_i32_1 = arith.constant 0 : i32
    return %c0_i32, %c0_i32_0 : i32, i32
  }
  func.func @transform_3(%arg0: i32) -> (i32, i32) {
    %c0_i32 = arith.constant 0 : i32
    %c0_i32_0 = arith.constant 0 : i32
    %c0_i32_1 = arith.constant 0 : i32
    return %c0_i32, %c0_i32_0 : i32, i32
  }
  func.func @transform_4(%arg0: i32) -> (i32, i32) {
    %c0_i32 = arith.constant 0 : i32
    %c0_i32_0 = arith.constant 0 : i32
    %c0_i32_1 = arith.constant 0 : i32
    return %c0_i32, %c0_i32_0 : i32, i32
  }
  func.func @transform_5(%arg0: i32) -> (i32, i32, i32, i32) {
    %c0_i32 = arith.constant 0 : i32
    %c0_i32_0 = arith.constant 0 : i32
    %c0_i32_1 = arith.constant 0 : i32
    %c0_i32_2 = arith.constant 0 : i32
    return %arg0, %c0_i32, %c0_i32_0, %c0_i32_1 : i32, i32, i32, i32
  }
}

</mosaic_0001>

<bundles_post_ra>
// kernel: tpu_custom_call.1
= control target key start
LH: loop header
LB: loop body
LE: loop exit
PB: predicated region body
PF: predicated region fallthrough
CT: control target
= control target key end

     0   :  { %s5487_s18 = smov 0   ;;  %s9408_s0 = inlined_call_operand.vmem [shape: f32[2,16,16,4], index: 0, kind: input, shape index: {}]   ;;  %s9409_s1 = inlined_call_operand.vmem [shape: bf16[36,4], index: 1, kind: input, shape index: {}]   ;;  %s9410_s2 = inlined_call_operand.vmem [shape: f32[1,4], index: 2, kind: input, shape index: {}]   ;;  %s9411_s3 = inlined_call_operand.vmem [shape: bf16[36,4], index: 3, kind: input, shape index: {}]   ;;  %s9412_s4 = inlined_call_operand.vmem [shape: f32[1,4], index: 4, kind: input, shape index: {}]   ;;  %s9413_s5 = inlined_call_operand.vmem [shape: f32[2,16,16,4], index: 5, kind: output, shape index: {}]  }
   0x1 LB: > { %s3984_s19 = sadd.s32 4294967295, %s5447_s18   ;;  %p3988_p0 = scmp.ge.s32.totalorder %s5447_s18, 1  ;;  %s5447_s18 = sphi %s5487_s18, %s15_s18  }
   0x2   : > { %p187_p1 = scmp.lt.s32.totalorder %s5447_s18, 3 }
   0x4   : > { %p188_p2 = pnand %p3988_p0, %p187_p1 }
   0x6   : > { %191 = sbr.rel (%p188_p2) target bundleno = 1307 (0x51b), region = 40 }
   0xd   : > { %p215_p3 = scmp.lt.s32.totalorder %s3984_s19, 1  ;;  %s5449_s24 = smov 4   ;;  %v296_v11 = vlaneseq  ;;  %vm1653_vm4 = vcmask 1041408   ;;  %vm1307_vm5 = vcmask 31744   ;;  %vm1338_vm6 = vcmask 64512  }
   0xe   : > { %s5450_s25 = smov 8   ;;  %s5451_s26 = smov 12   ;;  %vm1369_vm7 = vcmask 97280   ;;  %vm1402_vm8 = vcmask 130048   ;;  %vm1435_vm9 = vcmask 162816   ;;  %vm1468_vm10 = vcmask 195584  }
   0xf   : > { %s10027_s19 = smov (!%p215_p3, %s3984_s19), 1  ;;  %v5567_v18 = vshrl.u32 %v296_v11, 7  ;;  %s5452_s27 = smov 16   ;;  %vm1501_vm11 = vcmask 228352   ;;  %vm1534_vm12 = vcmask 261120   ;;  %vm1604_vm13 = vcmask 293888  }
  0x10   : > { %s4035_s20 = sshll.u32 %s10027_s19, 8  ;;  %s5453_s7 = smov 20  }
  0x11   : > { %s5503_s23 = scalar_lea.vmem %s9408_s0, %s4035_s20  ;;  %9639 = vst [vmem:[#allocation7_spill] sm:$0xff] %v5567_v18  ;;  %v5601_v28 = vadd.s32 8, %v5567_v18  ;;  %vm298_vm0 = vcmp.lt.s32.totalorder %v5567_v18, 1  ;;  %vm363_vm1 = vcmp.lt.s32.totalorder %v5567_v18, 7  ;;  %vm397_vm3 = vcmp.eq.s32.totalorder %v5567_v18, 0  ;;  %s5454_s10 = smov 24  }
  0x12   : > { %v5506_v0 = vld [vmem:[%s5503_s23 + $0x20] sm:$0xff]  ;;  %v5509_v1 = vld [vmem:[%s5503_s23 + $0x28] sm:$0xff]  ;;  %v5512_v2 = vld [vmem:[%s5503_s23 + $0x10] sm:$0xff]  ;;  %s5455_s11 = smov 28   ;;  %s5456_s12 = smov 32  }
  0x13   : > { %v5516_v3 = vpack.i.bf16 %v5509_v1, %v5506_v0  ;;  %v5519_v4 = vld [vmem:[%s5503_s23 + $0x18] sm:$0xff]  ;;  %v5522_v5 = vld [vmem:[%s5503_s23 + $0x30] sm:$0xff]  ;;  %v5532_v8 = vld [vmem:[%s5503_s23] sm:$0xff]  ;;  %v9419_v27 = vrot.slane %v5512_v2, 7  ;;  %9644 = vst [vmem:[#allocation12_spill] sm:$0xff] %v5601_v28  ;;  %v332_v31 = vrot.slane %v5512_v2, 1  ;;  %s9287_s29 = scalar_lea.vmem %s9413_s5, %s4035_s20 }
  0x14   : > { %v5525_v6 = vld [vmem:[%s5503_s23 + $0x38] sm:$0xff]  ;;  %v5529_v7 = vpack.i.bf16 %v5519_v4, %v5512_v2  ;;  %v5535_v9 = vld [vmem:[%s5503_s23 + $0x8] sm:$0xff]  ;;  %v5550_v13 = vld [vmem:[%s5503_s23 + $0x50] sm:$0xff]  ;;  %v9418_v30 = vrot.slane %v5519_v4, 7  ;;  %v9415_v32 = vrot.slane %v5506_v0, 7  ;;  %v348_v35 = vrot.slane %v5519_v4, 1 }
  0x15   : > { %9634 = vst [vmem:[#allocation2_spill] sm:$0xff] %v5516_v3  ;;  %4180 = vrot.lane.b32.xlu1 %v5516_v3, %s5449_s24  ;;  %v5541_v10 = vpack.i.bf16 %v5525_v6, %v5522_v5  ;;  %v5547_v12 = vpack.i.bf16 %v5535_v9, %v5532_v8  ;;  %v5553_v14 = vld [vmem:[%s5503_s23 + $0x58] sm:$0xff]  ;;  %v5556_v15 = vld [vmem:[%s5503_s23 + $0x40] sm:$0xff]  ;;  %v5559_v16 = vld [vmem:[%s5503_s23 + $0x48] sm:$0xff]  ;;  %v9414_v36 = vrot.slane %v5509_v1, 7  ;;  %v333_v37 = vrot.slane %v5506_v0, 1 }
  0x16   : > { %9635 = vst [vmem:[#allocation3_spill] sm:$0xff] %v5529_v7  ;;  %4170 = vrot.lane.b32.xlu0 %v5529_v7, %s5449_s24  ;;  %v5565_v17 = vpack.i.bf16 %v5553_v14, %v5550_v13  ;;  %v5573_v19 = vpack.i.bf16 %v5559_v16, %v5556_v15  ;;  %v5576_v20 = vld [vmem:[%s5503_s23 + $0x70] sm:$0xff]  ;;  %v5579_v21 = vld [vmem:[%s5503_s23 + $0x78] sm:$0xff]  ;;  %v5582_v22 = vld [vmem:[%s5503_s23 + $0x60] sm:$0xff]  ;;  %v349_v38 = vrot.slane %v5509_v1, 1  ;;  %v9417_v40 = vrot.slane %v5532_v8, 7 }
  0x17   : > { %9636 = vst [vmem:[#allocation4_spill] sm:$0xff] %v5541_v10  ;;  %9637 = vst [vmem:[#allocation5_spill] sm:$0xff] %v5547_v12  ;;  %v5585_v23 = vld [vmem:[%s5503_s23 + $0x68] sm:$0xff]  ;;  %v5591_v24 = vpack.i.bf16 %v5579_v21, %v5576_v20  ;;  %v5594_v25 = vld [vmem:[%s5503_s23 + $0x90] sm:$0xff]  ;;  %v9416_v41 = vrot.slane %v5535_v9, 7  ;;  %v331_v42 = vrot.slane %v5532_v8, 1  ;;  %v5662_v50 = vsel %vm298_vm0, %v9419_v27, %v9418_v30 }
  0x18   : > { %9638 = vst [vmem:[#allocation6_spill] sm:$0xff] %v5565_v17  ;;  %9640 = vst [vmem:[#allocation8_spill] sm:$0xff] %v5573_v19  ;;  %v5597_v26 = vld [vmem:[%s5503_s23 + $0x98] sm:$0xff]  ;;  %v5607_v29 = vpack.i.bf16 %v5585_v23, %v5582_v22  ;;  %v5613_v33 = vld [vmem:[%s5503_s23 + $0x80] sm:$0xff]  ;;  %v347_v43 = vrot.slane %v5535_v9, 1  ;;  %vm436_vm2 = vcmp.eq.s32.totalorder %v5601_v28, 15  ;;  %v381_v51 = vsel %vm363_vm1, %v348_v35, %v332_v31 }
  0x19   : > { %4185 = vrot.lane.b32.xlu1 %v5541_v10, %s5449_s24  ;;  %9641 = vst [vmem:[#allocation9_spill] sm:$0xff] %v5582_v22  ;;  %9642 = vst [vmem:[#allocation10_spill] sm:$0xff] %v5585_v23  ;;  %v5616_v34 = vld [vmem:[%s5503_s23 + $0x88] sm:$0xff]  ;;  %v5624_v39 = vpack.i.bf16 %v5597_v26, %v5594_v25  ;;  %v5641_v45 = vld [vmem:[%s5503_s23 + $0xb0] sm:$0xff]  ;;  %v5672_v52 = vsel %vm298_vm0, %v9415_v32, %v9414_v36  ;;  %v382_v53 = vsel %vm363_vm1, %v349_v38, %v333_v37 }
  0x1a   : > { %4175 = vrot.lane.b32.xlu0 %v5547_v12, %s5449_s24  ;;  %9643 = vst [vmem:[#allocation11_spill] sm:$0xff] %v5591_v24  ;;  %9645 = vst [vmem:[#allocation13_spill] sm:$0xff] %v5607_v29  ;;  %v5638_v44 = vpack.i.bf16 %v5616_v34, %v5613_v33  ;;  %v5644_v46 = vld [vmem:[%s5503_s23 + $0xb8] sm:$0xff]  ;;  %v5648_v47 = vld [vmem:[%s5503_s23 + $0xa0] sm:$0xff]  ;;  %v5693_v58 = vsel %vm363_vm1, %v332_v31, %v348_v35  ;;  %v5701_v59 = vsel %vm298_vm0, %v9417_v40, %v9416_v41 }
  0x1b   : > { %9646 = vst [vmem:[#allocation14_spill] sm:$0xff] %v5616_v34  ;;  %9647 = vst [vmem:[#allocation15_spill] sm:$0xff] %v5624_v39  ;;  %v5651_v48 = vld [vmem:[%s5503_s23 + $0xa8] sm:$0xff]  ;;  %v5654_v49 = vld [vmem:[%s5503_s23 + $0xd0] sm:$0xff]  ;;  %v5689_v57 = vpack.i.bf16 %v5644_v46, %v5641_v45  ;;  %v380_v60 = vsel %vm363_vm1, %v347_v43, %v331_v42  ;;  %v444_v62 = vsel %vm436_vm2, %v5662_v50, %v381_v51  ;;  %v335_v41 = vrot.slane %v5556_v15, 1 }
  0x1c   : > { %9648 = vst [vmem:[#allocation16_spill] sm:$0xff] %v5638_v44  ;;  %9649 = vst [vmem:[#allocation17_spill] sm:$0xff] %v5648_v47  ;;  %v5677_v54 = vld [vmem:[%s5503_s23 + $0xd8] sm:$0xff]  ;;  %v5680_v55 = vld [vmem:[%s5503_s23 + $0xc0] sm:$0xff]  ;;  %v5709_v61 = vpack.i.bf16 %v5651_v48, %v5648_v47  ;;  %v5716_v63 = vsel %vm363_vm1, %v333_v37, %v349_v38  ;;  %v446_v11 = vsel %vm436_vm2, %v5672_v52, %v382_v53  ;;  %v351_v40 = vrot.slane %v5559_v16, 1 }
  0x1d   : > { %4195 = vrot.lane.b32.xlu1 %v5565_v17, %s5449_s24  ;;  %9650 = vst [vmem:[#allocation18_spill] sm:$0xff] %v5651_v48  ;;  %9651 = vst [vmem:[#allocation19_spill] sm:$0xff] %v5680_v55  ;;  %v5683_v56 = vld [vmem:[%s5503_s23 + $0xc8] sm:$0xff]  ;;  %v5723_v31 = vpack.i.bf16 %v5677_v54, %v5654_v49  ;;  %v5732_v32 = vld [vmem:[%s5503_s23 + $0xe0] sm:$0xff]  ;;  %v5739_v38 = vsel %vm363_vm1, %v331_v42, %v347_v43  ;;  %v442_v53 = vsel %vm436_vm2, %v5701_v59, %v380_v60 }
  0x1e   : > { %4190 = vrot.lane.b32.xlu0 %v5573_v19, %s5449_s24  ;;  %9652 = vst [vmem:[#allocation20_spill] sm:$0xff] %v5683_v56  ;;  %9653 = vst [vmem:[#allocation21_spill] sm:$0xff] %v5689_v57  ;;  %v5727_v35 = vpack.i.bf16 %v5683_v56, %v5680_v55  ;;  %v5735_v37 = vld [vmem:[%s5503_s23 + $0xe8] sm:$0xff]  ;;  %v334_v36 = vrot.slane %v5522_v5, 1  ;;  %v350_v42 = vrot.slane %v5525_v6, 1  ;;  %v337_v51 = vrot.slane %v5582_v22, 1 }
  0x1f   : > { %9654 = vst [vmem:[#allocation22_spill] sm:$0xff] %v5709_v61  ;;  %9655 = vst [vmem:[#allocation23_spill] sm:$0xff] %v5723_v31  ;;  %v5763_v30 = vpack.i.bf16 %v5735_v37, %v5732_v32  ;;  %v5766_v27 = vpack.i.bf16 %v446_v11, %v5716_v63  ;;  %v9663_v43 = vrot.slane %v5556_v15, 7  ;;  %v5783_v11 = vpack.i.bf16 %v442_v53, %v5739_v38 }
  0x20   : > { %9656 = vst [vmem:[#allocation24_spill] sm:$0xff] %v5727_v35  ;;  %9657 = vst [vmem:[#allocation25_spill] sm:$0xff] %v5732_v32  ;;  %v384_v19 = vsel %vm363_vm1, %v351_v40, %v335_v41  ;;  %v9667_v53 = vrot.slane %v5585_v23, 7  ;;  %v339_v10 = vrot.slane %v5613_v33, 1  ;;  %v355_v12 = vrot.slane %v5616_v34, 1 }
  0x21   : > { %4205 = vrot.lane.b32.xlu1 %v5591_v24, %s5449_s24  ;;  %9658 = vst [vmem:[#allocation26_spill] sm:$0xff] %v5735_v37  ;;  %9660 = vst [vmem:[#allocation28_spill] sm:$0xff] %v5763_v30  ;;  %v352_v24 = vrot.slane %v5553_v14, 1 }
  0x22   : > { %4200 = vrot.lane.b32.xlu0 %v5607_v29, %s5449_s24  ;;  %9661 = vst [vmem:[#allocation29_spill] sm:$0xff] %v5766_v27  ;;  %v336_v29 = vrot.slane %v5550_v13, 1  ;;  %9664 = vst [vmem:[#allocation30_spill] sm:$0xff] %v5783_v11 }
  0x25   : > { %4215 = vrot.lane.b32.xlu1 %v5624_v39, %s5449_s24  ;;  %v353_v39 = vrot.slane %v5585_v23, 1  ;;  %v9670_v23 = vrot.slane %v5553_v14, 7 }
  0x26   : > { %4210 = vrot.lane.b32.xlu0 %v5638_v44, %s5449_s24 }
  0x27   : > { %v386_v3 = vsel %vm363_vm1, %v353_v39, %v337_v51 }
  0x29   : > { %4225 = vrot.lane.b32.xlu1 %v5689_v57, %s5449_s24  ;;  %v5759_v57 = vpack.i.bf16 %v444_v62, %v5693_v58  ;;  %v383_v62 = vsel %vm363_vm1, %v350_v42, %v334_v36 }
  0x2a   : > { %4220 = vrot.lane.b32.xlu0 %v5709_v61, %s5449_s24  ;;  %v9662_v61 = vrot.slane %v5559_v16, 7 }
  0x2b   : > { %9659 = vst [vmem:[#allocation27_spill] sm:$0xff] %v5759_v57 }
  0x2c   : > { %v5774_v60 = vsel %vm298_vm0, %v9663_v43, %v9662_v61  ;;  %v9665_v61 = vrot.slane %v5525_v6, 7  ;;  %v9666_v43 = vrot.slane %v5522_v5, 7 }
  0x2d   : > { %4235 = vrot.lane.b32.xlu1 %v5723_v31, %s5449_s24  ;;  %v9668_v31 = vrot.slane %v5582_v22, 7  ;;  %v354_v22 = vrot.slane %v5579_v21, 1 }
  0x2e   : > { %v5793_v44 = vsel %vm298_vm0, %v9666_v43, %v9665_v61  ;;  %4230 = vrot.lane.b32.xlu0 %v5727_v35, %s5449_s24  ;;  %v385_v61 = vsel %vm363_vm1, %v352_v24, %v336_v29  ;;  %v338_v43 = vrot.slane %v5576_v20, 1  ;;  %v5831_v35 = vsel %vm363_vm1, %v335_v41, %v351_v40 }
  0x2f   : > { %v5805_v17 = vsel %vm298_vm0, %v9668_v31, %v9667_v53  ;;  %v9671_v31 = vrot.slane %v5550_v13, 7  ;;  %v448_v7 = vsel %vm436_vm2, %v5793_v44, %v383_v62  ;;  %v9673_v41 = vrot.slane %v5613_v33, 7 }
  0x30   : > { %9669 = vst [vmem:[#allocation31_spill] sm:$0xff] %v5805_v17  ;;  %v454_v40 = vsel %vm436_vm2, %v5805_v17, %v386_v3  ;;  %v9675_v3 = vrot.slane %v5579_v21, 7  ;;  %v5896_v62 = vsel %vm363_vm1, %v339_v10, %v355_v12 }
  0x31   : > { %v5821_v53 = vsel %vm298_vm0, %v9671_v31, %v9670_v23  ;;  %4245 = vrot.lane.b32.xlu1 %v5759_v57, %s5450_s25  ;;  %v450_v23 = vsel %vm436_vm2, %v5774_v60, %v384_v19  ;;  %v5838_v31 = vsel %vm363_vm1, %v334_v36, %v350_v42  ;;  %v5847_v57 = vsel %vm363_vm1, %v337_v51, %v353_v39 }
  0x32   : > { %4240 = vrot.lane.b32.xlu0 %v5763_v30, %s5449_s24  ;;  %v5854_v19 = vsel %vm363_vm1, %v336_v29, %v352_v24  ;;  %v9672_v36 = vrot.slane %v5616_v34, 7  ;;  %v452_v39 = vsel %vm436_vm2, %v5821_v53, %v385_v61  ;;  %v388_v51 = vsel %vm363_vm1, %v355_v12, %v339_v10  ;;  %9681 = vst [vmem:[#allocation37_spill] sm:$0xff] %v5896_v62 }
  0x33   : > { %v9676_v24 = vrot.slane %v5576_v20, 7  ;;  %v341_v61 = vrot.slane %v5648_v47, 1  ;;  %v357_v30 = vrot.slane %v5651_v48, 1  ;;  %v5886_v17 = vpack.i.bf16 %v450_v23, %v5831_v35 }
  0x34   : > { %v5862_v42 = vsel %vm298_vm0, %v9673_v41, %v9672_v36  ;;  %v387_v36 = vsel %vm363_vm1, %v354_v22, %v338_v43  ;;  %v340_v23 = vrot.slane %v5594_v25, 1  ;;  %v356_v34 = vrot.slane %v5597_v26, 1 }
  0x35   : > { %9674 = vst [vmem:[#allocation32_spill] sm:$0xff] %v5862_v42  ;;  %v5875_v29 = vsel %vm298_vm0, %v9676_v24, %v9675_v3  ;;  %4255 = vrot.lane.b32.xlu1 %v5766_v27, %s5450_s25  ;;  %9678 = vst [vmem:[#allocation34_spill] sm:$0xff] %v5886_v17  ;;  %v5889_v3 = vpack.i.bf16 %v448_v7, %v5838_v31  ;;  %v5892_v24 = vpack.i.bf16 %v454_v40, %v5847_v57 }
  0x36   : > { %9677 = vst [vmem:[#allocation33_spill] sm:$0xff] %v5875_v29  ;;  %4250 = vrot.lane.b32.xlu0 %v5783_v11, %s5450_s25  ;;  %v5905_v7 = vpack.i.bf16 %v452_v39, %v5854_v19  ;;  %v458_v40 = vsel %vm436_vm2, %v5862_v42, %v388_v51  ;;  %v5912_v10 = vsel %vm363_vm1, %v338_v43, %v354_v22  ;;  %v9683_v41 = vrot.slane %v5651_v48, 7 }
  0x37   : > { %9679 = vst [vmem:[#allocation35_spill] sm:$0xff] %v5889_v3  ;;  %9680 = vst [vmem:[#allocation36_spill] sm:$0xff] %v5892_v24  ;;  %v456_v12 = vsel %vm436_vm2, %v5875_v29, %v387_v36  ;;  %v9684_v27 = vrot.slane %v5648_v47, 7  ;;  %v390_v11 = vsel %vm363_vm1, %v357_v30, %v341_v61  ;;  %v343_v43 = vrot.slane %v5680_v55, 1 }
  0x38   : > { %9682 = vst [vmem:[#allocation38_spill] sm:$0xff] %v5905_v7  ;;  %v359_v36 = vrot.slane %v5683_v56, 1  ;;  %v389_v22 = vsel %vm363_vm1, %v356_v34, %v340_v23  ;;  %v358_v42 = vrot.slane %v5644_v46, 1  ;;  %v5950_v48 = vpack.i.bf16 %v458_v40, %v5896_v62 }
  0x39   : > { %v5923_v39 = vsel %vm298_vm0, %v9684_v27, %v9683_v41  ;;  %4265 = vrot.lane.b32.xlu1 %v5886_v17, %s5450_s25  ;;  %v9686_v27 = vrot.slane %v5597_v26, 7  ;;  %v9687_v41 = vrot.slane %v5594_v25, 7  ;;  %v342_v17 = vrot.slane %v5641_v45, 1 }
  0x3a   : > { %9685 = vst [vmem:[#allocation39_spill] sm:$0xff] %v5923_v39  ;;  %4260 = vrot.lane.b32.xlu0 %v5889_v3, %s5450_s25  ;;  %9689 = vst [vmem:[#allocation41_spill] sm:$0xff] %v5950_v48  ;;  %v5954_v3 = vsel %vm363_vm1, %v341_v61, %v357_v30  ;;  %v5957_v47 = vpack.i.bf16 %v456_v12, %v5912_v10  ;;  %v9691_v40 = vrot.slane %v5683_v56, 7  ;;  %v9692_v62 = vrot.slane %v5680_v55, 7 }
  0x3b   : > { %v5943_v51 = vsel %vm298_vm0, %v9687_v41, %v9686_v27  ;;  %v462_v27 = vsel %vm436_vm2, %v5923_v39, %v390_v11  ;;  %v5964_v41 = vsel %vm363_vm1, %v340_v23, %v356_v34  ;;  %v392_v61 = vsel %vm363_vm1, %v359_v36, %v343_v43 }
  0x3c   : > { %9688 = vst [vmem:[#allocation40_spill] sm:$0xff] %v5943_v51  ;;  %9690 = vst [vmem:[#allocation42_spill] sm:$0xff] %v5957_v47  ;;  %v5972_v30 = vsel %vm298_vm0, %v9692_v62, %v9691_v40  ;;  %v460_v11 = vsel %vm436_vm2, %v5943_v51, %v389_v22  ;;  %v9694_v34 = vrot.slane %v5644_v46, 7  ;;  %v9695_v23 = vrot.slane %v5641_v45, 7  ;;  %v6008_v62 = vld [vmem:[%s5503_s23 + $0xf8] sm:$0xff]  ;;  %v9783_v18 = vld [vmem:[#allocation34_spill] sm:$0xff] }
  0x3d   : > { %9693 = vst [vmem:[#allocation43_spill] sm:$0xff] %v5972_v30  ;;  %4275 = vrot.lane.b32.xlu1 %v5892_v24, %s5450_s25  ;;  %v391_v40 = vsel %vm363_vm1, %v358_v42, %v342_v17  ;;  %v345_v24 = vrot.slane %v5732_v32, 1  ;;  %v361_v39 = vrot.slane %v5735_v37, 1  ;;  %v5998_v56 = vpack.i.bf16 %v462_v27, %v5954_v3  ;;  %9699 = vst [vmem:[#allocation47_spill] sm:$0xff] %v6008_v62 }
  0x3e   : > { %v5987_v12 = vsel %vm298_vm0, %v9695_v23, %v9694_v34  ;;  %4270 = vrot.lane.b32.xlu0 %v5905_v7, %s5450_s25  ;;  %v6002_v34 = vsel %vm363_vm1, %v343_v43, %v359_v36  ;;  %v6005_v23 = vld [vmem:[%s5503_s23 + $0xf0] sm:$0xff]  ;;  %v344_v22 = vrot.slane %v5654_v49, 1  ;;  %v360_v51 = vrot.slane %v5677_v54, 1 }
  0x3f   : > { %9696 = vst [vmem:[#allocation44_spill] sm:$0xff] %v5987_v12  ;;  %9697 = vst [vmem:[#allocation45_spill] sm:$0xff] %v5998_v56  ;;  %v6017_v27 = vpack.i.bf16 %v460_v11, %v5964_v41  ;;  %v466_v43 = vsel %vm436_vm2, %v5972_v30, %v392_v61  ;;  %v6024_v36 = vsel %vm363_vm1, %v342_v17, %v358_v42  ;;  %v9700_v55 = vrot.slane %v5735_v37, 7 }
  0x40   : > { %9698 = vst [vmem:[#allocation46_spill] sm:$0xff] %v6002_v34  ;;  %v464_v7 = vsel %vm436_vm2, %v5987_v12, %v391_v40  ;;  %v9701_v11 = vrot.slane %v5732_v32, 7  ;;  %v394_v61 = vsel %vm363_vm1, %v361_v39, %v345_v24  ;;  %v279_v17 = vrot.slane %v6005_v23, 7 }
  0x41   : > { %4285 = vrot.lane.b32.xlu1 %v5950_v48, %s5450_s25  ;;  %v295_v42 = vrot.slane %v6008_v62, 7  ;;  %v6047_v30 = vpack.i.bf16 %v466_v43, %v6002_v34  ;;  %v9703_v37 = vrot.slane %v5677_v54, 7  ;;  %v393_v32 = vsel %vm363_vm1, %v360_v51, %v344_v22 }
  0x42   : > { %4280 = vrot.lane.b32.xlu0 %v5957_v47, %s5450_s25  ;;  %v6037_v48 = vsel %vm298_vm0, %v9701_v11, %v9700_v55  ;;  %v9493_v47 = vrot.slane %v6008_v62, 1  ;;  %v9704_v55 = vrot.slane %v5654_v49, 7  ;;  %v6064_v43 = vpack.i.bf16 %v464_v7, %v6024_v36 }
  0x43   : > { %9702 = vst [vmem:[#allocation48_spill] sm:$0xff] %v6037_v48  ;;  %v330_v12 = vsel %vm298_vm0, %v295_v42, %v279_v17  ;;  %v6068_v40 = vsel %vm363_vm1, %v345_v24, %v361_v39  ;;  %v9707_v7 = vrot.slane %v5512_v2, 7  ;;  %v9708_v24 = vrot.slane %v5519_v4, 7 }
  0x44   : > { %v6055_v11 = vsel %vm298_vm0, %v9704_v55, %v9703_v37  ;;  %v470_v37 = vsel %vm436_vm2, %v6037_v48, %v394_v61  ;;  %v9706_v55 = vrot.slane %v6005_v23, 1  ;;  %v9709_v61 = vrot.slane %v5532_v8, 7 }
  0x45   : > { %9705 = vst [vmem:[#allocation49_spill] sm:$0xff] %v6055_v11  ;;  %4295 = vrot.lane.b32.xlu1 %v5998_v56, %s5450_s25  ;;  %v316_v39 = vsel %vm298_vm0, %v9708_v24, %v9707_v7  ;;  %v9710_v56 = vrot.slane %v5535_v9, 7  ;;  %v377_v4 = vsel %vm363_vm1, %v344_v22, %v360_v51  ;;  %v468_v8 = vsel %vm436_vm2, %v6055_v11, %v393_v32 }
  0x46   : > { %v6079_v34 = vsel %vm363_vm1, %v9706_v55, %v9493_v47  ;;  %4290 = vrot.lane.b32.xlu0 %v6017_v27, %s5450_s25  ;;  %v6097_v55 = vsel %vm298_vm0, %v279_v17, %v295_v42  ;;  %v9711_v32 = vrot.slane %v5522_v5, 7  ;;  %v9712_v22 = vrot.slane %v5525_v6, 7  ;;  %v9770_v47 = vld [vmem:[#allocation13_spill] sm:$0xff] }
  0x47   : > { %v315_v62 = vsel %vm298_vm0, %v9710_v56, %v9709_v61  ;;  %v433_v2 = vsel %vm397_vm3, %v6079_v34, %v330_v12  ;;  %v6111_v56 = vpack.i.bf16 %v470_v37, %v6068_v40  ;;  %v6118_v12 = vsel %vm397_vm3, %v5693_v58, %v316_v39 }
  0x48   : > { %v6108_v9 = vpack.i.bf16 %v6097_v55, %v433_v2  ;;  %v6123_v51 = vsel %vm397_vm3, %v5739_v38, %v315_v62  ;;  %v318_v17 = vsel %vm298_vm0, %v9712_v22, %v9711_v32  ;;  %v6133_v42 = vpack.i.bf16 %v468_v8, %v377_v4  ;;  %v9722_v32 = vld [vmem:[#allocation9_spill] sm:$0xff] }
  0x49   : > { %4305 = vrot.lane.b32.xlu1 %v6047_v30, %s5450_s25  ;;  %v9713_v58 = vrot.slane %v5506_v0, 7  ;;  %v9714_v37 = vrot.slane %v5509_v1, 7  ;;  %v6145_v5 = vpack.i.bf16 %v5662_v50, %v6118_v12  ;;  %v4319_v6 = vpack.i.bf16 %v5701_v59, %v6123_v51 }
  0x4a   : > { %4300 = vrot.lane.b32.xlu0 %v6064_v43, %s5450_s25  ;;  %v6152_v62 = vsel %vm397_vm3, %v5838_v31, %v318_v17  ;;  %v9715_v1 = vrot.slane %v5550_v13, 7  ;;  %v9716_v7 = vrot.slane %v5553_v14, 7  ;;  %v9717_v39 = vrot.slane %v5556_v15, 7  ;;  %v9724_v17 = vld [vmem:[#allocation10_spill] sm:$0xff] }
  0x4b   : > { %v317_v38 = vsel %vm298_vm0, %v9714_v37, %v9713_v58  ;;  %v9718_v31 = vrot.slane %v5559_v16, 7  ;;  %v9720_v16 = vrot.slane %v5576_v20, 7  ;;  %v9721_v2 = vrot.slane %v5579_v21, 7 }
  0x4c   : > { %v6159_v0 = vsel %vm397_vm3, %v5716_v63, %v317_v38  ;;  %v320_v24 = vsel %vm298_vm0, %v9716_v7, %v9715_v1  ;;  %v6177_v63 = vpack.i.bf16 %v5793_v44, %v6152_v62  ;;  %v9723_v22 = vrot.slane %v9722_v32, 7  ;;  %v9738_v32 = vld [vmem:[#allocation17_spill] sm:$0xff] }
  0x4d   : > { %4315 = vrot.lane.b32.xlu1 %v6111_v56, %s5450_s25  ;;  %v319_v61 = vsel %vm298_vm0, %v9718_v31, %v9717_v39  ;;  %v6182_v13 = vpack.i.bf16 %v5672_v52, %v6159_v0  ;;  %v6187_v14 = vsel %vm397_vm3, %v5854_v19, %v320_v24  ;;  %v322_v8 = vsel %vm298_vm0, %v9721_v2, %v9720_v16  ;;  %v9730_v24 = vld [vmem:[#allocation14_spill] sm:$0xff]  ;;  %v9734_v31 = vld [vmem:[#allocation37_spill] sm:$0xff] }
  0x4e   : > { %4310 = vrot.lane.b32.xlu0 %v6133_v42, %s5450_s25  ;;  %9719 = vst [vmem:[#allocation50_spill] sm:$0xff] %v6187_v14  ;;  %v6192_v15 = vsel %vm397_vm3, %v5831_v35, %v319_v61  ;;  %v9725_v58 = vrot.slane %v9724_v17, 7  ;;  %v6210_v35 = vpack.i.bf16 %v5821_v53, %v6187_v14  ;;  %v6221_v21 = vsel %vm397_vm3, %v5912_v10, %v322_v8  ;;  %v9740_v17 = vld [vmem:[#allocation18_spill] sm:$0xff] }
  0x4f   : > { %v6216_v20 = vpack.i.bf16 %v5774_v60, %v6192_v15  ;;  %9726 = vst [vmem:[#allocation9_spill] sm:$0xff] %v6221_v21  ;;  %v9727_v38 = vrot.slane %v5594_v25, 7  ;;  %v9729_v7 = vrot.slane %v5613_v33, 7  ;;  %v9731_v39 = vrot.slane %v9730_v24, 7  ;;  %v9732_v25 = vld [vmem:[#allocation31_spill] sm:$0xff] }
  0x50   : > { %v321_v19 = vsel %vm298_vm0, %v9725_v58, %v9723_v22  ;;  %v9736_v16 = vrot.slane %v5641_v45, 7  ;;  %v9737_v2 = vrot.slane %v5644_v46, 7  ;;  %v9739_v22 = vrot.slane %v9738_v32, 7  ;;  %v9743_v45 = vld [vmem:[#allocation32_spill] sm:$0xff] }
  0x51   : > { %4325 = vrot.lane.b32.xlu1 %v6145_v5, %s5451_s26  ;;  %v6226_v37 = vsel %vm397_vm3, %v5847_v57, %v321_v19  ;;  %v323_v10 = vsel %vm298_vm0, %v9731_v39, %v9729_v7  ;;  %v6244_v57 = vpack.i.bf16 %v5875_v29, %v6221_v21  ;;  %v9741_v58 = vrot.slane %v9740_v17, 7  ;;  %v9742_v19 = vld [vmem:[#allocation40_spill] sm:$0xff] }
  0x52   : > { %4320 = vrot.lane.b32.xlu0 %v4319_v6, %s5451_s26  ;;  %v9728_v6 = vrot.slane %v5597_v26, 7  ;;  %v6250_v26 = vpack.i.bf16 %v9732_v25, %v6226_v37  ;;  %v6260_v61 = vsel %vm397_vm3, %v9734_v31, %v323_v10  ;;  %v326_v8 = vsel %vm298_vm0, %v9737_v2, %v9736_v16  ;;  %v9748_v10 = vld [vmem:[#allocation19_spill] sm:$0xff]  ;;  %v9750_v16 = vld [vmem:[#allocation20_spill] sm:$0xff] }
  0x53   : > { %9735 = vst [vmem:[#allocation14_spill] sm:$0xff] %v6260_v61  ;;  %v6284_v46 = vpack.i.bf16 %v9743_v45, %v6260_v61  ;;  %v9746_v7 = vrot.slane %v5654_v49, 7  ;;  %v9747_v24 = vrot.slane %v5677_v54, 7  ;;  %v9749_v31 = vrot.slane %v9748_v10, 7  ;;  %v9753_v49 = vld [vmem:[#allocation39_spill] sm:$0xff] }
  0x54   : > { %v324_v1 = vsel %vm298_vm0, %v9728_v6, %v9727_v38  ;;  %v6289_v6 = vsel %vm397_vm3, %v6024_v36, %v326_v8  ;;  %v9751_v2 = vrot.slane %v9750_v16, 7 }
  0x55   : > { %4335 = vrot.lane.b32.xlu1 %v6177_v63, %s5451_s26  ;;  %v6255_v33 = vsel %vm397_vm3, %v5964_v41, %v324_v1  ;;  %v325_v41 = vsel %vm298_vm0, %v9741_v58, %v9739_v22  ;;  %9744 = vst [vmem:[#allocation31_spill] sm:$0xff] %v6289_v6  ;;  %v328_v39 = vsel %vm298_vm0, %v9747_v24, %v9746_v7  ;;  %v9755_v22 = vld [vmem:[#allocation46_spill] sm:$0xff]  ;;  %v9757_v58 = vld [vmem:[#allocation25_spill] sm:$0xff] }
  0x56   : > { %4330 = vrot.lane.b32.xlu0 %v6182_v13, %s5451_s26  ;;  %9733 = vst [vmem:[#allocation10_spill] sm:$0xff] %v6255_v33  ;;  %v6278_v38 = vpack.i.bf16 %v9742_v19, %v6255_v33  ;;  %v6294_v1 = vsel %vm397_vm3, %v5954_v3, %v325_v41  ;;  %v327_v36 = vsel %vm298_vm0, %v9751_v2, %v9749_v31  ;;  %v9752_v3 = vld [vmem:[#allocation44_spill] sm:$0xff]  ;;  %v9758_v41 = vrot.slane %v9757_v58, 7  ;;  %v9759_v7 = vld [vmem:[#allocation26_spill] sm:$0xff] }
  0x57   : > { %9745 = vst [vmem:[#allocation37_spill] sm:$0xff] %v6294_v1  ;;  %v6312_v8 = vpack.i.bf16 %v9752_v3, %v6289_v6  ;;  %v6318_v54 = vpack.i.bf16 %v9753_v49, %v6294_v1  ;;  %v6322_v32 = vsel %vm397_vm3, %v377_v4, %v328_v39  ;;  %v6327_v17 = vsel %vm397_vm3, %v9755_v22, %v327_v36  ;;  %v9761_v4 = vld [vmem:[#allocation43_spill] sm:$0xff]  ;;  %v9764_v36 = vld [vmem:[#allocation5_spill] sm:$0xff]  ;;  %v9765_v22 = vld [vmem:[#allocation4_spill] sm:$0xff] }
  0x58   : > { %9754 = vst [vmem:[#allocation17_spill] sm:$0xff] %v6322_v32  ;;  %9756 = vst [vmem:[#allocation18_spill] sm:$0xff] %v6327_v17  ;;  %v9760_v24 = vrot.slane %v9759_v7, 7  ;;  %v6339_v31 = vpack.i.bf16 %v6055_v11, %v6322_v32  ;;  %v6345_v39 = vpack.i.bf16 %v9761_v4, %v6327_v17  ;;  %v9766_v58 = vld [vmem:[#allocation2_spill] sm:$0xff]  ;;  %v9774_v17 = vld [vmem:[#allocation27_spill] sm:$0xff] }
  0x59   : > { %4345 = vrot.lane.b32.xlu1 %v6210_v35, %s5451_s26  ;;  %v5399_v7 = vld [vmem:[%s9409_s1] sm:$0xff]   ;;  %v5401_v4 = vld [vmem:[%s9409_s1 + $0x10] ss:$0 sps:$4 sm:$0x33]   ;;  %v9797_v49 = vld [vmem:[#allocation41_spill] sm:$0xff] }
  0x5a   : > { %4340 = vrot.lane.b32.xlu0 %v6216_v20, %s5451_s26  ;;  %v329_v10 = vsel %vm298_vm0, %v9760_v24, %v9758_v41  ;;  %v9767_v41 = vld [vmem:[#allocation6_spill] sm:$0xff]  ;;  %v9768_v24 = vld [vmem:[#allocation8_spill] sm:$0xff]  ;;  %4075 = vmatprep.subr.bf16.mxu0 %v5399_v7 }
  0x5b   : > { %v6350_v16 = vsel %vm397_vm3, %v6068_v40, %v329_v10  ;;  %v9763_v40 = vld [vmem:[#allocation3_spill] sm:$0xff]  ;;  %4076 = vmatpush3.bf16.msra.mxu0 %v5399_v7  ;;  %v9775_v6 = vld [vmem:[#allocation30_spill] sm:$0xff]  ;;  %v9794_v19 = vld [vmem:[#allocation16_spill] sm:$0xff] }
  0x5c   : > { %9762 = vst [vmem:[#allocation19_spill] sm:$0xff] %v6350_v16  ;;  %v6358_v2 = vpack.i.bf16 %v6037_v48, %v6350_v16  ;;  %v9769_v10 = vld [vmem:[#allocation11_spill] sm:$0xff]  ;;  %v9771_v16 = vrot.slane %v6005_v23, 1  ;;  %v9786_v3 = vld [vmem:[#allocation38_spill] sm:$0xff] }
  0x5d   : > { %4355 = vrot.lane.b32.xlu1 %v6244_v57, %s5451_s26  ;;  %v9772_v48 = vld [vmem:[#allocation47_spill] sm:$0xff] }
  0x5e   : > { %4350 = vrot.lane.b32.xlu0 %v6250_v26, %s5451_s26  ;;  %v9773_v32 = vrot.slane %v9772_v48, 1  ;;  %v6628_v61 = vpack.i.bf16 %v9772_v48, %v6005_v23  ;;  %v9816_v48 = vld [vmem:[#allocation28_spill] sm:$0xff] }
  0x60   : > { %v395_v11 = vsel %vm363_vm1, %v9773_v32, %v9771_v16  ;;  %v1655_v32 = vsel %vm1653_vm4, %v5401_v4, 0 }
  0x61   : > { %4365 = vrot.lane.b32.xlu1 %v6278_v38, %s5451_s26  ;;  %v6395_v7 = vsel %vm436_vm2, %v6097_v55, %v395_v11 }
  0x62   : > { %4360 = vrot.lane.b32.xlu0 %v6284_v46, %s5451_s26  ;;  %v6635_v45 = vpack.i.bf16 %v6395_v7, %v6079_v34 }
  0x65   : > { %4375 = vrot.lane.b32.xlu1 %v6312_v8, %s5451_s26 }
  0x66   : > { %4370 = vrot.lane.b32.xlu0 %v6318_v54, %s5451_s26 }
  0x69   : > { %4385 = vrot.lane.b32.xlu1 %v6339_v31, %s5451_s26 }
  0x6a   : > { %4380 = vrot.lane.b32.xlu0 %v6345_v39, %s5451_s26 }
  0x6d   : > { %4395 = vrot.lane.b32.xlu1 %v6108_v9, %s5451_s26 }
  0x6e   : > { %4390 = vrot.lane.b32.xlu0 %v6358_v2, %s5451_s26 }
  0x71   : > { %4405 = vrot.lane.b32.xlu1 %v9763_v40, %s5452_s27 }
  0x72   : > { %4400 = vrot.lane.b32.xlu0 %v9764_v36, %s5452_s27  ;;  %v5400_v36 = vld [vmem:[%s9409_s1 + $0x8] sm:$0xff]  }
  0x73   : > { %4077 = vmatprep.subr.bf16.mxu0 %v5400_v36 }
  0x74   : > { %4078 = vmatpush3.bf16.msra.mxu0 %v5400_v36 }
  0x75   : > { %4415 = vrot.lane.b32.xlu1 %v9765_v22, %s5452_s27  ;;  %4151 = vmatprep.subr.msk.bf16.mxu0 %vm1653_vm4, %v5401_v4 }
  0x76   : > { %4410 = vrot.lane.b32.xlu0 %v9766_v58, %s5452_s27 }
  0x78   : > { %4080 = vmatpush3.bf16.msra.mxu0 %v1655_v32 }
  0x79   : > { %4425 = vrot.lane.b32.xlu1 %v9767_v41, %s5452_s27 }
  0x7a   : > { %4420 = vrot.lane.b32.xlu0 %v9768_v24, %s5452_s27 }
  0x7d   : > { %4435 = vrot.lane.b32.xlu1 %v9769_v10, %s5452_s27 }
  0x7e   : > { %4430 = vrot.lane.b32.xlu0 %v9770_v47, %s5452_s27 }
  0x81   : > { %4445 = vrot.lane.b32.xlu1 %v9774_v17, %s5453_s7 }
  0x82   : > { %4440 = vrot.lane.b32.xlu0 %v9775_v6, %s5453_s7 }
  0x85   : > { %4455 = vrot.lane.b32.xlu1 %v6182_v13, %s5454_s10  ;;  %v9776_v13 = vld [vmem:[#allocation29_spill] sm:$0xff] }
  0x86   : > { %4450 = vrot.lane.b32.xlu0 %v6145_v5, %s5454_s10 }
  0x87   : > { %v6410_v11 = vpop.permute.xlu1 %4180 }
  0x88   : > { %v6412_v55 = vpop.permute.xlu0 %4170 }
  0x89   : > { %4465 = vrot.lane.b32.xlu1 %v9766_v58, %s5455_s11  ;;  %v9777_v58 = vld [vmem:[#allocation35_spill] sm:$0xff] }
  0x8a   : > { %4460 = vrot.lane.b32.xlu0 %v9763_v40, %s5455_s11 }
  0x8b   : > { %v6418_v6 = vpop.permute.xlu1 %4185 }
  0x8c   : > { %v6420_v4 = vpop.permute.xlu0 %4175 }
  0x8d   : > { %4475 = vrot.lane.b32.xlu1 %v9776_v13, %s5456_s12 }
  0x8e   : > { %4470 = vrot.lane.b32.xlu0 %v9774_v17, %s5456_s12 }
  0x8f   : > { %v6426_v5 = vpop.permute.xlu1 %4195 }
  0x90   : > { %v6428_v16 = vpop.permute.xlu0 %4190 }
  0x91   : > { %4485 = vrot.lane.b32.xlu1 %v9777_v58, %s5453_s7 }
  0x92   : > { %4480 = vrot.lane.b32.xlu0 %v9776_v13, %s5453_s7 }
  0x93   : > { %v6434_v40 = vpop.permute.xlu1 %4205 }
  0x94   : > { %9778 = vst [vmem:[#allocation20_spill] sm:$0xff] %v6434_v40  ;;  %v6436_v36 = vpop.permute.xlu0 %4200 }
  0x95   : > { %4495 = vrot.lane.b32.xlu1 %v6216_v20, %s5454_s10 }
  0x96   : > { %4490 = vrot.lane.b32.xlu0 %v6177_v63, %s5454_s10 }
  0x97   : > { %v6442_v17 = vpop.permute.xlu1 %4215 }
  0x98   : > { %9779 = vst [vmem:[#allocation46_spill] sm:$0xff] %v6442_v17  ;;  %v6444_v32 = vpop.permute.xlu0 %4210  ;;  %v9802_v17 = vld [vmem:[#allocation45_spill] sm:$0xff] }
  0x99   : > { %9780 = vst [vmem:[#allocation25_spill] sm:$0xff] %v6444_v32  ;;  %4505 = vrot.lane.b32.xlu1 %v9768_v24, %s5455_s11 }
  0x9a   : > { %4500 = vrot.lane.b32.xlu0 %v9765_v22, %s5455_s11 }
  0x9b   : > { %v6450_v13 = vpop.permute.xlu1 %4225 }
  0x9c   : > { %9781 = vst [vmem:[#allocation26_spill] sm:$0xff] %v6450_v13  ;;  %v6452_v28 = vpop.permute.xlu0 %4220  ;;  %v9789_v13 = vld [vmem:[#allocation42_spill] sm:$0xff] }
  0x9d   : > { %9782 = vst [vmem:[#allocation3_spill] sm:$0xff] %v6452_v28  ;;  %4515 = vrot.lane.b32.xlu1 %v9783_v18, %s5456_s12  ;;  %v9805_v28 = vld [vmem:[#allocation21_spill] sm:$0xff] }
  0x9e   : > { %4510 = vrot.lane.b32.xlu0 %v9777_v58, %s5456_s12 }
  0x9f   : > { %v6458_v63 = vpop.permute.xlu1 %4235 }
  0xa0   : > { %9784 = vst [vmem:[#allocation5_spill] sm:$0xff] %v6458_v63  ;;  %v6460_v20 = vpop.permute.xlu0 %4230 }
  0xa1   : > { %9785 = vst [vmem:[#allocation4_spill] sm:$0xff] %v6460_v20  ;;  %4525 = vrot.lane.b32.xlu1 %v9786_v3, %s5453_s7 }
  0xa2   : > { %4520 = vrot.lane.b32.xlu0 %v9783_v18, %s5453_s7 }
  0xa3   : > { %v6466_v22 = vpop.permute.xlu1 %4245 }
  0xa4   : > { %v6468_v24 = vpop.permute.xlu0 %4240 }
  0xa5   : > { %9787 = vst [vmem:[#allocation2_spill] sm:$0xff] %v6468_v24  ;;  %4535 = vrot.lane.b32.xlu1 %v6250_v26, %s5454_s10  ;;  %v9788_v24 = vld [vmem:[#allocation36_spill] sm:$0xff] }
  0xa6   : > { %4530 = vrot.lane.b32.xlu0 %v6210_v35, %s5454_s10 }
  0xa7   : > { %v6474_v58 = vpop.permute.xlu1 %4255 }
  0xa8   : > { %v6476_v63 = vpop.permute.xlu0 %4250 }
  0xa9   : > { %4545 = vrot.lane.b32.xlu1 %v9770_v47, %s5455_s11 }
  0xaa   : > { %4540 = vrot.lane.b32.xlu0 %v9767_v41, %s5455_s11 }
  0xab   : > { %v6482_v18 = vpop.permute.xlu1 %4265 }
  0xac   : > { %v6484_v20 = vpop.permute.xlu0 %4260 }
  0xad   : > { %4555 = vrot.lane.b32.xlu1 %v9788_v24, %s5456_s12 }
  0xae   : > { %4550 = vrot.lane.b32.xlu0 %v9786_v3, %s5456_s12 }
  0xaf   : > { %v6490_v35 = vpop.permute.xlu1 %4275 }
  0xb0   : > { %v6492_v26 = vpop.permute.xlu0 %4270 }
  0xb1   : > { %4565 = vrot.lane.b32.xlu1 %v9789_v13, %s5453_s7 }
  0xb2   : > { %4560 = vrot.lane.b32.xlu0 %v9788_v24, %s5453_s7 }
  0xb3   : > { %v6498_v47 = vpop.permute.xlu1 %4285 }
  0xb4   : > { %9790 = vst [vmem:[#allocation6_spill] sm:$0xff] %v6498_v47  ;;  %v6500_v41 = vpop.permute.xlu0 %4280  ;;  %v4253_v47 = vunpack.i.h.bf16 %v6476_v63 }
  0xb5   : > { %9791 = vst [vmem:[#allocation8_spill] sm:$0xff] %v6500_v41  ;;  %4575 = vrot.lane.b32.xlu1 %v6284_v46, %s5454_s10  ;;  %v4247_v41 = vunpack.i.l.bf16 %v6466_v22 }
  0xb6   : > { %4570 = vrot.lane.b32.xlu0 %v6244_v57, %s5454_s10 }
  0xb7   : > { %v6506_v3 = vpop.permute.xlu1 %4295 }
  0xb8   : > { %9792 = vst [vmem:[#allocation11_spill] sm:$0xff] %v6506_v3  ;;  %v6508_v33 = vpop.permute.xlu0 %4290 }
  0xb9   : > { %9793 = vst [vmem:[#allocation13_spill] sm:$0xff] %v6508_v33  ;;  %4585 = vrot.lane.b32.xlu1 %v9794_v19, %s5455_s11  ;;  %v9800_v33 = vld [vmem:[#allocation15_spill] sm:$0xff] }
  0xba   : > { %4580 = vrot.lane.b32.xlu0 %v9769_v10, %s5455_s11 }
  0xbb   : > { %v6514_v24 = vpop.permute.xlu1 %4305 }
  0xbc   : > { %9795 = vst [vmem:[#allocation47_spill] sm:$0xff] %v6514_v24  ;;  %v6516_v1 = vpop.permute.xlu0 %4300 }
  0xbd   : > { %9796 = vst [vmem:[#allocation27_spill] sm:$0xff] %v6516_v1  ;;  %4595 = vrot.lane.b32.xlu1 %v9797_v49, %s5456_s12  ;;  %v9801_v1 = vld [vmem:[#allocation22_spill] sm:$0xff] }
  0xbe   : > { %4590 = vrot.lane.b32.xlu0 %v9789_v13, %s5456_s12 }
  0xbf   : > { %v6522_v57 = vpop.permute.xlu1 %4315 }
  0xc0   : > { %9798 = vst [vmem:[#allocation30_spill] sm:$0xff] %v6522_v57  ;;  %v6524_v46 = vpop.permute.xlu0 %4310 }
  0xc1   : > { %9799 = vst [vmem:[#allocation29_spill] sm:$0xff] %v6524_v46  ;;  %4605 = vrot.lane.b32.xlu1 %v9800_v33, %s5452_s27 }
  0xc2   : > { %4600 = vrot.lane.b32.xlu0 %v9794_v19, %s5452_s27 }
  0xc3   : > { %v6530_v10 = vpop.permute.xlu1 %4325 }
  0xc4   : > { %v6532_v24 = vpop.permute.xlu0 %4320 }
  0xc5   : > { %4615 = vrot.lane.b32.xlu1 %v6017_v27, %s5453_s7  ;;  %v4323_v32 = vunpack.i.h.bf16 %v6532_v24 }
  0xc6   : > { %4610 = vrot.lane.b32.xlu0 %v9797_v49, %s5453_s7 }
  0xc7   : > { %v6538_v13 = vpop.permute.xlu1 %4335 }
  0xc8   : > { %v6540_v57 = vpop.permute.xlu0 %4330 }
  0xc9   : > { %4625 = vrot.lane.b32.xlu1 %v6318_v54, %s5454_s10 }
  0xca   : > { %4620 = vrot.lane.b32.xlu0 %v6278_v38, %s5454_s10 }
  0xcb   : > { %v6546_v19 = vpop.permute.xlu1 %4345 }
  0xcc   : > { %v6548_v46 = vpop.permute.xlu0 %4340 }
  0xcd   : > { %4635 = vrot.lane.b32.xlu1 %v9801_v1, %s5455_s11 }
  0xce   : > { %4630 = vrot.lane.b32.xlu0 %v9800_v33, %s5455_s11 }
  0xcf   : > { %v6554_v49 = vpop.permute.xlu1 %4355 }
  0xd0   : > { %v6556_v3 = vpop.permute.xlu0 %4350 }
  0xd1   : > { %4645 = vrot.lane.b32.xlu1 %v9802_v17, %s5456_s12 }
  0xd2   : > { %4640 = vrot.lane.b32.xlu0 %v6017_v27, %s5456_s12 }
  0xd3   : > { %v6562_v38 = vpop.permute.xlu1 %4365 }
  0xd4   : > { %9803 = vst [vmem:[#allocation35_spill] sm:$0xff] %v6562_v38  ;;  %v6564_v54 = vpop.permute.xlu0 %4360  ;;  %v4178_v38 = vunpack.i.h.bf16 %v6420_v4 }
  0xd5   : > { %9804 = vst [vmem:[#allocation34_spill] sm:$0xff] %v6564_v54  ;;  %4655 = vrot.lane.b32.xlu1 %v9805_v28, %s5452_s27  ;;  %v4173_v54 = vunpack.i.h.bf16 %v6412_v55 }
  0xd6   : > { %4650 = vrot.lane.b32.xlu0 %v9801_v1, %s5452_s27 }
  0xd7   : > { %v6570_v33 = vpop.permute.xlu1 %4375  ;;  %v1309_v7 = vsel %vm1307_vm5, %v5662_v50, %v4173_v54  ;;  %v1311_v50 = vsel %vm1307_vm5, %v5701_v59, %v4178_v38 }
  0xd8   : > { %9806 = vst [vmem:[#allocation38_spill] sm:$0xff] %v6570_v33  ;;  %v6572_v21 = vpop.permute.xlu0 %4370 }
  0xd9   : > { %9807 = vst [vmem:[#allocation36_spill] sm:$0xff] %v6572_v21  ;;  %4665 = vrot.lane.b32.xlu1 %v6064_v43, %s5453_s7  ;;  %v9812_v21 = vld [vmem:[#allocation24_spill] sm:$0xff] }
  0xda   : > { %4660 = vrot.lane.b32.xlu0 %v9802_v17, %s5453_s7 }
  0xdb   : > { %v6578_v27 = vpop.permute.xlu1 %4385 }
  0xdc   : > { %9808 = vst [vmem:[#allocation42_spill] sm:$0xff] %v6578_v27  ;;  %v6580_v29 = vpop.permute.xlu0 %4380 }
  0xdd   : > { %9809 = vst [vmem:[#allocation16_spill] sm:$0xff] %v6580_v29  ;;  %4675 = vrot.lane.b32.xlu1 %v6345_v39, %s5454_s10 }
  0xde   : > { %4670 = vrot.lane.b32.xlu0 %v6312_v8, %s5454_s10 }
  0xdf   : > { %v6586_v1 = vpop.permute.xlu1 %4395 }
  0xe0   : > { %9810 = vst [vmem:[#allocation41_spill] sm:$0xff] %v6586_v1  ;;  %v6588_v33 = vpop.permute.xlu0 %4390 }
  0xe1   : > { %9811 = vst [vmem:[#allocation15_spill] sm:$0xff] %v6588_v33  ;;  %4685 = vrot.lane.b32.xlu1 %v9812_v21, %s5455_s11  ;;  %v9813_v33 = vld [vmem:[#allocation23_spill] sm:$0xff] }
  0xe2   : > { %4680 = vrot.lane.b32.xlu0 %v9805_v28, %s5455_s11 }
  0xe3   : > { %v6594_v17 = vpop.permute.xlu1 %4405 }
  0xe4   : > { %v6596_v27 = vpop.permute.xlu0 %4400 }
  0xe5   : > { %4695 = vrot.lane.b32.xlu1 %v6047_v30, %s5456_s12 }
  0xe6   : > { %4690 = vrot.lane.b32.xlu0 %v6064_v43, %s5456_s12 }
  0xe7   : > { %v6602_v8 = vpop.permute.xlu1 %4415 }
  0xe8   : > { %v6604_v39 = vpop.permute.xlu0 %4410 }
  0xe9   : > { %4705 = vrot.lane.b32.xlu1 %v9813_v33, %s5452_s27 }
  0xea   : > { %4700 = vrot.lane.b32.xlu0 %v9812_v21, %s5452_s27  ;;  %v4172_v21 = vunpack.i.l.bf16 %v6412_v55  ;;  %v4248_v55 = vunpack.i.h.bf16 %v6466_v22  ;;  %v4327_v22 = vunpack.i.l.bf16 %v6530_v10 }
  0xeb   : > { %v6610_v28 = vpop.permute.xlu1 %4425 }
  0xec   : > { %v6612_v1 = vpop.permute.xlu0 %4420  ;;  %v1308_v34 = vsel %vm1307_vm5, %v6118_v12, %v4172_v21  ;;  %v6662_v12 = vsel %vm1338_vm6, %v1309_v7, %v4248_v55  ;;  %v1342_v21 = vsel %vm1338_vm6, %v1311_v50, %v4253_v47  ;;  %v4402_v55 = vunpack.i.l.bf16 %v6596_v27 }
  0xed   : > { %4715 = vrot.lane.b32.xlu1 %v6133_v42, %s5453_s7  ;;  %v1371_v47 = vsel %vm1369_vm7, %v6662_v12, %v4323_v32 }
  0xee   : > { %4710 = vrot.lane.b32.xlu0 %v6047_v30, %s5453_s7  ;;  %v4177_v30 = vunpack.i.l.bf16 %v6420_v4  ;;  %v4328_v4 = vunpack.i.h.bf16 %v6530_v10  ;;  %v6665_v10 = vsel %vm1338_vm6, %v1308_v34, %v4247_v41  ;;  %v4403_v41 = vunpack.i.h.bf16 %v6596_v27 }
  0xef   : > { %v6618_v43 = vpop.permute.xlu1 %4435 }
  0xf0   : > { %9814 = vst [vmem:[#allocation22_spill] sm:$0xff] %v6618_v43  ;;  %v6620_v29 = vpop.permute.xlu0 %4430  ;;  %v1373_v38 = vsel %vm1369_vm7, %v1342_v21, %v4328_v4 }
  0xf1   : > { %9815 = vst [vmem:[#allocation45_spill] sm:$0xff] %v6620_v29  ;;  %4725 = vrot.lane.b32.xlu1 %v6358_v2, %s5454_s10  ;;  %v4322_v29 = vunpack.i.l.bf16 %v6532_v24 }
  0xf2   : > { %4720 = vrot.lane.b32.xlu0 %v6339_v31, %s5454_s10  ;;  %v4252_v31 = vunpack.i.l.bf16 %v6476_v63  ;;  %v1310_v63 = vsel %vm1307_vm5, %v6123_v51, %v4177_v30  ;;  %v4407_v30 = vunpack.i.l.bf16 %v6594_v17 }
  0xf3   : > { %v4446_v2 = vpop.permute.xlu1 %4445 }
  0xf4   : > { %v4441_v40 = vpop.permute.xlu0 %4440  ;;  %v1341_v24 = vsel %vm1338_vm6, %v1310_v63, %v4252_v31  ;;  %v1370_v31 = vsel %vm1369_vm7, %v6665_v10, %v4322_v29  ;;  %v4448_v34 = vunpack.i.h.bf16 %v4446_v2 }
  0xf5   : > { %4735 = vrot.lane.b32.xlu1 %v9816_v48, %s5455_s11  ;;  %v1372_v59 = vsel %vm1369_vm7, %v1341_v24, %v4327_v22  ;;  %v4443_v7 = vunpack.i.h.bf16 %v4441_v40  ;;  %v4442_v4 = vunpack.i.l.bf16 %v4441_v40  ;;  %v1403_v29 = vsel %vm1402_vm8, %v1370_v31, %v4402_v55 }
  0xf6   : > { %4730 = vrot.lane.b32.xlu0 %v9813_v33, %s5455_s11  ;;  %v4408_v33 = vunpack.i.h.bf16 %v6594_v17  ;;  %v4447_v17 = vunpack.i.l.bf16 %v4446_v2  ;;  %v1405_v27 = vsel %vm1402_vm8, %v1372_v59, %v4407_v30  ;;  %v1404_v2 = vsel %vm1402_vm8, %v1371_v47, %v4403_v41 }
  0xf7   : > { %v4456_v51 = vpop.permute.xlu1 %4455 }
  0xf8   : > { %v4451_v23 = vpop.permute.xlu0 %4450  ;;  %v4458_v22 = vunpack.i.h.bf16 %v4456_v51  ;;  %v4457_v63 = vunpack.i.l.bf16 %v4456_v51  ;;  %v1406_v21 = vsel %vm1402_vm8, %v1373_v38, %v4408_v33  ;;  %v1437_v33 = vsel %vm1435_vm9, %v1404_v2, %v4443_v7 }
  0xf9   : > { %4745 = vrot.lane.b32.xlu1 %v6111_v56, %s5456_s12  ;;  %v4453_v24 = vunpack.i.h.bf16 %v4451_v23  ;;  %v4452_v32 = vunpack.i.l.bf16 %v4451_v23  ;;  %v1439_v40 = vsel %vm1435_vm9, %v1406_v21, %v4448_v34  ;;  %v1436_v23 = vsel %vm1435_vm9, %v1403_v29, %v4442_v4 }
  0xfa   : > { %4740 = vrot.lane.b32.xlu0 %v6133_v42, %s5456_s12  ;;  %v1438_v42 = vsel %vm1435_vm9, %v1405_v27, %v4447_v17  ;;  %v1472_v38 = vsel %vm1468_vm10, %v1439_v40, %v4458_v22 }
  0xfb   : > { %v4466_v50 = vpop.permute.xlu1 %4465  ;;  %v1471_v59 = vsel %vm1468_vm10, %v1438_v42, %v4457_v63  ;;  %v1469_v17 = vsel %vm1468_vm10, %v1436_v23, %v4452_v32  ;;  %v1470_v34 = vsel %vm1468_vm10, %v1437_v33, %v4453_v24  ;;  %v9817_v42 = vunpack.i.l.bf16 %v6410_v11 }
  0xfc   : > { %v4461_v54 = vpop.permute.xlu0 %4460  ;;  %v4468_v43 = vunpack.i.h.bf16 %v4466_v50  ;;  %v4467_v14 = vunpack.i.l.bf16 %v4466_v50  ;;  %v4337_v23 = vunpack.i.l.bf16 %v6538_v13  ;;  %v9819_v33 = vunpack.i.h.bf16 %v6418_v6 }
  0xfd   : > { %4755 = vrot.lane.b32.xlu1 %v6628_v61, %s5452_s27  ;;  %v4463_v51 = vunpack.i.h.bf16 %v4461_v54  ;;  %v4462_v30 = vunpack.i.l.bf16 %v4461_v54  ;;  %v1312_v40 = vsel %vm1307_vm5, %v6159_v0, %v9817_v42  ;;  %v4187_v0 = vunpack.i.l.bf16 %v6418_v6 }
  0xfe   : > { %4750 = vrot.lane.b32.xlu0 %v9816_v48, %s5452_s27  ;;  %v1504_v54 = vsel %vm1501_vm11, %v1471_v59, %v4467_v14  ;;  %v1505_v48 = vsel %vm1501_vm11, %v1472_v38, %v4468_v43  ;;  %v4257_v14 = vunpack.i.l.bf16 %v6474_v58  ;;  %v6729_v59 = vsel %vm1307_vm5, %v5793_v44, %v9819_v33 }
  0xff   : > { %v4476_v41 = vpop.permute.xlu1 %4475  ;;  %v1502_v63 = vsel %vm1501_vm11, %v1469_v17, %v4462_v30  ;;  %v1503_v27 = vsel %vm1501_vm11, %v1470_v34, %v4463_v51  ;;  %v4338_v30 = vunpack.i.h.bf16 %v6538_v13  ;;  %v4332_v38 = vunpack.i.l.bf16 %v6540_v57 }
 0x100   : > { %v4478_v55 = vunpack.i.h.bf16 %v4476_v41  ;;  %v4477_v47 = vunpack.i.l.bf16 %v4476_v41  ;;  %v4471_v31 = vpop.permute.xlu0 %4470  ;;  %v9820_v13 = vunpack.i.h.bf16 %v6474_v58  ;;  %v1343_v41 = vsel %vm1338_vm6, %v1312_v40, %v4257_v14 }
 0x101   : > { %v4473_v50 = vunpack.i.h.bf16 %v4471_v31  ;;  %v4472_v4 = vunpack.i.l.bf16 %v4471_v31  ;;  %4765 = vrot.lane.b32.xlu1 %v6635_v45, %s5453_s7  ;;  %v4417_v31 = vunpack.i.l.bf16 %v6602_v8  ;;  %v1376_v34 = vsel %vm1369_vm7, %v1343_v41, %v4337_v23 }
 0x102   : > { %v1537_v7 = vsel %vm1534_vm12, %v1504_v54, %v4477_v47  ;;  %v1538_v22 = vsel %vm1534_vm12, %v1505_v48, %v4478_v55  ;;  %4760 = vrot.lane.b32.xlu0 %v6111_v56, %s5453_s7  ;;  %v9818_v56 = vunpack.i.h.bf16 %v6410_v11  ;;  %v4333_v11 = vunpack.i.h.bf16 %v6540_v57 }
 0x103   : > { %v4486_v21 = vpop.permute.xlu1 %4485  ;;  %v1535_v43 = vsel %vm1534_vm12, %v1502_v63, %v4472_v4  ;;  %v1536_v24 = vsel %vm1534_vm12, %v1503_v27, %v4473_v50  ;;  %v1568_v32 = vpack.c.bf16 %v1538_v22, %v1537_v7  ;;  %v4268_v57 = vunpack.i.h.bf16 %v6482_v18 }
 0x104   : > { %v4481_v29 = vpop.permute.xlu0 %4480  ;;  %v1567_v2 = vpack.c.bf16 %v1536_v24, %v1535_v43  ;;  %v1313_v51 = vsel %vm1307_vm5, %v5672_v52, %v9818_v56  ;;  %v4193_v52 = vunpack.i.h.bf16 %v6428_v16  ;;  %v4267_v47 = vunpack.i.l.bf16 %v6482_v18 }
 0x105   : > { %4775 = vrot.lane.b32.xlu1 %v6628_v61, %s5455_s11  ;;  %v4192_v61 = vunpack.i.l.bf16 %v6428_v16  ;;  %v1344_v44 = vsel %vm1338_vm6, %v1313_v51, %v9820_v13  ;;  %v4413_v54 = vunpack.i.h.bf16 %v6604_v39  ;;  %v4412_v48 = vunpack.i.l.bf16 %v6604_v39 }
 0x106   : > { %4770 = vrot.lane.b32.xlu0 %v6108_v9, %s5454_s10  ;;  %4081 = vmatprep.mubr.msk.bf16.mxu0 %vm1604_vm13, %v1567_v2  ;;  %v4418_v9 = vunpack.i.h.bf16 %v6602_v8  ;;  %v1377_v58 = vsel %vm1369_vm7, %v1344_v44, %v4338_v30  ;;  %v1375_v50 = vsel %vm1369_vm7, %v6662_v12, %v4333_v11  ;;  %v1374_v4 = vsel %vm1369_vm7, %v6665_v10, %v4332_v38 }
 0x107   : > { %4082 = vmatmul.mubr.msk.bf16.vlgmr.msra.gmra.mrb[0].mxu0 %vm1604_vm13, %v1568_v32  ;;  %v4496_v55 = vpop.permute.xlu1 %4495  ;;  %v4488_v7 = vunpack.i.h.bf16 %v4486_v21  ;;  %v4487_v22 = vunpack.i.l.bf16 %v4486_v21  ;;  %v4483_v8 = vunpack.i.h.bf16 %v4481_v29  ;;  %v4482_v63 = vunpack.i.l.bf16 %v4481_v29 }
 0x108   : > { %v4491_v17 = vpop.permute.xlu0 %4490  ;;  %v4498_v27 = vunpack.i.h.bf16 %v4496_v55  ;;  %v4497_v14 = vunpack.i.l.bf16 %v4496_v55  ;;  %v1409_v24 = vsel %vm1402_vm8, %v1376_v34, %v4417_v31  ;;  %v1410_v39 = vsel %vm1402_vm8, %v1377_v58, %v4418_v9 }
 0x109   : > { %v4493_v32 = vunpack.i.h.bf16 %v4491_v17  ;;  %v4492_v2 = vunpack.i.l.bf16 %v4491_v17  ;;  %v1407_v42 = vsel %vm1402_vm8, %v1374_v4, %v4412_v48  ;;  %v1408_v10 = vsel %vm1402_vm8, %v1375_v50, %v4413_v54 }
 0x10a   : > { %4780 = vrot.lane.b32.xlu0 %v6635_v45, %s5456_s12  ;;  %v1442_v45 = vsel %vm1435_vm9, %v1409_v24, %v4487_v22  ;;  %v1443_v29 = vsel %vm1435_vm9, %v1410_v39, %v4488_v7  ;;  %v1440_v30 = vsel %vm1435_vm9, %v1407_v42, %v4482_v63  ;;  %v1441_v23 = vsel %vm1435_vm9, %v1408_v10, %v4483_v8 }
 0x10b   : > { %v4506_v43 = vpop.permute.xlu1 %4505  ;;  %v1475_v33 = vsel %vm1468_vm10, %v1442_v45, %v4497_v14  ;;  %v1476_v11 = vsel %vm1468_vm10, %v1443_v29, %v4498_v27  ;;  %v1473_v13 = vsel %vm1468_vm10, %v1440_v30, %v4492_v2  ;;  %v1474_v44 = vsel %vm1468_vm10, %v1441_v23, %v4493_v32 }
 0x10c   : > { %v4501_v12 = vpop.permute.xlu0 %4500  ;;  %v4508_v21 = vunpack.i.h.bf16 %v4506_v43  ;;  %v4507_v40 = vunpack.i.l.bf16 %v4506_v43  ;;  %v4263_v7 = vunpack.i.h.bf16 %v6484_v20  ;;  %v1314_v14 = vsel %vm1307_vm5, %v6152_v62, %v4187_v0 }
 0x10d   : > { %v4503_v56 = vunpack.i.h.bf16 %v4501_v12  ;;  %v4502_v51 = vunpack.i.l.bf16 %v4501_v12  ;;  %v4198_v43 = vunpack.i.h.bf16 %v6426_v5  ;;  %v4262_v24 = vunpack.i.l.bf16 %v6484_v20 }
 0x10e   : > { %v1508_v31 = vsel %vm1501_vm11, %v1475_v33, %v4507_v40  ;;  %v1509_v17 = vsel %vm1501_vm11, %v1476_v11, %v4508_v21  ;;  %v4197_v2 = vunpack.i.l.bf16 %v6426_v5  ;;  %v1317_v12 = vsel %vm1307_vm5, %v5774_v60, %v4193_v52 }
 0x10f   : > { %v4516_v38 = vpop.permute.xlu1 %4515  ;;  %v1506_v54 = vsel %vm1501_vm11, %v1473_v13, %v4502_v51  ;;  %v1507_v48 = vsel %vm1501_vm11, %v1474_v44, %v4503_v56  ;;  %v4348_v42 = vunpack.i.h.bf16 %v6546_v19  ;;  %v4347_v6 = vunpack.i.l.bf16 %v6546_v19 }
 0x110   : > { %v4518_v41 = vunpack.i.h.bf16 %v4516_v38  ;;  %v4517_v55 = vunpack.i.l.bf16 %v4516_v38  ;;  %v4511_v9 = vpop.permute.xlu0 %4510  ;;  %v1316_v62 = vsel %vm1307_vm5, %v6192_v15, %v4192_v61  ;;  %v4203_v20 = vunpack.i.h.bf16 %v6436_v36 }
 0x111   : > { %v4513_v34 = vunpack.i.h.bf16 %v4511_v9  ;;  %v4512_v58 = vunpack.i.l.bf16 %v4511_v9  ;;  %v4343_v0 = vunpack.i.h.bf16 %v6548_v46  ;;  %v4342_v10 = vunpack.i.l.bf16 %v6548_v46 }
 0x112   : > { %v1541_v50 = vsel %vm1534_vm12, %v1508_v31, %v4517_v55  ;;  %v1542_v4 = vsel %vm1534_vm12, %v1509_v17, %v4518_v41  ;;  %v4202_v21 = vunpack.i.l.bf16 %v6436_v36  ;;  %v1347_v60 = vsel %vm1338_vm6, %v1316_v62, %v4267_v47 }
 0x113   : > { %v1539_v22 = vsel %vm1534_vm12, %v1506_v54, %v4512_v58  ;;  %v1540_v8 = vsel %vm1534_vm12, %v1507_v48, %v4513_v34  ;;  %v4526_v63 = vpop.permute.xlu1 %4525  ;;  %v1570_v27 = vpack.c.bf16 %v1542_v4, %v1541_v50  ;;  %v1348_v16 = vsel %vm1338_vm6, %v1317_v12, %v4268_v57 }
 0x114   : > { %v4521_v39 = vpop.permute.xlu0 %4520  ;;  %v1569_v32 = vpack.c.bf16 %v1540_v8, %v1539_v22  ;;  %v1346_v15 = vsel %vm1338_vm6, %v6729_v59, %v4263_v7  ;;  %v1345_v46 = vsel %vm1338_vm6, %v1314_v14, %v4262_v24  ;;  %v4278_v52 = vunpack.i.h.bf16 %v6490_v35 }
 0x115   : > { %v4428_v61 = vunpack.i.h.bf16 %v6610_v28  ;;  %v4427_v40 = vunpack.i.l.bf16 %v6610_v28  ;;  %v1380_v47 = vsel %vm1369_vm7, %v1347_v60, %v4347_v6  ;;  %v1381_v18 = vsel %vm1369_vm7, %v1348_v16, %v4348_v42 }
 0x116   : > { %4085 = vmatprep.mubr.msk.bf16.mxu0 %vm1604_vm13, %v1569_v32  ;;  %v4423_v57 = vunpack.i.h.bf16 %v6612_v1  ;;  %v4422_v59 = vunpack.i.l.bf16 %v6612_v1  ;;  %v1378_v29 = vsel %vm1369_vm7, %v1345_v46, %v4342_v10  ;;  %v1379_v56 = vsel %vm1369_vm7, %v1346_v15, %v4343_v0 }
 0x117   : > { %4086 = vmatmul.mubr.msk.bf16.gmra.mrb[4].mxu0 %vm1604_vm13, %v1570_v27  ;;  %v4536_v19 = vpop.permute.xlu1 %4535  ;;  %v4528_v51 = vunpack.i.h.bf16 %v4526_v63  ;;  %v4527_v30 = vunpack.i.l.bf16 %v4526_v63  ;;  %v4523_v23 = vunpack.i.h.bf16 %v4521_v39  ;;  %v4522_v33 = vunpack.i.l.bf16 %v4521_v39 }
 0x118   : > { %v4531_v45 = vpop.permute.xlu0 %4530  ;;  %v4538_v11 = vunpack.i.h.bf16 %v4536_v19  ;;  %v4537_v38 = vunpack.i.l.bf16 %v4536_v19  ;;  %v1413_v13 = vsel %vm1402_vm8, %v1380_v47, %v4427_v40  ;;  %v1414_v44 = vsel %vm1402_vm8, %v1381_v18, %v4428_v61 }
 0x119   : > { %v4533_v41 = vunpack.i.h.bf16 %v4531_v45  ;;  %v4532_v55 = vunpack.i.l.bf16 %v4531_v45  ;;  %v1411_v1 = vsel %vm1402_vm8, %v1378_v29, %v4422_v59  ;;  %v1412_v31 = vsel %vm1402_vm8, %v1379_v56, %v4423_v57 }
 0x11a   : > { %v1446_v58 = vsel %vm1435_vm9, %v1413_v13, %v4527_v30  ;;  %v1447_v54 = vsel %vm1435_vm9, %v1414_v44, %v4528_v51  ;;  %v1444_v4 = vsel %vm1435_vm9, %v1411_v1, %v4522_v33  ;;  %v1445_v7 = vsel %vm1435_vm9, %v1412_v31, %v4523_v23  ;;  %v9821_v23 = vld [vmem:[#allocation50_spill] sm:$0xff] }
 0x11b   : > { %v4546_v28 = vpop.permute.xlu1 %4545  ;;  %v1479_v22 = vsel %vm1468_vm10, %v1446_v58, %v4537_v38  ;;  %v1480_v8 = vsel %vm1468_vm10, %v1447_v54, %v4538_v11  ;;  %v1477_v27 = vsel %vm1468_vm10, %v1444_v4, %v4532_v55  ;;  %v1478_v14 = vsel %vm1468_vm10, %v1445_v7, %v4533_v41  ;;  %v9822_v33 = vld [vmem:[#allocation22_spill] sm:$0xff]  ;;  %v9823_v38 = vld [vmem:[#allocation45_spill] sm:$0xff] }
 0x11c   : > { %v4541_v9 = vpop.permute.xlu0 %4540  ;;  %v4548_v17 = vunpack.i.h.bf16 %v4546_v28  ;;  %v4547_v34 = vunpack.i.l.bf16 %v4546_v28  ;;  %v4277_v15 = vunpack.i.l.bf16 %v6490_v35  ;;  %v4273_v45 = vunpack.i.h.bf16 %v6492_v26 }
 0x11d   : > { %v4543_v48 = vunpack.i.h.bf16 %v4541_v9  ;;  %v4542_v50 = vunpack.i.l.bf16 %v4541_v9  ;;  %v4272_v47 = vunpack.i.l.bf16 %v6492_v26  ;;  %v4358_v59 = vunpack.i.h.bf16 %v6554_v49 }
 0x11e   : > { %v1512_v12 = vsel %vm1501_vm11, %v1479_v22, %v4547_v34  ;;  %v1513_v42 = vsel %vm1501_vm11, %v1480_v8, %v4548_v17  ;;  %v4357_v29 = vunpack.i.l.bf16 %v6554_v49  ;;  %v1321_v56 = vsel %vm1307_vm5, %v9732_v25, %v4203_v20 }
 0x11f   : > { %v4556_v63 = vpop.permute.xlu1 %4555  ;;  %v1510_v0 = vsel %vm1501_vm11, %v1477_v27, %v4542_v50  ;;  %v1511_v10 = vsel %vm1501_vm11, %v1478_v14, %v4543_v48  ;;  %v1320_v51 = vsel %vm1307_vm5, %v6226_v37, %v4202_v21  ;;  %v4353_v30 = vunpack.i.h.bf16 %v6556_v3 }
 0x120   : > { %v4558_v24 = vunpack.i.h.bf16 %v4556_v63  ;;  %v4557_v39 = vunpack.i.l.bf16 %v4556_v63  ;;  %v4551_v32 = vpop.permute.xlu0 %4550  ;;  %v4352_v26 = vunpack.i.l.bf16 %v6556_v3  ;;  %v1319_v49 = vsel %vm1307_vm5, %v5821_v53, %v4198_v43 }
 0x121   : > { %v4553_v6 = vunpack.i.h.bf16 %v4551_v32  ;;  %v4552_v62 = vunpack.i.l.bf16 %v4551_v32  ;;  %v1318_v25 = vsel %vm1307_vm5, %v9821_v23, %v4197_v2  ;;  %v1351_v36 = vsel %vm1338_vm6, %v1320_v51, %v4277_v15 }
 0x122   : > { %v1545_v60 = vsel %vm1534_vm12, %v1512_v12, %v4557_v39  ;;  %v1546_v16 = vsel %vm1534_vm12, %v1513_v42, %v4558_v24  ;;  %v1352_v37 = vsel %vm1338_vm6, %v1321_v56, %v4278_v52  ;;  %v1350_v20 = vsel %vm1338_vm6, %v1319_v49, %v4273_v45 }
 0x123   : > { %v1543_v19 = vsel %vm1534_vm12, %v1510_v0, %v4552_v62  ;;  %v1544_v46 = vsel %vm1534_vm12, %v1511_v10, %v4553_v6  ;;  %v4566_v61 = vpop.permute.xlu1 %4565  ;;  %v1572_v40 = vpack.c.bf16 %v1546_v16, %v1545_v60  ;;  %v1349_v21 = vsel %vm1338_vm6, %v1318_v25, %v4272_v47  ;;  %v9825_v25 = vld [vmem:[#allocation20_spill] sm:$0xff] }
 0x124   : > { %v4561_v18 = vpop.permute.xlu0 %4560  ;;  %v1571_v57 = vpack.c.bf16 %v1544_v46, %v1543_v19  ;;  %v4438_v53 = vunpack.i.h.bf16 %v9822_v33  ;;  %v4437_v5 = vunpack.i.l.bf16 %v9822_v33  ;;  %v1384_v2 = vsel %vm1369_vm7, %v1351_v36, %v4357_v29 }
 0x125   : > { %v1385_v11 = vsel %vm1369_vm7, %v1352_v37, %v4358_v59  ;;  %v4433_v35 = vunpack.i.h.bf16 %v9823_v38  ;;  %v4432_v52 = vunpack.i.l.bf16 %v9823_v38  ;;  %v1382_v28 = vsel %vm1369_vm7, %v1349_v21, %v4352_v26  ;;  %v9824_v26 = vld [vmem:[#allocation25_spill] sm:$0xff] }
 0x126   : > { %4089 = vmatprep.mubr.msk.bf16.mxu0 %vm1604_vm13, %v1571_v57  ;;  %v1383_v13 = vsel %vm1369_vm7, %v1350_v20, %v4353_v30  ;;  %v4568_v44 = vunpack.i.h.bf16 %v4566_v61  ;;  %v4567_v41 = vunpack.i.l.bf16 %v4566_v61  ;;  %v4563_v55 = vunpack.i.h.bf16 %v4561_v18 }
 0x127   : > { %4090 = vmatmul.mubr.msk.bf16.gmra.mrb[8].mxu0 %vm1604_vm13, %v1572_v40  ;;  %v4576_v3 = vpop.permute.xlu1 %4575  ;;  %v4562_v9 = vunpack.i.l.bf16 %v4561_v18  ;;  %v1417_v34 = vsel %vm1402_vm8, %v1384_v2, %v4437_v5  ;;  %v1418_v58 = vsel %vm1402_vm8, %v1385_v11, %v4438_v53  ;;  %v1415_v4 = vsel %vm1402_vm8, %v1382_v28, %v4432_v52  ;;  %v9827_v53 = vld [vmem:[#allocation8_spill] sm:$0xff]  ;;  %v9828_v11 = vld [vmem:[#allocation35_spill] sm:$0xff] }
 0x128   : > { %v4571_v43 = vpop.permute.xlu0 %4570  ;;  %v4578_v1 = vunpack.i.h.bf16 %v4576_v3  ;;  %v4577_v31 = vunpack.i.l.bf16 %v4576_v3  ;;  %v1416_v7 = vsel %vm1402_vm8, %v1383_v13, %v4433_v35  ;;  %v1450_v63 = vsel %vm1435_vm9, %v1417_v34, %v4567_v41  ;;  %v9826_v3 = vld [vmem:[#allocation6_spill] sm:$0xff]  ;;  %v9829_v52 = vld [vmem:[#allocation32_spill] sm:$0xff] }
 0x129   : > { %v4573_v54 = vunpack.i.h.bf16 %v4571_v43  ;;  %v4572_v48 = vunpack.i.l.bf16 %v4571_v43  ;;  %v1451_v27 = vsel %vm1435_vm9, %v1418_v58, %v4568_v44  ;;  %v1448_v39 = vsel %vm1435_vm9, %v1415_v4, %v4562_v9  ;;  %v9830_v13 = vld [vmem:[#allocation14_spill] sm:$0xff] }
 0x12a   : > { %v1449_v32 = vsel %vm1435_vm9, %v1416_v7, %v4563_v55  ;;  %v1483_v12 = vsel %vm1468_vm10, %v1450_v63, %v4577_v31  ;;  %v1484_v42 = vsel %vm1468_vm10, %v1451_v27, %v4578_v1  ;;  %v4213_v49 = vunpack.i.h.bf16 %v9824_v26  ;;  %v9831_v41 = vld [vmem:[#allocation34_spill] sm:$0xff]  ;;  %v9832_v1 = vld [vmem:[#allocation33_spill] sm:$0xff] }
 0x12b   : > { %v4586_v17 = vpop.permute.xlu1 %4585  ;;  %v1481_v62 = vsel %vm1468_vm10, %v1448_v39, %v4572_v48  ;;  %v1482_v0 = vsel %vm1468_vm10, %v1449_v32, %v4573_v54  ;;  %v4212_v23 = vunpack.i.l.bf16 %v9824_v26  ;;  %v4208_v36 = vunpack.i.h.bf16 %v9825_v25 }
 0x12c   : > { %v4581_v50 = vpop.permute.xlu0 %4580  ;;  %v4588_v22 = vunpack.i.h.bf16 %v4586_v17  ;;  %v4587_v8 = vunpack.i.l.bf16 %v4586_v17  ;;  %v4207_v37 = vunpack.i.l.bf16 %v9825_v25  ;;  %v4288_v20 = vunpack.i.h.bf16 %v9826_v3  ;;  %v9833_v17 = vld [vmem:[#allocation9_spill] sm:$0xff] }
 0x12d   : > { %v4583_v14 = vunpack.i.h.bf16 %v4581_v50  ;;  %v4582_v24 = vunpack.i.l.bf16 %v4581_v50  ;;  %v4287_v21 = vunpack.i.l.bf16 %v9826_v3  ;;  %v4283_v5 = vunpack.i.h.bf16 %v9827_v53 }
 0x12e   : > { %v1516_v15 = vsel %vm1501_vm11, %v1483_v12, %v4587_v8  ;;  %v1517_v19 = vsel %vm1501_vm11, %v1484_v42, %v4588_v22  ;;  %v4282_v43 = vunpack.i.l.bf16 %v9827_v53  ;;  %v4368_v38 = vunpack.i.h.bf16 %v9828_v11 }
 0x12f   : > { %v4596_v6 = vpop.permute.xlu1 %4595  ;;  %v1514_v40 = vsel %vm1501_vm11, %v1481_v62, %v4582_v24  ;;  %v1515_v45 = vsel %vm1501_vm11, %v1482_v0, %v4583_v14  ;;  %v4367_v35 = vunpack.i.l.bf16 %v9828_v11  ;;  %v1325_v28 = vsel %vm1307_vm5, %v9829_v52, %v4213_v49 }
 0x130   : > { %v4598_v10 = vunpack.i.h.bf16 %v4596_v6  ;;  %v4597_v60 = vunpack.i.l.bf16 %v4596_v6  ;;  %v4591_v16 = vpop.permute.xlu0 %4590  ;;  %v1324_v44 = vsel %vm1307_vm5, %v9830_v13, %v4212_v23  ;;  %v4363_v55 = vunpack.i.h.bf16 %v9831_v41 }
 0x131   : > { %v4593_v46 = vunpack.i.h.bf16 %v4591_v16  ;;  %v4592_v61 = vunpack.i.l.bf16 %v4591_v16  ;;  %v4362_v9 = vunpack.i.l.bf16 %v9831_v41  ;;  %v1323_v31 = vsel %vm1307_vm5, %v9832_v1, %v4208_v36 }
 0x132   : > { %v1549_v47 = vsel %vm1534_vm12, %v1516_v15, %v4597_v60  ;;  %v1550_v18 = vsel %vm1534_vm12, %v1517_v19, %v4598_v10  ;;  %v1322_v34 = vsel %vm1307_vm5, %v9833_v17, %v4207_v37  ;;  %v1355_v58 = vsel %vm1338_vm6, %v1324_v44, %v4287_v21 }
 0x133   : > { %v1547_v57 = vsel %vm1534_vm12, %v1514_v40, %v4592_v61  ;;  %v1548_v59 = vsel %vm1534_vm12, %v1515_v45, %v4593_v46  ;;  %v4606_v29 = vpop.permute.xlu1 %4605  ;;  %v1574_v56 = vpack.c.bf16 %v1550_v18, %v1549_v47  ;;  %v1356_v54 = vsel %vm1338_vm6, %v1325_v28, %v4288_v20 }
 0x134   : > { %v4601_v51 = vpop.permute.xlu0 %4600  ;;  %v1573_v30 = vpack.c.bf16 %v1548_v59, %v1547_v57  ;;  %v1354_v50 = vsel %vm1338_vm6, %v1323_v31, %v4283_v5  ;;  %v1353_v4 = vsel %vm1338_vm6, %v1322_v34, %v4282_v43  ;;  %v4608_v7 = vunpack.i.h.bf16 %v4606_v29  ;;  %v9835_v31 = vld [vmem:[#allocation46_spill] sm:$0xff] }
 0x135   : > { %v4607_v22 = vunpack.i.l.bf16 %v4606_v29  ;;  %v1388_v63 = vsel %vm1369_vm7, %v1355_v58, %v4367_v35  ;;  %v1389_v27 = vsel %vm1369_vm7, %v1356_v54, %v4368_v38  ;;  %v4603_v14 = vunpack.i.h.bf16 %v4601_v51  ;;  %v9836_v58 = vld [vmem:[#allocation11_spill] sm:$0xff] }
 0x136   : > { %4093 = vmatprep.mubr.msk.bf16.mxu0 %vm1604_vm13, %v1573_v30  ;;  %v4602_v24 = vunpack.i.l.bf16 %v4601_v51  ;;  %v1386_v39 = vsel %vm1369_vm7, %v1353_v4, %v4362_v9  ;;  %v1387_v32 = vsel %vm1369_vm7, %v1354_v50, %v4363_v55  ;;  %v1422_v15 = vsel %vm1402_vm8, %v1389_v27, %v4608_v7  ;;  %v9834_v55 = vld [vmem:[#allocation3_spill] sm:$0xff]  ;;  %v9837_v4 = vld [vmem:[#allocation13_spill] sm:$0xff] }
 0x137   : > { %4094 = vmatmul.mubr.msk.bf16.gmra.mrb[12].mxu0 %vm1604_vm13, %v1574_v56  ;;  %v4616_v33 = vpop.permute.xlu1 %4615  ;;  %v1421_v16 = vsel %vm1402_vm8, %v1388_v63, %v4607_v22  ;;  %v1420_v45 = vsel %vm1402_vm8, %v1387_v32, %v4603_v14  ;;  %v4223_v9 = vunpack.i.h.bf16 %v9834_v55  ;;  %v4222_v1 = vunpack.i.l.bf16 %v9834_v55  ;;  %v9838_v63 = vld [vmem:[#allocation38_spill] sm:$0xff]  ;;  %v9840_v32 = vld [vmem:[#allocation37_spill] sm:$0xff] }
 0x138   : > { %v4611_v2 = vpop.permute.xlu0 %4610  ;;  %v4618_v12 = vunpack.i.h.bf16 %v4616_v33  ;;  %v4617_v42 = vunpack.i.l.bf16 %v4616_v33  ;;  %v1419_v40 = vsel %vm1402_vm8, %v1386_v39, %v4602_v24  ;;  %v4218_v17 = vunpack.i.h.bf16 %v9835_v31  ;;  %v9839_v24 = vld [vmem:[#allocation39_spill] sm:$0xff] }
 0x139   : > { %v4613_v6 = vunpack.i.h.bf16 %v4611_v2  ;;  %v4612_v62 = vunpack.i.l.bf16 %v4611_v2  ;;  %v4217_v34 = vunpack.i.l.bf16 %v9835_v31  ;;  %v4298_v54 = vunpack.i.h.bf16 %v9836_v58 }
 0x13a   : > { %v1454_v57 = vsel %vm1435_vm9, %v1421_v16, %v4617_v42  ;;  %v1455_v59 = vsel %vm1435_vm9, %v1422_v15, %v4618_v12  ;;  %v4293_v7 = vunpack.i.h.bf16 %v9837_v4  ;;  %v4292_v22 = vunpack.i.l.bf16 %v9837_v4  ;;  %v9841_v42 = vld [vmem:[#allocation36_spill] sm:$0xff] }
 0x13b   : > { %v4626_v48 = vpop.permute.xlu1 %4625  ;;  %v1452_v51 = vsel %vm1435_vm9, %v1419_v40, %v4612_v62  ;;  %v1453_v30 = vsel %vm1435_vm9, %v1420_v45, %v4613_v6  ;;  %v4378_v27 = vunpack.i.h.bf16 %v9838_v63  ;;  %v4377_v14 = vunpack.i.l.bf16 %v9838_v63 }
 0x13c   : > { %v4621_v8 = vpop.permute.xlu0 %4620  ;;  %v4628_v0 = vunpack.i.h.bf16 %v4626_v48  ;;  %v4627_v10 = vunpack.i.l.bf16 %v4626_v48  ;;  %v4297_v48 = vunpack.i.l.bf16 %v9836_v58  ;;  %v1329_v39 = vsel %vm1307_vm5, %v9839_v24, %v4223_v9 }
 0x13d   : > { %v4623_v19 = vunpack.i.h.bf16 %v4621_v8  ;;  %v4622_v46 = vunpack.i.l.bf16 %v4621_v8  ;;  %v1328_v12 = vsel %vm1307_vm5, %v9840_v32, %v4222_v1  ;;  %v4373_v6 = vunpack.i.h.bf16 %v9841_v42 }
 0x13e   : > { %v1487_v26 = vsel %vm1468_vm10, %v1454_v57, %v4627_v10  ;;  %v1488_v49 = vsel %vm1468_vm10, %v1455_v59, %v4628_v0  ;;  %v4372_v62 = vunpack.i.l.bf16 %v9841_v42  ;;  %v9842_v0 = vld [vmem:[#allocation40_spill] sm:$0xff]  ;;  %v1359_v15 = vsel %vm1338_vm6, %v1328_v12, %v4297_v48  ;;  %v9844_v12 = vld [vmem:[#allocation26_spill] sm:$0xff] }
 0x13f   : > { %v4636_v60 = vpop.permute.xlu1 %4635  ;;  %v1485_v25 = vsel %vm1468_vm10, %v1452_v51, %v4622_v46  ;;  %v1486_v36 = vsel %vm1468_vm10, %v1453_v30, %v4623_v19  ;;  %v1327_v10 = vsel %vm1307_vm5, %v9842_v0, %v4218_v17  ;;  %v1360_v19 = vsel %vm1338_vm6, %v1329_v39, %v4298_v54 }
 0x140   : > { %v4631_v61 = vpop.permute.xlu0 %4630  ;;  %v4638_v47 = vunpack.i.h.bf16 %v4636_v60  ;;  %v4637_v18 = vunpack.i.l.bf16 %v4636_v60  ;;  %v9843_v60 = vld [vmem:[#allocation10_spill] sm:$0xff]  ;;  %v1392_v57 = vsel %vm1369_vm7, %v1359_v15, %v4377_v14  ;;  %v1393_v59 = vsel %vm1369_vm7, %v1360_v19, %v4378_v27  ;;  %v9846_v15 = vld [vmem:[#allocation47_spill] sm:$0xff] }
 0x141   : > { %v4633_v29 = vunpack.i.h.bf16 %v4631_v61  ;;  %v4632_v56 = vunpack.i.l.bf16 %v4631_v61  ;;  %v1326_v16 = vsel %vm1307_vm5, %v9843_v60, %v4217_v34  ;;  %v1358_v61 = vsel %vm1338_vm6, %v1327_v10, %v4293_v7  ;;  %v9845_v10 = vld [vmem:[#allocation4_spill] sm:$0xff] }
 0x142   : > { %v1520_v21 = vsel %vm1501_vm11, %v1487_v26, %v4637_v18  ;;  %v1521_v33 = vsel %vm1501_vm11, %v1488_v49, %v4638_v47  ;;  %v1357_v40 = vsel %vm1338_vm6, %v1326_v16, %v4292_v22  ;;  %v1391_v30 = vsel %vm1369_vm7, %v1358_v61, %v4373_v6  ;;  %v9847_v61 = vld [vmem:[#allocation27_spill] sm:$0xff] }
 0x143   : > { %v4646_v23 = vpop.permute.xlu1 %4645  ;;  %v1518_v43 = vsel %vm1501_vm11, %v1485_v25, %v4632_v56  ;;  %v1519_v2 = vsel %vm1501_vm11, %v1486_v36, %v4633_v29  ;;  %v1390_v51 = vsel %vm1369_vm7, %v1357_v40, %v4372_v62  ;;  %v4228_v42 = vunpack.i.h.bf16 %v9844_v12 }
 0x144   : > { %v4648_v37 = vunpack.i.h.bf16 %v4646_v23  ;;  %v4647_v3 = vunpack.i.l.bf16 %v4646_v23  ;;  %v4641_v20 = vpop.permute.xlu0 %4640  ;;  %v4227_v6 = vunpack.i.l.bf16 %v9844_v12  ;;  %v4233_v60 = vunpack.i.h.bf16 %v9845_v10 }
 0x145   : > { %v4643_v53 = vunpack.i.h.bf16 %v4641_v20  ;;  %v4642_v5 = vunpack.i.l.bf16 %v4641_v20  ;;  %v4232_v16 = vunpack.i.l.bf16 %v9845_v10  ;;  %v4308_v19 = vunpack.i.h.bf16 %v9846_v15 }
 0x146   : > { %v1553_v11 = vsel %vm1534_vm12, %v1520_v21, %v4647_v3  ;;  %v1554_v38 = vsel %vm1534_vm12, %v1521_v33, %v4648_v37  ;;  %v4303_v40 = vunpack.i.h.bf16 %v9847_v61 }
 0x147   : > { %v1551_v35 = vsel %vm1534_vm12, %v1518_v43, %v4642_v5  ;;  %v1552_v52 = vsel %vm1534_vm12, %v1519_v2, %v4643_v53  ;;  %v4656_v28 = vpop.permute.xlu1 %4655  ;;  %v1576_v13 = vpack.c.bf16 %v1554_v38, %v1553_v11 }
 0x148   : > { %v4651_v44 = vpop.permute.xlu0 %4650  ;;  %v1575_v41 = vpack.c.bf16 %v1552_v52, %v1551_v35  ;;  %v4658_v45 = vunpack.i.h.bf16 %v4656_v28  ;;  %v4657_v47 = vunpack.i.l.bf16 %v4656_v28 }
 0x149   : > { %v4653_v29 = vunpack.i.h.bf16 %v4651_v44  ;;  %v4652_v56 = vunpack.i.l.bf16 %v4651_v44 }
 0x14a   : > { %4097 = vmatprep.mubr.msk.bf16.mxu0 %vm1604_vm13, %v1575_v41  ;;  %v1425_v20 = vsel %vm1402_vm8, %v1392_v57, %v4657_v47  ;;  %v1426_v21 = vsel %vm1402_vm8, %v1393_v59, %v4658_v45  ;;  %v9848_v47 = vld [vmem:[#allocation44_spill] sm:$0xff]  ;;  %v9849_v57 = vld [vmem:[#allocation31_spill] sm:$0xff] }
 0x14b   : > { %4098 = vmatmul.mubr.msk.bf16.gmra.mrb[16].mxu0 %vm1604_vm13, %v1576_v13  ;;  %v4666_v50 = vpop.permute.xlu1 %4665  ;;  %v1423_v43 = vsel %vm1402_vm8, %v1390_v51, %v4652_v56  ;;  %v1424_v2 = vsel %vm1402_vm8, %v1391_v30, %v4653_v29  ;;  %v1330_v59 = vsel %vm1307_vm5, %v9849_v57, %v4227_v6  ;;  %v9850_v29 = vld [vmem:[#allocation5_spill] sm:$0xff]  ;;  %v4302_v51 = vunpack.i.l.bf16 %v9847_v61 }
 0x14c   : > { %v4661_v8 = vpop.permute.xlu0 %4660  ;;  %v4668_v26 = vunpack.i.h.bf16 %v4666_v50  ;;  %v4667_v49 = vunpack.i.l.bf16 %v4666_v50  ;;  %v4238_v56 = vunpack.i.h.bf16 %v9850_v29 }
 0x14d   : > { %v4663_v23 = vunpack.i.h.bf16 %v4661_v8  ;;  %v4662_v25 = vunpack.i.l.bf16 %v4661_v8 }
 0x14e   : > { %v1458_v35 = vsel %vm1435_vm9, %v1425_v20, %v4667_v49  ;;  %v1459_v52 = vsel %vm1435_vm9, %v1426_v21, %v4668_v26  ;;  %v4237_v26 = vunpack.i.l.bf16 %v9850_v29  ;;  %v9851_v49 = vld [vmem:[#allocation43_spill] sm:$0xff]  ;;  %v9854_v21 = vld [vmem:[#allocation2_spill] sm:$0xff] }
 0x14f   : > { %v4676_v46 = vpop.permute.xlu1 %4675  ;;  %v1456_v44 = vsel %vm1435_vm9, %v1423_v43, %v4662_v25  ;;  %v1457_v41 = vsel %vm1435_vm9, %v1424_v2, %v4663_v23  ;;  %v1333_v23 = vsel %vm1307_vm5, %v9851_v49, %v4233_v60  ;;  %v9852_v25 = vld [vmem:[#allocation42_spill] sm:$0xff]  ;;  %v4242_v2 = vunpack.i.l.bf16 %v9854_v21 }
 0x150   : > { %v4671_v18 = vpop.permute.xlu0 %4670  ;;  %v4678_v36 = vunpack.i.h.bf16 %v4676_v46  ;;  %v4677_v37 = vunpack.i.l.bf16 %v4676_v46  ;;  %v4307_v46 = vunpack.i.l.bf16 %v9846_v15 }
 0x151   : > { %v4673_v33 = vunpack.i.h.bf16 %v4671_v18  ;;  %v4672_v53 = vunpack.i.l.bf16 %v4671_v18  ;;  %v1331_v18 = vsel %vm1307_vm5, %v9848_v47, %v4228_v42 }
 0x152   : > { %v1491_v55 = vsel %vm1468_vm10, %v1458_v35, %v4677_v37  ;;  %v1492_v9 = vsel %vm1468_vm10, %v1459_v52, %v4678_v36  ;;  %v4388_v36 = vunpack.i.h.bf16 %v9852_v25  ;;  %v4387_v37 = vunpack.i.l.bf16 %v9852_v25 }
 0x153   : > { %v4686_v3 = vpop.permute.xlu1 %4685  ;;  %v1489_v31 = vsel %vm1468_vm10, %v1456_v44, %v4672_v53  ;;  %v1490_v17 = vsel %vm1468_vm10, %v1457_v41, %v4673_v33  ;;  %v4243_v33 = vunpack.i.h.bf16 %v9854_v21  ;;  %v9855_v53 = vld [vmem:[#allocation16_spill] sm:$0xff]  ;;  %v1362_v35 = vsel %vm1338_vm6, %v1331_v18, %v4303_v40 }
 0x154   : > { %v4681_v5 = vpop.permute.xlu0 %4680  ;;  %v4688_v11 = vunpack.i.h.bf16 %v4686_v3  ;;  %v4687_v38 = vunpack.i.l.bf16 %v4686_v3  ;;  %v9853_v3 = vld [vmem:[#allocation18_spill] sm:$0xff]  ;;  %v4382_v43 = vunpack.i.l.bf16 %v9855_v53 }
 0x155   : > { %v4683_v28 = vunpack.i.h.bf16 %v4681_v5  ;;  %v4682_v13 = vunpack.i.l.bf16 %v4681_v5  ;;  %v1332_v20 = vsel %vm1307_vm5, %v9853_v3, %v4232_v16  ;;  %v4383_v5 = vunpack.i.h.bf16 %v9855_v53 }
 0x156   : > { %v1524_v48 = vsel %vm1501_vm11, %v1491_v55, %v4687_v38  ;;  %v1525_v50 = vsel %vm1501_vm11, %v1492_v9, %v4688_v11  ;;  %v1363_v11 = vsel %vm1338_vm6, %v1332_v20, %v4307_v46  ;;  %v1364_v38 = vsel %vm1338_vm6, %v1333_v23, %v4308_v19 }
 0x157   : > { %v4696_v1 = vpop.permute.xlu1 %4695  ;;  %v1522_v22 = vsel %vm1501_vm11, %v1489_v31, %v4682_v13  ;;  %v1523_v8 = vsel %vm1501_vm11, %v1490_v17, %v4683_v28  ;;  %v1361_v28 = vsel %vm1338_vm6, %v1330_v59, %v4302_v51  ;;  %v9856_v13 = vld [vmem:[#allocation30_spill] sm:$0xff]  ;;  %v1397_v31 = vsel %vm1369_vm7, %v1364_v38, %v4388_v36  ;;  %v9857_v38 = vld [vmem:[#allocation41_spill] sm:$0xff] }
 0x158   : > { %v4698_v34 = vunpack.i.h.bf16 %v4696_v1  ;;  %v4697_v58 = vunpack.i.l.bf16 %v4696_v1  ;;  %v4691_v54 = vpop.permute.xlu0 %4690  ;;  %v4318_v44 = vunpack.i.h.bf16 %v9856_v13  ;;  %v1396_v1 = vsel %vm1369_vm7, %v1363_v11, %v4387_v37 }
 0x159   : > { %v4693_v4 = vunpack.i.h.bf16 %v4691_v54  ;;  %v4692_v7 = vunpack.i.l.bf16 %v4691_v54  ;;  %v1395_v54 = vsel %vm1369_vm7, %v1362_v35, %v4383_v5  ;;  %v4317_v20 = vunpack.i.l.bf16 %v9856_v13 }
 0x15a   : > { %v1557_v63 = vsel %vm1534_vm12, %v1524_v48, %v4697_v58  ;;  %v1558_v27 = vsel %vm1534_vm12, %v1525_v50, %v4698_v34  ;;  %v1394_v58 = vsel %vm1369_vm7, %v1361_v28, %v4382_v43  ;;  %v4398_v35 = vunpack.i.h.bf16 %v9857_v38 }
 0x15b   : > { %v1555_v14 = vsel %vm1534_vm12, %v1522_v22, %v4692_v7  ;;  %v1556_v24 = vsel %vm1534_vm12, %v1523_v8, %v4693_v4  ;;  %v4706_v39 = vpop.permute.xlu1 %4705  ;;  %v1578_v32 = vpack.c.bf16 %v1558_v27, %v1557_v63  ;;  %v4397_v28 = vunpack.i.l.bf16 %v9857_v38 }
 0x15c   : > { %v4701_v62 = vpop.permute.xlu0 %4700  ;;  %v1577_v0 = vpack.c.bf16 %v1556_v24, %v1555_v14  ;;  %v4708_v41 = vunpack.i.h.bf16 %v4706_v39  ;;  %v4707_v55 = vunpack.i.l.bf16 %v4706_v39 }
 0x15d   : > { %v4703_v17 = vunpack.i.h.bf16 %v4701_v62  ;;  %v4702_v34 = vunpack.i.l.bf16 %v4701_v62 }
 0x15e   : > { %4101 = vmatprep.mubr.msk.bf16.mxu0 %vm1604_vm13, %v1577_v0  ;;  %v1429_v27 = vsel %vm1402_vm8, %v1396_v1, %v4707_v55  ;;  %v1430_v14 = vsel %vm1402_vm8, %v1397_v31, %v4708_v41  ;;  %v9859_v31 = vld [vmem:[#allocation17_spill] sm:$0xff] }
 0x15f   : > { %4102 = vmatmul.mubr.msk.bf16.gmra.mrb[20].mxu0 %vm1604_vm13, %v1578_v32  ;;  %v4716_v45 = vpop.permute.xlu1 %4715  ;;  %v1427_v12 = vsel %vm1402_vm8, %v1394_v58, %v4702_v34  ;;  %v1428_v42 = vsel %vm1402_vm8, %v1395_v54, %v4703_v17  ;;  %v1334_v17 = vsel %vm1307_vm5, %v9859_v31, %v4237_v26  ;;  %v9860_v54 = vld [vmem:[#allocation48_spill] sm:$0xff] }
 0x160   : > { %v4711_v30 = vpop.permute.xlu0 %4710  ;;  %v4718_v48 = vunpack.i.h.bf16 %v4716_v45  ;;  %v4717_v50 = vunpack.i.l.bf16 %v4716_v45 }
 0x161   : > { %v4713_v4 = vunpack.i.h.bf16 %v4711_v30  ;;  %v4712_v7 = vunpack.i.l.bf16 %v4711_v30 }
 0x162   : > { %v1462_v0 = vsel %vm1435_vm9, %v1429_v27, %v4717_v50  ;;  %v1463_v10 = vsel %vm1435_vm9, %v1430_v14, %v4718_v48  ;;  %v1337_v48 = vsel %vm1307_vm5, %v9860_v54, %v4243_v33  ;;  %v9861_v50 = vld [vmem:[#allocation19_spill] sm:$0xff] }
 0x163   : > { %v7028_v52 = vpop.permute.xlu1 %4725  ;;  %v1460_v15 = vsel %vm1435_vm9, %v1427_v12, %v4712_v7  ;;  %v1461_v19 = vsel %vm1435_vm9, %v1428_v42, %v4713_v4  ;;  %v1336_v4 = vsel %vm1307_vm5, %v9861_v50, %v4242_v2  ;;  %v9862_v7 = vld [vmem:[#allocation29_spill] sm:$0xff]  ;;  %v1368_v26 = vsel %vm1338_vm6, %v1337_v48, %v4318_v44  ;;  %v9863_v14 = vld [vmem:[#allocation15_spill] sm:$0xff] }
 0x164   : > { %v4721_v9 = vpop.permute.xlu0 %4720  ;;  %v4728_v22 = vunpack.i.h.bf16 %v7028_v52  ;;  %v4727_v8 = vunpack.i.l.bf16 %v7028_v52  ;;  %v4313_v27 = vunpack.i.h.bf16 %v9862_v7  ;;  %v1367_v29 = vsel %vm1338_vm6, %v1336_v4, %v4317_v20 }
 0x165   : > { %v4723_v24 = vunpack.i.h.bf16 %v4721_v9  ;;  %v4722_v39 = vunpack.i.l.bf16 %v4721_v9  ;;  %v9858_v9 = vld [vmem:[#allocation49_spill] sm:$0xff]  ;;  %v4392_v33 = vunpack.i.l.bf16 %v9863_v14  ;;  %v1400_v2 = vsel %vm1369_vm7, %v1367_v29, %v4397_v28 }
 0x166   : > { %v1495_v46 = vsel %vm1468_vm10, %v1462_v0, %v4727_v8  ;;  %v1496_v61 = vsel %vm1468_vm10, %v1463_v10, %v4728_v22  ;;  %v1335_v1 = vsel %vm1307_vm5, %v9858_v9, %v4238_v56  ;;  %v4312_v56 = vunpack.i.l.bf16 %v9862_v7 }
 0x167   : > { %v7038_v63 = vpop.permute.xlu1 %4735  ;;  %v1493_v45 = vsel %vm1468_vm10, %v1460_v15, %v4722_v39  ;;  %v1494_v47 = vsel %vm1468_vm10, %v1461_v19, %v4723_v24  ;;  %v4393_v24 = vunpack.i.h.bf16 %v9863_v14  ;;  %v1401_v39 = vsel %vm1369_vm7, %v1368_v26, %v4398_v35 }
 0x168   : > { %v4731_v32 = vpop.permute.xlu0 %4730  ;;  %v4738_v6 = vunpack.i.h.bf16 %v7038_v63  ;;  %v4737_v62 = vunpack.i.l.bf16 %v7038_v63 }
 0x169   : > { %v4733_v60 = vunpack.i.h.bf16 %v4731_v32  ;;  %v4732_v16 = vunpack.i.l.bf16 %v4731_v32 }
 0x16a   : > { %v1528_v51 = vsel %vm1501_vm11, %v1495_v46, %v4737_v62  ;;  %v1529_v30 = vsel %vm1501_vm11, %v1496_v61, %v4738_v6  ;;  %v1366_v46 = vsel %vm1338_vm6, %v1335_v1, %v4313_v27  ;;  %v1365_v61 = vsel %vm1338_vm6, %v1334_v17, %v4312_v56 }
 0x16b   : > { %v7056_v40 = vpop.permute.xlu1 %4745  ;;  %v1526_v25 = vsel %vm1501_vm11, %v1493_v45, %v4732_v16  ;;  %v1527_v36 = vsel %vm1501_vm11, %v1494_v47, %v4733_v60  ;;  %v1398_v47 = vsel %vm1369_vm7, %v1365_v61, %v4392_v33 }
 0x16c   : > { %v4748_v18 = vunpack.i.h.bf16 %v7056_v40  ;;  %v4747_v57 = vunpack.i.l.bf16 %v7056_v40  ;;  %v4741_v59 = vpop.permute.xlu0 %4740 }
 0x16d   : > { %v4743_v49 = vunpack.i.h.bf16 %v4741_v59  ;;  %v4742_v23 = vunpack.i.l.bf16 %v4741_v59  ;;  %v1399_v59 = vsel %vm1369_vm7, %v1366_v46, %v4393_v24 }
 0x16e   : > { %v1561_v37 = vsel %vm1534_vm12, %v1528_v51, %v4747_v57  ;;  %v1562_v3 = vsel %vm1534_vm12, %v1529_v30, %v4748_v18 }
 0x16f   : > { %v1559_v53 = vsel %vm1534_vm12, %v1526_v25, %v4742_v23  ;;  %v1560_v5 = vsel %vm1534_vm12, %v1527_v36, %v4743_v49  ;;  %v4756_v43 = vpop.permute.xlu1 %4755  ;;  %v1580_v11 = vpack.c.bf16 %v1562_v3, %v1561_v37 }
 0x170   : > { %v4751_v41 = vpop.permute.xlu0 %4750  ;;  %v1579_v55 = vpack.c.bf16 %v1560_v5, %v1559_v53  ;;  %v4758_v34 = vunpack.i.h.bf16 %v4756_v43  ;;  %v4757_v58 = vunpack.i.l.bf16 %v4756_v43 }
 0x171   : > { %v4753_v10 = vunpack.i.h.bf16 %v4751_v41  ;;  %v4752_v44 = vunpack.i.l.bf16 %v4751_v41 }
 0x172   : > { %4105 = vmatprep.mubr.msk.bf16.mxu0 %vm1604_vm13, %v1579_v55  ;;  %v1433_v0 = vsel %vm1402_vm8, %v1400_v2, %v4757_v58  ;;  %v1434_v13 = vsel %vm1402_vm8, %v1401_v39, %v4758_v34 }
 0x173   : > { %4106 = vmatmul.mubr.msk.bf16.gmra.mrb[24].mxu0 %vm1604_vm13, %v1580_v11  ;;  %v4766_v21 = vpop.permute.xlu1 %4765  ;;  %v1431_v23 = vsel %vm1402_vm8, %v1398_v47, %v4752_v44  ;;  %v1432_v25 = vsel %vm1402_vm8, %v1399_v59, %v4753_v10 }
 0x174   : > { %v4768_v32 = vunpack.i.h.bf16 %v4766_v21  ;;  %v4767_v12 = vunpack.i.l.bf16 %v4766_v21  ;;  %v4761_v42 = vpop.permute.xlu0 %4760 }
 0x175   : > { %v4763_v15 = vunpack.i.h.bf16 %v4761_v42  ;;  %v4762_v19 = vunpack.i.l.bf16 %v4761_v42 }
 0x176   : > { %v1466_v60 = vsel %vm1435_vm9, %v1433_v0, %v4767_v12  ;;  %v1467_v16 = vsel %vm1435_vm9, %v1434_v13, %v4768_v32 }
 0x177   : > { %v4776_v45 = vpop.permute.xlu1 %4775  ;;  %v1499_v51 = vsel %vm1468_vm10, %v1466_v60, %v4727_v8  ;;  %v1500_v30 = vsel %vm1468_vm10, %v1467_v16, %v4728_v22  ;;  %v1464_v3 = vsel %vm1435_vm9, %v1431_v23, %v4762_v19  ;;  %v1465_v20 = vsel %vm1435_vm9, %v1432_v25, %v4763_v15 }
 0x178   : > { %v4771_v49 = vpop.permute.xlu0 %4770  ;;  %v4778_v53 = vunpack.i.h.bf16 %v4776_v45  ;;  %v4777_v5 = vunpack.i.l.bf16 %v4776_v45  ;;  %v1532_v52 = vsel %vm1501_vm11, %v1499_v51, %v4737_v62  ;;  %v1533_v22 = vsel %vm1501_vm11, %v1500_v30, %v4738_v6 }
 0x179   : > { %v4773_v36 = vunpack.i.h.bf16 %v4771_v49  ;;  %v4772_v37 = vunpack.i.l.bf16 %v4771_v49  ;;  %v1565_v55 = vsel %vm1534_vm12, %v1532_v52, %v4747_v57  ;;  %v1566_v9 = vsel %vm1534_vm12, %v1533_v22, %v4748_v18  ;;  %v7150_v18 = vld [vmem:[%s9410_s2] ss:$0 sm:$0xff] }
 0x17a   : > { %v1582_v1 = vpack.c.bf16 %v1566_v9, %v1565_v55 }
 0x17b   : > { %v1497_v43 = vsel %vm1468_vm10, %v1464_v3, %v4772_v37  ;;  %v1498_v8 = vsel %vm1468_vm10, %v1465_v20, %v4773_v36 }
 0x17c   : > { %v4781_v11 = vpop.permute.xlu0 %4780  ;;  %v1530_v28 = vsel %vm1501_vm11, %v1497_v43, %v4777_v5  ;;  %v1531_v41 = vsel %vm1501_vm11, %v1498_v8, %v4778_v53 }
 0x17d   : > { %v4783_v38 = vunpack.i.h.bf16 %v4781_v11  ;;  %v4782_v35 = vunpack.i.l.bf16 %v4781_v11 }
 0x17f   : > { %v1563_v62 = vsel %vm1534_vm12, %v1530_v28, %v4782_v35  ;;  %v1564_v63 = vsel %vm1534_vm12, %v1531_v41, %v4783_v38 }
 0x180   : > { %v1581_v6 = vpack.c.bf16 %v1564_v63, %v1563_v62 }
 0x182   : > { %4109 = vmatprep.mubr.msk.bf16.mxu0 %vm1604_vm13, %v1581_v6 }
 0x183   : > { %4110 = vmatmul.mubr.msk.bf16.gmra.mrb[28].mxu0 %vm1604_vm13, %v1582_v1 }
 0x1da   : > { %v4083_v31 = vpop.f32.mrb[0].mxu0 }
 0x1db   : > { %v1691_v17 = vpop.f32.mrb[1].mxu0  ;;  %v7161_v27 = vadd.f32 %v4083_v31, %v7150_v18 }
 0x1dc   : > { %v4084_v34 = vpop.f32.mrb[2].mxu0  ;;  %v7156_v4 = vadd.f32 %v7150_v18, %v1691_v17 }
 0x1dd   : > { %v1694_v58 = vpop.f32.mrb[3].mxu0  ;;  %v1890_v2 = vmul.f32 %v7161_v27, %v7161_v27  ;;  %v7174_v32 = vadd.f32 %v4084_v34, %v7150_v18  ;;  %v1821_v10 = vsel %vm1307_vm5, %v7161_v27, 0.0 }
 0x1de   : > { %v7153_v50 = vadd.f32 %v7150_v18, %v1694_v58  ;;  %v1888_v56 = vmul.f32 %v7156_v4, %v7156_v4  ;;  %v1818_v26 = vsel %vm1307_vm5, %v7156_v4, 0.0 }
 0x1df   : > { %v1923_v60 = vsel %vm1307_vm5, %v1890_v2, 0.0  ;;  %v1891_v16 = vmul.f32 %v7174_v32, %v7174_v32  ;;  %v1823_v61 = vsel %vm1307_vm5, %v7174_v32, 0.0 }
 0x1e0   : > { %v1889_v7 = vmul.f32 %v7153_v50, %v7153_v50  ;;  %v1819_v29 = vsel %vm1307_vm5, %v7153_v50, 0.0  ;;  %v1920_v39 = vsel %vm1307_vm5, %v1888_v56, 0.0 }
 0x1e1   : > { %v1820_v33 = vadd.f32 %v1819_v29, %v1818_v26  ;;  %v1925_v59 = vsel %vm1307_vm5, %v1891_v16, 0.0 }
 0x1e2   : > { %v1921_v14 = vsel %vm1307_vm5, %v1889_v7, 0.0 }
 0x1e3   : > { %v1922_v0 = vadd.f32 %v1921_v14, %v1920_v39  ;;  %v1822_v44 = vadd.f32 %v1821_v10, %v1820_v33 }
 0x1e5   : > { %v1924_v46 = vadd.f32 %v1923_v60, %v1922_v0  ;;  %v1824_v47 = vadd.f32 %v1823_v61, %v1822_v44 }
 0x1e7   : > { %v1926_v23 = vadd.f32 %v1925_v59, %v1924_v46 }
 0x1ea   : > { %v4087_v54 = vpop.f32.mrb[4].mxu0 }
 0x1eb   : > { %v1707_v57 = vpop.f32.mrb[5].mxu0  ;;  %v7198_v25 = vadd.f32 %v4087_v54, %v7150_v18 }
 0x1ec   : > { %v4088_v48 = vpop.f32.mrb[6].mxu0  ;;  %v7177_v12 = vadd.f32 %v7150_v18, %v1707_v57 }
 0x1ed   : > { %v1710_v40 = vpop.f32.mrb[7].mxu0  ;;  %v1894_v53 = vmul.f32 %v7198_v25, %v7198_v25  ;;  %v7206_v5 = vadd.f32 %v4088_v48, %v7150_v18  ;;  %v1829_v11 = vsel %vm1307_vm5, %v7198_v25, 0.0 }
 0x1ee   : > { %v1892_v15 = vmul.f32 %v7177_v12, %v7177_v12  ;;  %v7187_v19 = vadd.f32 %v7150_v18, %v1710_v40  ;;  %v1825_v45 = vsel %vm1307_vm5, %v7177_v12, 0.0 }
 0x1ef   : > { %v1826_v49 = vadd.f32 %v1825_v45, %v1824_v47  ;;  %v1931_v41 = vsel %vm1307_vm5, %v1894_v53, 0.0  ;;  %v1895_v55 = vmul.f32 %v7206_v5, %v7206_v5  ;;  %v1831_v6 = vsel %vm1307_vm5, %v7206_v5, 0.0 }
 0x1f0   : > { %v1927_v51 = vsel %vm1307_vm5, %v1892_v15, 0.0  ;;  %v1893_v30 = vmul.f32 %v7187_v19, %v7187_v19  ;;  %v1827_v36 = vsel %vm1307_vm5, %v7187_v19, 0.0 }
 0x1f1   : > { %v1928_v37 = vadd.f32 %v1927_v51, %v1926_v23  ;;  %v1828_v20 = vadd.f32 %v1827_v36, %v1826_v49  ;;  %v1933_v17 = vsel %vm1307_vm5, %v1895_v55, 0.0 }
 0x1f2   : > { %v1929_v3 = vsel %vm1307_vm5, %v1893_v30, 0.0 }
 0x1f3   : > { %v1930_v52 = vadd.f32 %v1929_v3, %v1928_v37  ;;  %v1830_v35 = vadd.f32 %v1829_v11, %v1828_v20 }
 0x1f5   : > { %v1932_v63 = vadd.f32 %v1931_v41, %v1930_v52  ;;  %v1832_v31 = vadd.f32 %v1831_v6, %v1830_v35 }
 0x1f7   : > { %v1934_v57 = vadd.f32 %v1933_v17, %v1932_v63 }
 0x1fa   : > { %v4091_v24 = vpop.f32.mrb[8].mxu0 }
 0x1fb   : > { %v1723_v21 = vpop.f32.mrb[9].mxu0  ;;  %v7230_v48 = vadd.f32 %v4091_v24, %v7150_v18 }
 0x1fc   : > { %v4092_v42 = vpop.f32.mrb[10].mxu0  ;;  %v7209_v43 = vadd.f32 %v7150_v18, %v1723_v21 }
 0x1fd   : > { %v1726_v13 = vpop.f32.mrb[11].mxu0  ;;  %v1898_v26 = vmul.f32 %v7230_v48, %v7230_v48  ;;  %v7238_v14 = vadd.f32 %v4092_v42, %v7150_v18  ;;  %v1837_v24 = vsel %vm1307_vm5, %v7230_v48, 0.0 }
 0x1fe   : > { %v1896_v9 = vmul.f32 %v7209_v43, %v7209_v43  ;;  %v7219_v62 = vadd.f32 %v7150_v18, %v1726_v13  ;;  %v1833_v1 = vsel %vm1307_vm5, %v7209_v43, 0.0 }
 0x1ff   : > { %v1834_v54 = vadd.f32 %v1833_v1, %v1832_v31  ;;  %v1939_v39 = vsel %vm1307_vm5, %v1898_v26, 0.0  ;;  %v1899_v0 = vmul.f32 %v7238_v14, %v7238_v14  ;;  %v1839_v44 = vsel %vm1307_vm5, %v7238_v14, 0.0 }
 0x200   : > { %v1935_v34 = vsel %vm1307_vm5, %v1896_v9, 0.0  ;;  %v1897_v58 = vmul.f32 %v7219_v62, %v7219_v62  ;;  %v1835_v40 = vsel %vm1307_vm5, %v7219_v62, 0.0 }
 0x201   : > { %v1936_v7 = vadd.f32 %v1935_v34, %v1934_v57  ;;  %v1836_v29 = vadd.f32 %v1835_v40, %v1834_v54  ;;  %v1941_v61 = vsel %vm1307_vm5, %v1899_v0, 0.0 }
 0x202   : > { %v1937_v56 = vsel %vm1307_vm5, %v1897_v58, 0.0 }
 0x203   : > { %v1938_v21 = vadd.f32 %v1937_v56, %v1936_v7  ;;  %v1838_v2 = vadd.f32 %v1837_v24, %v1836_v29 }
 0x205   : > { %v1940_v42 = vadd.f32 %v1939_v39, %v1938_v21  ;;  %v1840_v15 = vadd.f32 %v1839_v44, %v1838_v2 }
 0x207   : > { %v1942_v30 = vadd.f32 %v1941_v61, %v1940_v42 }
 0x20a   : > { %v4095_v8 = vpop.f32.mrb[12].mxu0 }
 0x20b   : > { %v1739_v22 = vpop.f32.mrb[13].mxu0  ;;  %v7262_v23 = vadd.f32 %v4095_v8, %v7150_v18 }
 0x20c   : > { %v4096_v38 = vpop.f32.mrb[14].mxu0  ;;  %v7241_v33 = vadd.f32 %v7150_v18, %v1739_v22 }
 0x20d   : > { %v1742_v28 = vpop.f32.mrb[15].mxu0  ;;  %v1902_v53 = vmul.f32 %v7262_v23, %v7262_v23  ;;  %v7270_v52 = vadd.f32 %v4096_v38, %v7150_v18  ;;  %v1845_v8 = vsel %vm1307_vm5, %v7262_v23, 0.0 }
 0x20e   : > { %v1900_v13 = vmul.f32 %v7241_v33, %v7241_v33  ;;  %v7251_v10 = vadd.f32 %v7150_v18, %v1742_v28  ;;  %v1841_v60 = vsel %vm1307_vm5, %v7241_v33, 0.0 }
 0x20f   : > { %v1842_v51 = vadd.f32 %v1841_v60, %v1840_v15  ;;  %v1947_v28 = vsel %vm1307_vm5, %v1902_v53, 0.0  ;;  %v1903_v41 = vmul.f32 %v7270_v52, %v7270_v52  ;;  %v1847_v63 = vsel %vm1307_vm5, %v7270_v52, 0.0 }
 0x210   : > { %v1943_v45 = vsel %vm1307_vm5, %v1900_v13, 0.0  ;;  %v1901_v47 = vmul.f32 %v7251_v10, %v7251_v10  ;;  %v1843_v36 = vsel %vm1307_vm5, %v7251_v10, 0.0 }
 0x211   : > { %v1944_v37 = vadd.f32 %v1943_v45, %v1942_v30  ;;  %v1844_v20 = vadd.f32 %v1843_v36, %v1842_v51  ;;  %v1949_v31 = vsel %vm1307_vm5, %v1903_v41, 0.0 }
 0x212   : > { %v1945_v3 = vsel %vm1307_vm5, %v1901_v47, 0.0 }
 0x213   : > { %v1946_v11 = vadd.f32 %v1945_v3, %v1944_v37  ;;  %v1846_v35 = vadd.f32 %v1845_v8, %v1844_v20 }
 0x215   : > { %v1948_v38 = vadd.f32 %v1947_v28, %v1946_v11  ;;  %v1848_v1 = vadd.f32 %v1847_v63, %v1846_v35 }
 0x217   : > { %v1950_v54 = vadd.f32 %v1949_v31, %v1948_v38 }
 0x21e   : > { %v4099_v16 = vpop.f32.mrb[16].mxu0 }
 0x21f   : > { %v1755_v46 = vpop.f32.mrb[17].mxu0  ;;  %v7294_v57 = vadd.f32 %v4099_v16, %v7150_v18 }
 0x220   : > { %v4100_v59 = vpop.f32.mrb[18].mxu0  ;;  %v7273_v22 = vadd.f32 %v7150_v18, %v1755_v46 }
 0x221   : > { %v1758_v49 = vpop.f32.mrb[19].mxu0  ;;  %v1906_v24 = vmul.f32 %v7294_v57, %v7294_v57  ;;  %v7302_v2 = vadd.f32 %v4100_v59, %v7150_v18  ;;  %v1853_v44 = vsel %vm1307_vm5, %v7294_v57, 0.0 }
 0x222   : > { %v1904_v55 = vmul.f32 %v7273_v22, %v7273_v22  ;;  %v7283_v9 = vadd.f32 %v7150_v18, %v1758_v49  ;;  %v1849_v6 = vsel %vm1307_vm5, %v7273_v22, 0.0 }
 0x223   : > { %v1850_v58 = vadd.f32 %v1849_v6, %v1848_v1  ;;  %v1955_v16 = vsel %vm1307_vm5, %v1906_v24, 0.0  ;;  %v1907_v15 = vmul.f32 %v7302_v2, %v7302_v2  ;;  %v1855_v47 = vsel %vm1307_vm5, %v7302_v2, 0.0 }
 0x224   : > { %v1951_v17 = vsel %vm1307_vm5, %v1904_v55, 0.0  ;;  %v1905_v34 = vmul.f32 %v7283_v9, %v7283_v9  ;;  %v1851_v40 = vsel %vm1307_vm5, %v7283_v9, 0.0 }
 0x225   : > { %v1952_v7 = vadd.f32 %v1951_v17, %v1950_v54  ;;  %v1852_v26 = vadd.f32 %v1851_v40, %v1850_v58  ;;  %v1957_v30 = vsel %vm1307_vm5, %v1907_v15, 0.0 }
 0x226   : > { %v1953_v56 = vsel %vm1307_vm5, %v1905_v34, 0.0 }
 0x227   : > { %v1954_v13 = vadd.f32 %v1953_v56, %v1952_v7  ;;  %v1854_v60 = vadd.f32 %v1853_v44, %v1852_v26 }
 0x229   : > { %v1956_v45 = vadd.f32 %v1955_v16, %v1954_v13  ;;  %v1856_v51 = vadd.f32 %v1855_v47, %v1854_v60 }
 0x22b   : > { %v1958_v3 = vadd.f32 %v1957_v30, %v1956_v45 }
 0x232   : > { %v4103_v29 = vpop.f32.mrb[20].mxu0 }
 0x233   : > { %v1771_v21 = vpop.f32.mrb[21].mxu0  ;;  %v7326_v20 = vadd.f32 %v4103_v29, %v7150_v18 }
 0x234   : > { %v7305_v39 = vadd.f32 %v7150_v18, %v1771_v21  ;;  %v4104_v0 = vpop.f32.mrb[22].mxu0 }
 0x235   : > { %v1774_v42 = vpop.f32.mrb[23].mxu0  ;;  %v7332_v35 = vadd.f32 %v4104_v0, %v7150_v18  ;;  %v1910_v41 = vmul.f32 %v7326_v20, %v7326_v20  ;;  %v1861_v38 = vsel %vm1307_vm5, %v7326_v20, 0.0 }
 0x236   : > { %v1908_v46 = vmul.f32 %v7305_v39, %v7305_v39  ;;  %v7315_v61 = vadd.f32 %v7150_v18, %v1774_v42  ;;  %v1857_v59 = vsel %vm1307_vm5, %v7305_v39, 0.0 }
 0x237   : > { %v1858_v37 = vadd.f32 %v1857_v59, %v1856_v51  ;;  %v1911_v63 = vmul.f32 %v7332_v35, %v7332_v35  ;;  %v1963_v1 = vsel %vm1307_vm5, %v1910_v41, 0.0  ;;  %v1863_v58 = vsel %vm1307_vm5, %v7332_v35, 0.0 }
 0x238   : > { %v1959_v49 = vsel %vm1307_vm5, %v1908_v46, 0.0  ;;  %v1909_v36 = vmul.f32 %v7315_v61, %v7315_v61  ;;  %v1859_v53 = vsel %vm1307_vm5, %v7315_v61, 0.0 }
 0x239   : > { %v1960_v11 = vadd.f32 %v1959_v49, %v1958_v3  ;;  %v1860_v28 = vadd.f32 %v1859_v53, %v1858_v37  ;;  %v1965_v56 = vsel %vm1307_vm5, %v1911_v63, 0.0 }
 0x23a   : > { %v1961_v8 = vsel %vm1307_vm5, %v1909_v36, 0.0 }
 0x23b   : > { %v1962_v55 = vadd.f32 %v1961_v8, %v1960_v11  ;;  %v1862_v6 = vadd.f32 %v1861_v38, %v1860_v28 }
 0x23d   : > { %v1964_v17 = vadd.f32 %v1963_v1, %v1962_v55  ;;  %v1864_v29 = vadd.f32 %v1863_v58, %v1862_v6 }
 0x23f   : > { %v1966_v44 = vadd.f32 %v1965_v56, %v1964_v17 }
 0x246   : > { %v4107_v31 = vpop.f32.mrb[24].mxu0 }
 0x247   : > { %v1787_v34 = vpop.f32.mrb[25].mxu0  ;;  %v7344_v54 = vadd.f32 %v4107_v31, %v7150_v18 }
 0x248   : > { %v7347_v40 = vadd.f32 %v7150_v18, %v1787_v34  ;;  %v4108_v7 = vpop.f32.mrb[26].mxu0 }
 0x249   : > { %v1790_v26 = vpop.f32.mrb[27].mxu0  ;;  %v7355_v0 = vadd.f32 %v4108_v7, %v7150_v18  ;;  %v1914_v60 = vmul.f32 %v7344_v54, %v7344_v54  ;;  %v1869_v59 = vsel %vm1307_vm5, %v7344_v54, 0.0 }
 0x24a   : > { %v1865_v21 = vsel %vm1307_vm5, %v7347_v40, 0.0  ;;  %v1912_v24 = vmul.f32 %v7347_v40, %v7347_v40  ;;  %v7358_v13 = vadd.f32 %v7150_v18, %v1790_v26 }
 0x24b   : > { %v1866_v42 = vadd.f32 %v1865_v21, %v1864_v29  ;;  %v1915_v51 = vmul.f32 %v7355_v0, %v7355_v0  ;;  %v1971_v37 = vsel %vm1307_vm5, %v1914_v60, 0.0  ;;  %v1871_v3 = vsel %vm1307_vm5, %v7355_v0, 0.0 }
 0x24c   : > { %v1967_v16 = vsel %vm1307_vm5, %v1912_v24, 0.0  ;;  %v1867_v15 = vsel %vm1307_vm5, %v7358_v13, 0.0  ;;  %v1913_v46 = vmul.f32 %v7358_v13, %v7358_v13 }
 0x24d   : > { %v1968_v45 = vadd.f32 %v1967_v16, %v1966_v44  ;;  %v1868_v47 = vadd.f32 %v1867_v15, %v1866_v42  ;;  %v1973_v8 = vsel %vm1307_vm5, %v1915_v51, 0.0 }
 0x24e   : > { %v1969_v30 = vsel %vm1307_vm5, %v1913_v46, 0.0 }
 0x24f   : > { %v1870_v49 = vadd.f32 %v1869_v59, %v1868_v47  ;;  %v1970_v36 = vadd.f32 %v1969_v30, %v1968_v45 }
 0x251   : > { %v1972_v53 = vadd.f32 %v1971_v37, %v1970_v36  ;;  %v1872_v11 = vadd.f32 %v1871_v3, %v1870_v49 }
 0x253   : > { %v1974_v28 = vadd.f32 %v1973_v8, %v1972_v53 }
 0x256   : > { %v4111_v41 = vpop.f32.mrb[28].mxu0 }
 0x257   : > { %v1803_v55 = vpop.f32.mrb[29].mxu0  ;;  %v7377_v38 = vadd.f32 %v4111_v41, %v7150_v18 }
 0x258   : > { %v7380_v63 = vadd.f32 %v7150_v18, %v1803_v55  ;;  %v4112_v6 = vpop.f32.mrb[30].mxu0 }
 0x259   : > { %v1806_v1 = vpop.f32.mrb[31].mxu0  ;;  %v7387_v34 = vadd.f32 %v4112_v6, %v7150_v18  ;;  %v1918_v56 = vmul.f32 %v7377_v38, %v7377_v38  ;;  %v1877_v44 = vsel %vm1307_vm5, %v7377_v38, 0.0 }
 0x25a   : > { %v1873_v31 = vsel %vm1307_vm5, %v7380_v63, 0.0  ;;  %v1916_v17 = vmul.f32 %v7380_v63, %v7380_v63  ;;  %v7390_v58 = vadd.f32 %v7150_v18, %v1806_v1 }
 0x25b   : > { %v1874_v7 = vadd.f32 %v1873_v31, %v1872_v11  ;;  %v1919_v18 = vmul.f32 %v7387_v34, %v7387_v34  ;;  %v1979_v46 = vsel %vm1307_vm5, %v1918_v56, 0.0  ;;  %v1879_v45 = vsel %vm1307_vm5, %v7387_v34, 0.0 }
 0x25c   : > { %v1975_v29 = vsel %vm1307_vm5, %v1916_v17, 0.0  ;;  %v1875_v26 = vsel %vm1307_vm5, %v7390_v58, 0.0  ;;  %v1917_v21 = vmul.f32 %v7390_v58, %v7390_v58 }
 0x25d   : > { %v1976_v24 = vadd.f32 %v1975_v29, %v1974_v28  ;;  %v1876_v42 = vadd.f32 %v1875_v26, %v1874_v7  ;;  %v1981_v51 = vsel %vm1307_vm5, %v1919_v18, 0.0 }
 0x25e   : > { %v1977_v60 = vsel %vm1307_vm5, %v1917_v21, 0.0 }
 0x25f   : > { %v1878_v16 = vadd.f32 %v1877_v44, %v1876_v42  ;;  %v1978_v15 = vadd.f32 %v1977_v60, %v1976_v24 }
 0x261   : > { %v1880_v47 = vadd.f32 %v1879_v45, %v1878_v16  ;;  %v1980_v59 = vadd.f32 %v1979_v46, %v1978_v15 }
 0x263   : > { %v1881_v30 = vrot.slane %v1880_v47, 4  ;;  %v1982_v49 = vadd.f32 %v1981_v51, %v1980_v59 }
 0x265   : > { %v1882_v36 = vadd.f32 %v1881_v30, %v1880_v47  ;;  %v1983_v37 = vrot.slane %v1982_v49, 4 }
 0x267   : > { %v1883_v3 = vrot.slane %v1882_v36, 2  ;;  %v1984_v53 = vadd.f32 %v1983_v37, %v1982_v49 }
 0x269   : > { %v1884_v11 = vadd.f32 %v1883_v3, %v1882_v36  ;;  %v1985_v8 = vrot.slane %v1984_v53, 2 }
 0x26b   : > { %v1885_v28 = vrot.slane %v1884_v11, 1  ;;  %v1986_v41 = vadd.f32 %v1985_v8, %v1984_v53 }
 0x26d   : > { %v1886_v55 = vadd.f32 %v1885_v28, %v1884_v11  ;;  %v1987_v6 = vrot.slane %v1986_v41, 1 }
 0x26f   : > { %v7408_v1 = vmul.f32 0.00390625, %v1886_v55  ;;  %v1988_v31 = vadd.f32 %v1987_v6, %v1986_v41 }
 0x271   : > { %v1989_v17 = vmul.f32 0.00390625, %v1988_v31  ;;  %v1990_v7 = vmul.f32 %v7408_v1, %v7408_v1  ;;  %v2024_v56 = vsub.f32 %v7390_v58, %v7408_v1  ;;  %v2016_v24 = vsub.f32 %v7315_v61, %v7408_v1 }
 0x272   : > { %v2019_v42 = vsub.f32 %v7347_v40, %v7408_v1  ;;  %v2020_v44 = vsub.f32 %v7358_v13, %v7408_v1  ;;  %v2021_v18 = vsub.f32 %v7344_v54, %v7408_v1  ;;  %v2022_v60 = vsub.f32 %v7355_v0, %v7408_v1 }
 0x273   : > { %v1991_v29 = vsub.f32 %v1989_v17, %v1990_v7  ;;  %v2023_v58 = vsub.f32 %v7380_v63, %v7408_v1  ;;  %v2025_v16 = vsub.f32 %v7377_v38, %v7408_v1  ;;  %v2026_v61 = vsub.f32 %v7387_v34, %v7408_v1 }
 0x274   : > { %v1995_v40 = vsub.f32 %v7156_v4, %v7408_v1  ;;  %v1996_v13 = vsub.f32 %v7153_v50, %v7408_v1  ;;  %v1997_v54 = vsub.f32 %v7161_v27, %v7408_v1  ;;  %v1998_v0 = vsub.f32 %v7174_v32, %v7408_v1 }
 0x275   : > { %v1992_v26 = vmax.f32 %v1991_v29, 0.0  ;;  %v1999_v63 = vsub.f32 %v7177_v12, %v7408_v1  ;;  %v2000_v38 = vsub.f32 %v7187_v19, %v7408_v1  ;;  %v2001_v34 = vsub.f32 %v7198_v25, %v7408_v1 }
 0x276   : > { %v2002_v4 = vsub.f32 %v7206_v5, %v7408_v1  ;;  %v2003_v50 = vsub.f32 %v7209_v43, %v7408_v1  ;;  %v2004_v27 = vsub.f32 %v7219_v62, %v7408_v1  ;;  %v2005_v32 = vsub.f32 %v7230_v48, %v7408_v1 }
 0x277   : > { %v1993_v21 = vadd.f32 1e-05, %v1992_v26  ;;  %v2006_v12 = vsub.f32 %v7238_v14, %v7408_v1  ;;  %v2007_v19 = vsub.f32 %v7241_v33, %v7408_v1  ;;  %v2008_v25 = vsub.f32 %v7251_v10, %v7408_v1 }
 0x278   : > { %v2009_v5 = vsub.f32 %v7262_v23, %v7408_v1  ;;  %v2010_v43 = vsub.f32 %v7270_v52, %v7408_v1  ;;  %v2011_v62 = vsub.f32 %v7273_v22, %v7408_v1  ;;  %v2012_v48 = vsub.f32 %v7283_v9, %v7408_v1 }
 0x279   : > { %5405 = vrsqrt.f32 %v1993_v21  ;;  %v2013_v14 = vsub.f32 %v7294_v57, %v7408_v1  ;;  %v2014_v33 = vsub.f32 %v7302_v2, %v7408_v1  ;;  %v2015_v10 = vsub.f32 %v7305_v39, %v7408_v1 }
 0x27a   : > { %v2017_v23 = vsub.f32 %v7326_v20, %v7408_v1  ;;  %v2018_v52 = vsub.f32 %v7332_v35, %v7408_v1 }
 0x283   : > { %v5406_v15 = vpop.eup %5405 }
 0x284   : > { %v2056_v22 = vmul.f32 %v5406_v15, %v2024_v56  ;;  %v2029_v46 = vmul.f32 %v5406_v15, %v1997_v54  ;;  %v2030_v45 = vmul.f32 %v5406_v15, %v1998_v0  ;;  %v2027_v9 = vmul.f32 %v5406_v15, %v1995_v40 }
 0x285   : > { %v2028_v47 = vmul.f32 %v5406_v15, %v1996_v13  ;;  %v2031_v59 = vmul.f32 %v5406_v15, %v1999_v63  ;;  %v2032_v57 = vmul.f32 %v5406_v15, %v2000_v38  ;;  %v2033_v51 = vmul.f32 %v5406_v15, %v2001_v34 }
 0x286   : > { %v7476_v30 = vmax.f32 %v2056_v22, 0.0  ;;  %v7478_v2 = vmax.f32 %v2029_v46, 0.0  ;;  %v7480_v49 = vmax.f32 %v2030_v45, 0.0  ;;  %v2034_v39 = vmul.f32 %v5406_v15, %v2002_v4 }
 0x287   : > { %v2035_v36 = vmul.f32 %v5406_v15, %v2003_v50  ;;  %v2036_v20 = vmul.f32 %v5406_v15, %v2004_v27  ;;  %v2037_v37 = vmul.f32 %v5406_v15, %v2005_v32  ;;  %v2038_v3 = vmul.f32 %v5406_v15, %v2006_v12 }
 0x288   : > { %9864 = vst [vmem:[#allocation21_spill] sm:$0xff] %v7476_v30  ;;  %v7484_v35 = vpack.i.bf16 %v7480_v49, %v7478_v2  ;;  %v2039_v53 = vmul.f32 %v5406_v15, %v2007_v19  ;;  %v2040_v11 = vmul.f32 %v5406_v15, %v2008_v25  ;;  %v2041_v8 = vmul.f32 %v5406_v15, %v2009_v5 }
 0x289   : > { %v2042_v28 = vmul.f32 %v5406_v15, %v2010_v43  ;;  %v2043_v41 = vmul.f32 %v5406_v15, %v2011_v62  ;;  %v2044_v55 = vmul.f32 %v5406_v15, %v2012_v48  ;;  %v2045_v6 = vmul.f32 %v5406_v15, %v2013_v14 }
 0x28a   : > { %4785 = vrot.lane.b32.xlu1 %v7484_v35, %s5449_s24  ;;  %v2046_v1 = vmul.f32 %v5406_v15, %v2014_v33  ;;  %v2047_v31 = vmul.f32 %v5406_v15, %v2015_v10  ;;  %v2048_v17 = vmul.f32 %v5406_v15, %v2016_v24  ;;  %v2049_v7 = vmul.f32 %v5406_v15, %v2017_v23 }
 0x28b   : > { %v2050_v56 = vmul.f32 %v5406_v15, %v2018_v52  ;;  %v2051_v29 = vmul.f32 %v5406_v15, %v2019_v42  ;;  %v2052_v26 = vmul.f32 %v5406_v15, %v2020_v44  ;;  %v2053_v21 = vmul.f32 %v5406_v15, %v2021_v18 }
 0x28c   : > { %v2054_v40 = vmul.f32 %v5406_v15, %v2022_v60  ;;  %v2055_v13 = vmul.f32 %v5406_v15, %v2023_v58  ;;  %v7488_v54 = vmul.f32 %v5406_v15, %v2025_v16  ;;  %v7490_v0 = vmul.f32 %v5406_v15, %v2026_v61 }
 0x28d   : > { %v7492_v63 = vmax.f32 %v2027_v9, 0.0  ;;  %v7494_v38 = vmax.f32 %v2028_v47, 0.0  ;;  %v7496_v34 = vmax.f32 %v2031_v59, 0.0  ;;  %v7498_v4 = vmax.f32 %v2032_v57, 0.0 }
 0x28e   : > { %v7500_v24 = vmax.f32 %v2033_v51, 0.0  ;;  %v7502_v50 = vmax.f32 %v2034_v39, 0.0  ;;  %v7504_v42 = vmax.f32 %v2035_v36, 0.0  ;;  %v7506_v44 = vmax.f32 %v2036_v20, 0.0 }
 0x28f   : > { %v7510_v18 = vpack.i.bf16 %v7494_v38, %v7492_v63  ;;  %v7512_v60 = vmax.f32 %v2037_v37, 0.0  ;;  %v7514_v58 = vmax.f32 %v2038_v3, 0.0  ;;  %v7516_v16 = vmax.f32 %v2039_v53, 0.0 }
 0x290   : > { %v7518_v61 = vmax.f32 %v2040_v11, 0.0  ;;  %v7520_v27 = vmax.f32 %v2041_v8, 0.0  ;;  %v7522_v32 = vmax.f32 %v2042_v28, 0.0  ;;  %v7524_v12 = vmax.f32 %v2043_v41, 0.0 }
 0x291   : > { %4790 = vrot.lane.b32.xlu0 %v7510_v18, %s5449_s24  ;;  %v7528_v19 = vmax.f32 %v2044_v55, 0.0  ;;  %v7530_v25 = vmax.f32 %v2045_v6, 0.0  ;;  %v7532_v5 = vmax.f32 %v2046_v1, 0.0  ;;  %v7534_v43 = vmax.f32 %v2047_v31, 0.0 }
 0x292   : > { %v7536_v62 = vmax.f32 %v2048_v17, 0.0  ;;  %v7538_v48 = vmax.f32 %v2049_v7, 0.0  ;;  %v7540_v14 = vmax.f32 %v2050_v56, 0.0  ;;  %v7542_v15 = vmax.f32 %v2051_v29, 0.0 }
 0x293   : > { %v7544_v33 = vmax.f32 %v2052_v26, 0.0  ;;  %v7546_v10 = vmax.f32 %v2053_v21, 0.0  ;;  %v7548_v23 = vmax.f32 %v2054_v40, 0.0  ;;  %v7550_v52 = vmax.f32 %v2055_v13, 0.0 }
 0x294   : > { %v7554_v22 = vpack.i.bf16 %v7498_v4, %v7496_v34  ;;  %v7558_v46 = vpack.i.bf16 %v7502_v50, %v7500_v24  ;;  %v7562_v45 = vpack.i.bf16 %v7506_v44, %v7504_v42  ;;  %v7566_v9 = vpack.i.bf16 %v7514_v58, %v7512_v60 }
 0x295   : > { %9865 = vst [vmem:[#allocation24_spill] sm:$0xff] %v7550_v52  ;;  %v7570_v47 = vpack.i.bf16 %v7518_v61, %v7516_v16  ;;  %v7574_v59 = vpack.i.bf16 %v7522_v32, %v7520_v27  ;;  %v7582_v57 = vpack.i.bf16 %v7528_v19, %v7524_v12  ;;  %v7586_v51 = vpack.i.bf16 %v7532_v5, %v7530_v25 }
 0x296   : > { %4795 = vrot.lane.b32.xlu1 %v7554_v22, %s5449_s24  ;;  %4800 = vrot.lane.b32.xlu0 %v7558_v46, %s5449_s24  ;;  %v7590_v39 = vpack.i.bf16 %v7536_v62, %v7534_v43  ;;  %v9539_v36 = vrot.slane %v7478_v2, 7  ;;  %v7595_v20 = vpack.i.bf16 %v7540_v14, %v7538_v48  ;;  %v7599_v37 = vpack.i.bf16 %v7544_v33, %v7542_v15 }
 0x297   : > { %v7603_v3 = vpack.i.bf16 %v7548_v23, %v7546_v10  ;;  %v7607_v53 = vpack.i.bf16 %v7476_v30, %v7550_v52  ;;  %v9538_v11 = vrot.slane %v7480_v49, 7  ;;  %v2162_v8 = vrot.slane %v7478_v2, 1 }
 0x298   : > { %9866 = vst [vmem:[#allocation23_spill] sm:$0xff] %v7590_v39  ;;  %9867 = vst [vmem:[#allocation28_spill] sm:$0xff] %v7595_v20  ;;  %v2178_v55 = vrot.slane %v7480_v49, 1  ;;  %v9537_v6 = vrot.slane %v7496_v34, 7  ;;  %v9536_v1 = vrot.slane %v7498_v4, 7  ;;  %v2163_v31 = vrot.slane %v7496_v34, 1 }
 0x299   : > { %9868 = vst [vmem:[#allocation50_spill] sm:$0xff] %v7599_v37  ;;  %9869 = vst [vmem:[#allocation22_spill] sm:$0xff] %v7603_v3  ;;  %v7625_v41 = vsel %vm298_vm0, %v9539_v36, %v9538_v11  ;;  %v2179_v17 = vrot.slane %v7498_v4, 1  ;;  %v9545_v7 = vrot.slane %v7492_v63, 7  ;;  %v9544_v56 = vrot.slane %v7494_v38, 7 }
 0x29a   : > { %9870 = vst [vmem:[#allocation45_spill] sm:$0xff] %v7607_v53  ;;  %4805 = vrot.lane.b32.xlu1 %v7562_v45, %s5449_s24  ;;  %4810 = vrot.lane.b32.xlu0 %v7566_v9, %s5449_s24  ;;  %9872 = vst [vmem:[#allocation25_spill] sm:$0xff] %v7625_v41  ;;  %v7636_v29 = vsel %vm363_vm1, %v2162_v8, %v2178_v55  ;;  %v2210_v26 = vsel %vm363_vm1, %v2178_v55, %v2162_v8  ;;  %v2161_v40 = vrot.slane %v7492_v63, 1 }
 0x29b   : > { %v7646_v21 = vsel %vm298_vm0, %v9537_v6, %v9536_v1  ;;  %v2260_v8 = vsel %vm436_vm2, %v7625_v41, %v2210_v26  ;;  %v7658_v55 = vsel %vm363_vm1, %v2163_v31, %v2179_v17  ;;  %v2211_v1 = vsel %vm363_vm1, %v2179_v17, %v2163_v31 }
 0x29c   : > { %9873 = vst [vmem:[#allocation20_spill] sm:$0xff] %v7646_v21  ;;  %v2177_v6 = vrot.slane %v7494_v38, 1  ;;  %v7664_v11 = vpack.i.bf16 %v2260_v8, %v7636_v29  ;;  %v2262_v36 = vsel %vm436_vm2, %v7646_v21, %v2211_v1  ;;  %v7675_v26 = vsel %vm298_vm0, %v9545_v7, %v9544_v56 }
 0x29d   : > { %9876 = vst [vmem:[#allocation8_spill] sm:$0xff] %v7675_v26  ;;  %v9553_v30 = vrot.slane %v7504_v42, 7  ;;  %v7679_v31 = vpack.i.bf16 %v2262_v36, %v7658_v55  ;;  %v9552_v8 = vrot.slane %v7506_v44, 7  ;;  %v2165_v56 = vrot.slane %v7504_v42, 1 }
 0x29e   : > { %4815 = vrot.lane.b32.xlu1 %v7570_v47, %s5449_s24  ;;  %4820 = vrot.lane.b32.xlu0 %v7574_v59, %s5449_s24  ;;  %9875 = vst [vmem:[#allocation6_spill] sm:$0xff] %v7664_v11  ;;  %v7683_v17 = vsel %vm363_vm1, %v2161_v40, %v2177_v6  ;;  %v2209_v1 = vsel %vm363_vm1, %v2177_v6, %v2161_v40  ;;  %v2181_v7 = vrot.slane %v7506_v44, 1  ;;  %v2164_v36 = vrot.slane %v7500_v24, 1 }
 0x29f   : > { %9877 = vst [vmem:[#allocation35_spill] sm:$0xff] %v7679_v31  ;;  %v2258_v52 = vsel %vm436_vm2, %v7675_v26, %v2209_v1  ;;  %v7707_v40 = vsel %vm298_vm0, %v9553_v30, %v9552_v8  ;;  %v9558_v1 = vrot.slane %v7502_v50, 7  ;;  %v2180_v41 = vrot.slane %v7502_v50, 1 }
 0x2a0   : > { %v7699_v6 = vpack.i.bf16 %v2258_v52, %v7683_v17  ;;  %9879 = vst [vmem:[#allocation14_spill] sm:$0xff] %v7707_v40  ;;  %v7713_v21 = vsel %vm363_vm1, %v2165_v56, %v2181_v7  ;;  %v2213_v52 = vsel %vm363_vm1, %v2181_v7, %v2165_v56  ;;  %v9880_v30 = vrot.slane %v7500_v24, 7 }
 0x2a1   : > { %v2266_v8 = vsel %vm436_vm2, %v7707_v40, %v2213_v52  ;;  %v9563_v31 = vrot.slane %v7518_v61, 7  ;;  %v2167_v7 = vrot.slane %v7516_v16, 1  ;;  %v7737_v26 = vsel %vm363_vm1, %v2164_v36, %v2180_v41 }
 0x2a2   : > { %4825 = vrot.lane.b32.xlu1 %v7582_v57, %s5449_s24  ;;  %4830 = vrot.lane.b32.xlu0 %v7586_v51, %s5449_s24  ;;  %9878 = vst [vmem:[#allocation32_spill] sm:$0xff] %v7699_v6  ;;  %v7728_v6 = vsel %vm298_vm0, %v9880_v30, %v9558_v1  ;;  %v7733_v56 = vpack.i.bf16 %v2266_v8, %v7713_v21  ;;  %v2183_v40 = vrot.slane %v7518_v61, 1  ;;  %v9883_v8 = vrot.slane %v7516_v16, 7 }
 0x2a3   : > { %9881 = vst [vmem:[#allocation34_spill] sm:$0xff] %v7728_v6  ;;  %v2212_v52 = vsel %vm363_vm1, %v2180_v41, %v2164_v36  ;;  %v9568_v41 = vrot.slane %v7512_v60, 7  ;;  %v9567_v36 = vrot.slane %v7514_v58, 7 }
 0x2a4   : > { %9882 = vst [vmem:[#allocation33_spill] sm:$0xff] %v7733_v56  ;;  %v2264_v30 = vsel %vm436_vm2, %v7728_v6, %v2212_v52  ;;  %v7755_v1 = vsel %vm298_vm0, %v9883_v8, %v9563_v31  ;;  %v7764_v11 = vsel %vm363_vm1, %v2167_v7, %v2183_v40  ;;  %v2215_v52 = vsel %vm363_vm1, %v2183_v40, %v2167_v7 }
 0x2a5   : > { %9884 = vst [vmem:[#allocation9_spill] sm:$0xff] %v7755_v1  ;;  %v7760_v56 = vpack.i.bf16 %v2264_v30, %v7737_v26  ;;  %v2166_v6 = vrot.slane %v7512_v60, 1  ;;  %v2270_v8 = vsel %vm436_vm2, %v7755_v1, %v2215_v52  ;;  %v7778_v30 = vsel %vm298_vm0, %v9568_v41, %v9567_v36 }
 0x2a6   : > { %4835 = vrot.lane.b32.xlu1 %v7590_v39, %s5449_s24  ;;  %4840 = vrot.lane.b32.xlu0 %v7595_v20, %s5449_s24  ;;  %9886 = vst [vmem:[#allocation46_spill] sm:$0xff] %v7778_v30  ;;  %v2182_v31 = vrot.slane %v7514_v58, 1  ;;  %v7783_v40 = vpack.i.bf16 %v2270_v8, %v7764_v11  ;;  %v2185_v52 = vrot.slane %v7528_v19, 1  ;;  %v9577_v41 = vrot.slane %v7520_v27, 7 }
 0x2a7   : > { %9885 = vst [vmem:[#allocation3_spill] sm:$0xff] %v7760_v56  ;;  %v9576_v56 = vrot.slane %v7522_v32, 7  ;;  %v9889_v1 = vrot.slane %v7524_v12, 7 }
 0x2a8   : > { %9887 = vst [vmem:[#allocation11_spill] sm:$0xff] %v7783_v40  ;;  %v7794_v36 = vsel %vm363_vm1, %v2166_v6, %v2182_v31  ;;  %v2214_v8 = vsel %vm363_vm1, %v2182_v31, %v2166_v6 }
 0x2a9   : > { %v2268_v7 = vsel %vm436_vm2, %v7778_v30, %v2214_v8 }
 0x2aa   : > { %4845 = vrot.lane.b32.xlu1 %v7599_v37, %s5449_s24  ;;  %4850 = vrot.lane.b32.xlu0 %v7603_v3, %s5449_s24  ;;  %v2169_v3 = vrot.slane %v7524_v12, 1  ;;  %v7818_v6 = vpack.i.bf16 %v2268_v7, %v7794_v36 }
 0x2ac   : > { %v7813_v40 = vsel %vm363_vm1, %v2169_v3, %v2185_v52  ;;  %v2217_v31 = vsel %vm363_vm1, %v2185_v52, %v2169_v3  ;;  %9891 = vst [vmem:[#allocation38_spill] sm:$0xff] %v7818_v6  ;;  %v2184_v3 = vrot.slane %v7522_v32, 1  ;;  %v9588_v52 = vrot.slane %v7536_v62, 7 }
 0x2ad   : > { %v2170_v6 = vrot.slane %v7530_v25, 1 }
 0x2ae   : > { %4855 = vrot.lane.b32.xlu1 %v7607_v53, %s5449_s24  ;;  %4860 = vrot.lane.b32.xlu0 %v7510_v18, %s5452_s27  ;;  %v9888_v53 = vrot.slane %v7528_v19, 7 }
 0x2b0   : > { %v7809_v18 = vsel %vm298_vm0, %v9889_v1, %v9888_v53  ;;  %v7829_v53 = vsel %vm298_vm0, %v9577_v41, %v9576_v56  ;;  %v2168_v1 = vrot.slane %v7520_v27, 1  ;;  %v2187_v56 = vrot.slane %v7536_v62, 1 }
 0x2b1   : > { %9890 = vst [vmem:[#allocation13_spill] sm:$0xff] %v7809_v18  ;;  %v2274_v8 = vsel %vm436_vm2, %v7809_v18, %v2217_v31  ;;  %9892 = vst [vmem:[#allocation39_spill] sm:$0xff] %v7829_v53  ;;  %v2171_v31 = vrot.slane %v7534_v43, 1  ;;  %v2106_v41 = vrot.slane %v7530_v25, 7 }
 0x2b2   : > { %v7833_v30 = vpack.i.bf16 %v2274_v8, %v7813_v40  ;;  %4865 = vrot.lane.b32.xlu1 %v7484_v35, %s5452_s27  ;;  %4870 = vrot.lane.b32.xlu0 %v7484_v35, %s5455_s11  ;;  %v2122_v8 = vrot.slane %v7532_v5, 7  ;;  %v2200_v18 = vsel %vm363_vm1, %v2168_v1, %v2184_v3  ;;  %v2216_v7 = vsel %vm363_vm1, %v2184_v3, %v2168_v1 }
 0x2b3   : > { %v2272_v37 = vsel %vm436_vm2, %v7829_v53, %v2216_v7  ;;  %v2203_v20 = vsel %vm363_vm1, %v2171_v31, %v2187_v56  ;;  %v2219_v1 = vsel %vm363_vm1, %v2187_v56, %v2171_v31  ;;  %v9897_v7 = vrot.slane %v7492_v63, 7 }
 0x2b4   : > { %9893 = vst [vmem:[#allocation37_spill] sm:$0xff] %v7833_v30  ;;  %v9894_v30 = vrot.slane %v7534_v43, 7  ;;  %v7868_v3 = vsel %vm298_vm0, %v2106_v41, %v2122_v8  ;;  %v7870_v39 = vpack.i.bf16 %v2272_v37, %v2200_v18  ;;  %v2108_v63 = vrot.slane %v7538_v48, 7 }
 0x2b5   : > { %9896 = vst [vmem:[#allocation40_spill] sm:$0xff] %v7868_v3  ;;  %v2172_v31 = vrot.slane %v7538_v48, 1 }
 0x2b6   : > { %v7856_v35 = vsel %vm298_vm0, %v9894_v30, %v9588_v52  ;;  %v2186_v30 = vrot.slane %v7532_v5, 1  ;;  %v9898_v52 = vrot.slane %v7494_v38, 7  ;;  %4875 = vrot.lane.b32.xlu1 %v7554_v22, %s5455_s11  ;;  %4880 = vrot.lane.b32.xlu0 %v7554_v22, %s5452_s27  ;;  %v2124_v38 = vrot.slane %v7540_v14, 7 }
 0x2b7   : > { %9895 = vst [vmem:[#allocation36_spill] sm:$0xff] %v7856_v35  ;;  %v2278_v25 = vsel %vm436_vm2, %v7856_v35, %v2219_v1 }
 0x2b8   : > { %v2145_v53 = vsel %vm298_vm0, %v9898_v52, %v9897_v7  ;;  %v7886_v37 = vpack.i.bf16 %v2278_v25, %v2203_v20  ;;  %v2202_v5 = vsel %vm363_vm1, %v2170_v6, %v2186_v30  ;;  %v2218_v52 = vsel %vm363_vm1, %v2186_v30, %v2170_v6 }
 0x2b9   : > { %v7891_v56 = vsel %vm397_vm3, %v7683_v17, %v2145_v53  ;;  %v2276_v22 = vsel %vm436_vm2, %v7868_v3, %v2218_v52  ;;  %v7905_v17 = vsel %vm298_vm0, %v2108_v63, %v2124_v38  ;;  %v2188_v53 = vrot.slane %v7540_v14, 1 }
 0x2ba   : > { %9899 = vst [vmem:[#allocation10_spill] sm:$0xff] %v7905_v17  ;;  %v7908_v1 = vpack.i.bf16 %v2276_v22, %v2202_v5  ;;  %v9900_v25 = vrot.slane %v7478_v2, 7  ;;  %v9901_v7 = vrot.slane %v7480_v49, 7  ;;  %4885 = vrot.lane.b32.xlu1 %v7558_v46, %s5452_s27  ;;  %4890 = vrot.lane.b32.xlu0 %v7558_v46, %s5455_s11  ;;  %v9902_v30 = vrot.slane %v7496_v34, 7 }
 0x2bb   : > { %v2204_v48 = vsel %vm363_vm1, %v2172_v31, %v2188_v53  ;;  %v2220_v14 = vsel %vm363_vm1, %v2188_v53, %v2172_v31  ;;  %v9903_v52 = vrot.slane %v7498_v4, 7  ;;  %v9905_v53 = vrot.slane %v7502_v50, 7 }
 0x2bc   : > { %v2146_v6 = vsel %vm298_vm0, %v9901_v7, %v9900_v25  ;;  %v2280_v49 = vsel %vm436_vm2, %v7905_v17, %v2220_v14  ;;  %v9906_v4 = vrot.slane %v7504_v42, 7  ;;  %v9907_v7 = vrot.slane %v7506_v44, 7 }
 0x2bd   : > { %v7927_v2 = vsel %vm397_vm3, %v7636_v29, %v2146_v6  ;;  %v2147_v46 = vsel %vm298_vm0, %v9903_v52, %v9902_v30  ;;  %v7938_v22 = vpack.i.bf16 %v2280_v49, %v2204_v48  ;;  %v9904_v29 = vrot.slane %v7500_v24, 7 }
 0x2be   : > { %v7943_v31 = vsel %vm397_vm3, %v7658_v55, %v2147_v46  ;;  %v2149_v55 = vsel %vm298_vm0, %v9907_v7, %v9906_v4  ;;  %4895 = vrot.lane.b32.xlu1 %v7562_v45, %s5455_s11  ;;  %4900 = vrot.lane.b32.xlu0 %v7562_v45, %s5452_s27  ;;  %v9908_v50 = vrot.slane %v7512_v60, 7  ;;  %v9909_v42 = vrot.slane %v7514_v58, 7 }
 0x2bf   : > { %v2148_v25 = vsel %vm298_vm0, %v9905_v53, %v9904_v29  ;;  %v7969_v24 = vsel %vm397_vm3, %v7713_v21, %v2149_v55  ;;  %v9910_v6 = vrot.slane %v7516_v16, 7  ;;  %v9911_v45 = vrot.slane %v7518_v61, 7 }
 0x2c0   : > { %v7954_v34 = vsel %vm397_vm3, %v7737_v26, %v2148_v25  ;;  %v2150_v44 = vsel %vm298_vm0, %v9909_v42, %v9908_v50  ;;  %v9912_v14 = vrot.slane %v7520_v27, 7  ;;  %v9913_v60 = vrot.slane %v7522_v32, 7 }
 0x2c1   : > { %v7980_v26 = vsel %vm397_vm3, %v7794_v36, %v2150_v44  ;;  %v2151_v21 = vsel %vm298_vm0, %v9911_v45, %v9910_v6  ;;  %v2109_v49 = vrot.slane %v7542_v15, 7  ;;  %v2125_v61 = vrot.slane %v7544_v33, 7 }
 0x2c2   : > { %v2152_v58 = vsel %vm298_vm0, %v9913_v60, %v9912_v14  ;;  %v7998_v36 = vsel %vm397_vm3, %v7764_v11, %v2151_v21  ;;  %v9915_v27 = vrot.slane %v7524_v12, 7  ;;  %v9916_v32 = vrot.slane %v7528_v19, 7  ;;  %4905 = vrot.lane.b32.xlu1 %v7566_v9, %s5452_s27  ;;  %4910 = vrot.lane.b32.xlu0 %v7566_v9, %s5455_s11 }
 0x2c3   : > { %v8002_v16 = vsel %vm397_vm3, %v2200_v18, %v2152_v58  ;;  %v2154_v52 = vsel %vm298_vm0, %v2122_v8, %v2106_v41  ;;  %v9919_v19 = vrot.slane %v7534_v43, 7  ;;  %v9920_v18 = vrot.slane %v7536_v62, 7 }
 0x2c4   : > { %9914 = vst [vmem:[#allocation26_spill] sm:$0xff] %v8002_v16  ;;  %v2153_v30 = vsel %vm298_vm0, %v9916_v32, %v9915_v27  ;;  %v8024_v12 = vsel %vm397_vm3, %v2202_v5, %v2154_v52  ;;  %v2173_v8 = vrot.slane %v7542_v15, 1  ;;  %v8045_v43 = vsel %vm298_vm0, %v2109_v49, %v2125_v61  ;;  %v9930_v52 = vld [vmem:[#allocation22_spill] sm:$0xff] }
 0x2c5   : > { %v8020_v11 = vsel %vm397_vm3, %v7813_v40, %v2153_v30  ;;  %9918 = vst [vmem:[#allocation47_spill] sm:$0xff] %v8024_v12  ;;  %v2155_v41 = vsel %vm298_vm0, %v9920_v18, %v9919_v19  ;;  %v2156_v40 = vsel %vm298_vm0, %v2124_v38, %v2108_v63  ;;  %9923 = vst [vmem:[#allocation31_spill] sm:$0xff] %v8045_v43  ;;  %v2189_v15 = vrot.slane %v7544_v33, 1  ;;  %v9929_v30 = vld [vmem:[#allocation50_spill] sm:$0xff]  ;;  %v9932_v18 = vld [vmem:[#allocation35_spill] sm:$0xff] }
 0x2c6   : > { %9917 = vst [vmem:[#allocation4_spill] sm:$0xff] %v8020_v11  ;;  %v8035_v9 = vsel %vm397_vm3, %v2203_v20, %v2155_v41  ;;  %v8041_v5 = vsel %vm397_vm3, %v2204_v48, %v2156_v40  ;;  %v2157_v62 = vsel %vm298_vm0, %v2125_v61, %v2109_v49  ;;  %v2110_v46 = vrot.slane %v7546_v10, 7  ;;  %4915 = vrot.lane.b32.xlu1 %v7570_v47, %s5455_s11  ;;  %v9928_v61 = vld [vmem:[#allocation28_spill] sm:$0xff]  ;;  %v9931_v19 = vld [vmem:[#allocation6_spill] sm:$0xff]  ;;  %v9935_v40 = vld [vmem:[#allocation3_spill] sm:$0xff] }
 0x2c7   : > { %9921 = vst [vmem:[#allocation27_spill] sm:$0xff] %v8035_v9  ;;  %9922 = vst [vmem:[#allocation44_spill] sm:$0xff] %v8041_v5  ;;  %v2126_v20 = vrot.slane %v7548_v23, 7  ;;  %v2174_v29 = vrot.slane %v7546_v10, 1  ;;  %v2190_v63 = vrot.slane %v7548_v23, 1  ;;  %4920 = vrot.lane.b32.xlu0 %v7570_v47, %s5452_s27  ;;  %v2205_v38 = vsel %vm363_vm1, %v2173_v8, %v2189_v15  ;;  %v9933_v41 = vld [vmem:[#allocation32_spill] sm:$0xff] }
 0x2c8   : > { %v8062_v33 = vsel %vm397_vm3, %v2205_v38, %v2157_v62  ;;  %v2089_v53 = vmax.f32 %v7488_v54, 0.0  ;;  %v2090_v25 = vmax.f32 %v7490_v0, 0.0  ;;  %v2221_v4 = vsel %vm363_vm1, %v2189_v15, %v2173_v8  ;;  %v9934_v8 = vld [vmem:[#allocation33_spill] sm:$0xff]  ;;  %v9936_v62 = vld [vmem:[#allocation11_spill] sm:$0xff]  ;;  %v9937_v15 = vld [vmem:[#allocation38_spill] sm:$0xff] }
 0x2c9   : > { %9924 = vst [vmem:[#allocation5_spill] sm:$0xff] %v8062_v33  ;;  %v8066_v48 = vsel %vm298_vm0, %v2110_v46, %v2126_v20  ;;  %v2158_v10 = vsel %vm298_vm0, %v2126_v20, %v2110_v46  ;;  %v2206_v23 = vsel %vm363_vm1, %v2174_v29, %v2190_v63  ;;  %v2282_v54 = vsel %vm436_vm2, %v8045_v43, %v2221_v4  ;;  %v9938_v46 = vld [vmem:[#allocation37_spill] sm:$0xff]  ;;  %v5402_v20 = vld [vmem:[%s9411_s3] sm:$0xff]  }
 0x2ca   : > { %9925 = vst [vmem:[#allocation43_spill] sm:$0xff] %v8066_v48  ;;  %v8074_v47 = vsel %vm397_vm3, %v2206_v23, %v2158_v10  ;;  %4925 = vrot.lane.b32.xlu1 %v7574_v59, %s5452_s27  ;;  %v2222_v0 = vsel %vm363_vm1, %v2190_v63, %v2174_v29  ;;  %v2128_v7 = vrot.slane %v2090_v25, 7  ;;  %v8097_v55 = vpack.i.bf16 %v2282_v54, %v2205_v38  ;;  %v9939_v29 = vld [vmem:[#allocation8_spill] sm:$0xff]  ;;  %v5403_v38 = vld [vmem:[%s9411_s3 + $0x8] sm:$0xff]   ;;  %v9940_v10 = vld [vmem:[#allocation25_spill] sm:$0xff] }
 0x2cb   : > { %9926 = vst [vmem:[#allocation42_spill] sm:$0xff] %v8074_v47  ;;  %4930 = vrot.lane.b32.xlu0 %v7574_v59, %s5455_s11  ;;  %v2112_v59 = vrot.slane %v2089_v53, 7  ;;  %v2176_v42 = vrot.slane %v2089_v53, 1  ;;  %v2192_v45 = vrot.slane %v2090_v25, 1  ;;  %v8112_v21 = vpack.i.bf16 %v2090_v25, %v2089_v53  ;;  %4113 = vmatprep.subr.bf16.mxu1 %v5402_v20 }
 0x2cc   : > { %v5049_v63 = vpack.i.bf16 %v9939_v29, %v7891_v56  ;;  %4114 = vmatpush3.bf16.msra.mxu1 %v5402_v20  ;;  %v5404_v53 = vld [vmem:[%s9411_s3 + $0x10] ss:$0 sps:$4 sm:$0x33]   ;;  %v9950_v20 = vld [vmem:[#allocation46_spill] sm:$0xff] }
 0x2cd   : > { %v2144_v44 = vsel %vm298_vm0, %v2112_v59, %v2128_v7  ;;  %v2160_v6 = vsel %vm298_vm0, %v2128_v7, %v2112_v59  ;;  %v2208_v14 = vsel %vm363_vm1, %v2176_v42, %v2192_v45  ;;  %v2224_v60 = vsel %vm363_vm1, %v2192_v45, %v2176_v42  ;;  %4115 = vmatprep.subr.bf16.mxu1 %v5403_v38 }
 0x2ce   : > { %4935 = vrot.lane.b32.xlu1 %v7582_v57, %s5455_s11  ;;  %v2255_v58 = vsel %vm397_vm3, %v2208_v14, %v2160_v6  ;;  %v2288_v49 = vsel %vm436_vm2, %v2144_v44, %v2224_v60  ;;  %v3461_v4 = vsel %vm1653_vm4, %v5404_v53, 0 }
 0x2cf   : > { %4940 = vrot.lane.b32.xlu0 %v7582_v57, %s5452_s27  ;;  %v2284_v57 = vsel %vm436_vm2, %v8066_v48, %v2222_v0  ;;  %v8126_v27 = vpack.i.bf16 %v2144_v44, %v2255_v58  ;;  %v8128_v32 = vpack.i.bf16 %v2288_v49, %v2208_v14  ;;  %v9941_v0 = vld [vmem:[#allocation20_spill] sm:$0xff]  ;;  %v9942_v44 = vld [vmem:[#allocation34_spill] sm:$0xff] }
 0x2d0   : > { %v8102_v50 = vpack.i.bf16 %v2284_v57, %v2206_v23  ;;  %v5054_v23 = vpack.i.bf16 %v9940_v10, %v7927_v2  ;;  %4116 = vmatpush3.bf16.msra.mxu1 %v5403_v38  ;;  %v5074_v59 = vpack.i.bf16 %v9941_v0, %v7943_v31  ;;  %v5094_v6 = vpack.i.bf16 %v9942_v44, %v7954_v34  ;;  %v9945_v49 = vld [vmem:[#allocation14_spill] sm:$0xff] }
 0x2d1   : > { %4152 = vmatprep.subr.msk.bf16.mxu1 %vm1653_vm4, %v5404_v53 }
 0x2d2   : > { %4945 = vrot.lane.b32.xlu1 %v7586_v51, %s5452_s27 }
 0x2d3   : > { %4950 = vrot.lane.b32.xlu0 %v7586_v51, %s5455_s11  ;;  %v9927_v51 = vld [vmem:[#allocation23_spill] sm:$0xff] }
 0x2d4   : > { %4118 = vmatpush3.bf16.msra.mxu1 %v3461_v4  ;;  %v9952_v4 = vld [vmem:[#allocation9_spill] sm:$0xff] }
 0x2d6   : > { %4955 = vrot.lane.b32.xlu1 %v9927_v51, %s5455_s11 }
 0x2d7   : > { %4960 = vrot.lane.b32.xlu0 %v9927_v51, %s5452_s27 }
 0x2da   : > { %4965 = vrot.lane.b32.xlu1 %v9928_v61, %s5452_s27 }
 0x2db   : > { %4970 = vrot.lane.b32.xlu0 %v9928_v61, %s5455_s11  ;;  %v5114_v61 = vpack.i.bf16 %v9945_v49, %v7969_v24 }
 0x2de   : > { %4975 = vrot.lane.b32.xlu1 %v9929_v30, %s5455_s11 }
 0x2df   : > { %4985 = vrot.lane.b32.xlu0 %v9930_v52, %s5452_s27 }
 0x2e2   : > { %4980 = vrot.lane.b32.xlu1 %v9929_v30, %s5452_s27 }
 0x2e3   : > { %4990 = vrot.lane.b32.xlu0 %v9931_v19, %s5450_s25 }
 0x2e6   : > { %4995 = vrot.lane.b32.xlu1 %v9933_v41, %s5450_s25 }
 0x2e7   : > { %5000 = vrot.lane.b32.xlu0 %v9932_v18, %s5450_s25 }
 0x2ea   : > { %5005 = vrot.lane.b32.xlu1 %v9935_v40, %s5450_s25 }
 0x2eb   : > { %5010 = vrot.lane.b32.xlu0 %v9934_v8, %s5450_s25 }
 0x2ee   : > { %5015 = vrot.lane.b32.xlu1 %v9937_v15, %s5450_s25 }
 0x2ef   : > { %5020 = vrot.lane.b32.xlu0 %v9936_v62, %s5450_s25 }
 0x2f2   : > { %5025 = vrot.lane.b32.xlu1 %v7870_v39, %s5450_s25 }
 0x2f3   : > { %5030 = vrot.lane.b32.xlu0 %v9938_v46, %s5450_s25 }
 0x2f6   : > { %5035 = vrot.lane.b32.xlu1 %v7908_v1, %s5450_s25 }
 0x2f7   : > { %5040 = vrot.lane.b32.xlu0 %v7886_v37, %s5450_s25 }
 0x2fa   : > { %5045 = vrot.lane.b32.xlu1 %v7938_v22, %s5450_s25 }
 0x2fb   : > { %5050 = vrot.lane.b32.xlu0 %v5049_v63, %s5451_s26  ;;  %v5134_v63 = vpack.i.bf16 %v9950_v20, %v7980_v26 }
 0x2fc   : > { %v8180_v25 = vpop.permute.xlu1 %4785 }
 0x2fe   : > { %5055 = vrot.lane.b32.xlu1 %v5054_v23, %s5451_s26 }
 0x2ff   : > { %5060 = vrot.lane.b32.xlu0 %v9933_v41, %s5453_s7 }
 0x302   : > { %5065 = vrot.lane.b32.xlu1 %v9931_v19, %s5453_s7 }
 0x303   : > { %5070 = vrot.lane.b32.xlu0 %v5054_v23, %s5454_s10  ;;  %v8183_v54 = vpop.permute.xlu0 %4790 }
 0x306   : > { %5075 = vrot.lane.b32.xlu1 %v5074_v59, %s5454_s10 }
 0x307   : > { %5080 = vrot.lane.b32.xlu0 %v9931_v19, %s5456_s12 }
 0x308   : > { %v8191_v7 = vpop.permute.xlu1 %4795  ;;  %v8193_v57 = vpop.permute.xlu0 %4800 }
 0x309   : > { %v4797_v13 = vunpack.i.l.bf16 %v8191_v7 }
 0x30a   : > { %5085 = vrot.lane.b32.xlu1 %v9932_v18, %s5456_s12 }
 0x30b   : > { %5090 = vrot.lane.b32.xlu0 %v5074_v59, %s5451_s26  ;;  %v5154_v59 = vpack.i.bf16 %v9952_v4, %v7998_v36 }
 0x30c   : > { %v8198_v42 = vpop.permute.xlu1 %4805  ;;  %v8200_v51 = vpop.permute.xlu0 %4810 }
 0x30e   : > { %5095 = vrot.lane.b32.xlu1 %v5094_v6, %s5451_s26 }
 0x30f   : > { %5100 = vrot.lane.b32.xlu0 %v9932_v18, %s5453_s7 }
 0x310   : > { %v8207_v45 = vpop.permute.xlu1 %4815  ;;  %v8209_v14 = vpop.permute.xlu0 %4820 }
 0x312   : > { %5105 = vrot.lane.b32.xlu1 %v9935_v40, %s5453_s7 }
 0x313   : > { %5110 = vrot.lane.b32.xlu0 %v5094_v6, %s5454_s10 }
 0x314   : > { %v8214_v60 = vpop.permute.xlu1 %4825  ;;  %v8216_v58 = vpop.permute.xlu0 %4830 }
 0x315   : > { %9943 = vst [vmem:[#allocation18_spill] sm:$0xff] %v8214_v60  ;;  %9944 = vst [vmem:[#allocation2_spill] sm:$0xff] %v8216_v58 }
 0x316   : > { %5115 = vrot.lane.b32.xlu1 %v5114_v61, %s5454_s10 }
 0x317   : > { %5120 = vrot.lane.b32.xlu0 %v9935_v40, %s5456_s12 }
 0x318   : > { %v8223_v30 = vpop.permute.xlu1 %4835  ;;  %v8225_v19 = vpop.permute.xlu0 %4840 }
 0x319   : > { %9946 = vst [vmem:[#allocation16_spill] sm:$0xff] %v8223_v30  ;;  %9947 = vst [vmem:[#allocation30_spill] sm:$0xff] %v8225_v19  ;;  %v9954_v30 = vld [vmem:[#allocation13_spill] sm:$0xff] }
 0x31a   : > { %5125 = vrot.lane.b32.xlu1 %v9934_v8, %s5456_s12  ;;  %v5194_v58 = vpack.i.bf16 %v9954_v30, %v8020_v11  ;;  %v5214_v11 = vpack.i.bf16 %v7868_v3, %v8024_v12  ;;  %v5234_v12 = vpack.i.bf16 %v7856_v35, %v8035_v9  ;;  %v5254_v9 = vpack.i.bf16 %v7905_v17, %v8041_v5 }
 0x31b   : > { %5130 = vrot.lane.b32.xlu0 %v5114_v61, %s5451_s26  ;;  %v5274_v5 = vpack.i.bf16 %v8045_v43, %v8062_v33  ;;  %v5299_v43 = vpack.i.bf16 %v8066_v48, %v8074_v47 }
 0x31c   : > { %v8230_v18 = vpop.permute.xlu1 %4845  ;;  %v8232_v41 = vpop.permute.xlu0 %4850 }
 0x31d   : > { %9948 = vst [vmem:[#allocation41_spill] sm:$0xff] %v8230_v18  ;;  %9949 = vst [vmem:[#allocation49_spill] sm:$0xff] %v8232_v41 }
 0x31e   : > { %5135 = vrot.lane.b32.xlu1 %v5134_v63, %s5451_s26 }
 0x31f   : > { %5140 = vrot.lane.b32.xlu0 %v9934_v8, %s5453_s7 }
 0x320   : > { %v8239_v40 = vpop.permute.xlu1 %4855  ;;  %v8241_v38 = vpop.permute.xlu0 %4860 }
 0x321   : > { %9951 = vst [vmem:[#allocation17_spill] sm:$0xff] %v8239_v40  ;;  %v9953_v40 = vld [vmem:[#allocation39_spill] sm:$0xff] }
 0x322   : > { %5145 = vrot.lane.b32.xlu1 %v9937_v15, %s5453_s7  ;;  %v5174_v41 = vpack.i.bf16 %v9953_v40, %v8002_v16 }
 0x323   : > { %5150 = vrot.lane.b32.xlu0 %v5134_v63, %s5454_s10 }
 0x324   : > { %v8246_v23 = vpop.permute.xlu1 %4865  ;;  %v8248_v53 = vpop.permute.xlu0 %4870 }
 0x326   : > { %5155 = vrot.lane.b32.xlu1 %v5154_v59, %s5454_s10 }
 0x327   : > { %5160 = vrot.lane.b32.xlu0 %v9937_v15, %s5456_s12 }
 0x328   : > { %v8255_v8 = vpop.permute.xlu1 %4875  ;;  %v8257_v6 = vpop.permute.xlu0 %4880 }
 0x32a   : > { %5165 = vrot.lane.b32.xlu1 %v9936_v62, %s5456_s12 }
 0x32b   : > { %5170 = vrot.lane.b32.xlu0 %v5154_v59, %s5451_s26 }
 0x32c   : > { %v8262_v61 = vpop.permute.xlu1 %4885  ;;  %v8264_v63 = vpop.permute.xlu0 %4890 }
 0x32e   : > { %5175 = vrot.lane.b32.xlu1 %v5174_v41, %s5451_s26 }
 0x32f   : > { %5180 = vrot.lane.b32.xlu0 %v9936_v62, %s5453_s7 }
 0x330   : > { %v8271_v15 = vpop.permute.xlu1 %4895  ;;  %v8273_v18 = vpop.permute.xlu0 %4900 }
 0x332   : > { %5185 = vrot.lane.b32.xlu1 %v7870_v39, %s5453_s7 }
 0x333   : > { %5190 = vrot.lane.b32.xlu0 %v5174_v41, %s5454_s10 }
 0x334   : > { %v8278_v59 = vpop.permute.xlu1 %4905  ;;  %v8280_v19 = vpop.permute.xlu0 %4910 }
 0x336   : > { %5195 = vrot.lane.b32.xlu1 %v5194_v58, %s5454_s10 }
 0x337   : > { %5200 = vrot.lane.b32.xlu0 %v7870_v39, %s5456_s12 }
 0x338   : > { %v8287_v62 = vpop.permute.xlu1 %4915 }
 0x339   : > { %9955 = vst [vmem:[#allocation48_spill] sm:$0xff] %v8287_v62  ;;  %v8289_v60 = vpop.permute.xlu0 %4920 }
 0x33a   : > { %9956 = vst [vmem:[#allocation19_spill] sm:$0xff] %v8289_v60  ;;  %5205 = vrot.lane.b32.xlu1 %v9938_v46, %s5456_s12  ;;  %v4868_v60 = vunpack.i.h.bf16 %v8246_v23 }
 0x33b   : > { %5210 = vrot.lane.b32.xlu0 %v5194_v58, %s5451_s26 }
 0x33c   : > { %v8294_v41 = vpop.permute.xlu1 %4925 }
 0x33d   : > { %9957 = vst [vmem:[#allocation29_spill] sm:$0xff] %v8294_v41  ;;  %v8296_v16 = vpop.permute.xlu0 %4930 }
 0x33e   : > { %9958 = vst [vmem:[#allocation15_spill] sm:$0xff] %v8296_v16  ;;  %5215 = vrot.lane.b32.xlu1 %v5214_v11, %s5451_s26 }
 0x33f   : > { %5220 = vrot.lane.b32.xlu0 %v9938_v46, %s5453_s7 }
 0x340   : > { %v8303_v39 = vpop.permute.xlu1 %4935 }
 0x341   : > { %9959 = vst [vmem:[#allocation7_spill] sm:$0xff] %v8303_v39  ;;  %v8305_v30 = vpop.permute.xlu0 %4940 }
 0x342   : > { %9960 = vst [vmem:[#allocation12_spill] sm:$0xff] %v8305_v30  ;;  %5225 = vrot.lane.b32.xlu1 %v7908_v1, %s5453_s7 }
 0x343   : > { %5230 = vrot.lane.b32.xlu0 %v5214_v11, %s5454_s10 }
 0x344   : > { %v8310_v58 = vpop.permute.xlu1 %4945 }
 0x345   : > { %9961 = vst [vmem:[#allocation23_spill] sm:$0xff] %v8310_v58  ;;  %v8312_v16 = vpop.permute.xlu0 %4950 }
 0x346   : > { %9962 = vst [vmem:[#allocation28_spill] sm:$0xff] %v8312_v16  ;;  %5235 = vrot.lane.b32.xlu1 %v5234_v12, %s5454_s10 }
 0x347   : > { %5240 = vrot.lane.b32.xlu0 %v7908_v1, %s5456_s12 }
 0x348   : > { %v8319_v46 = vpop.permute.xlu1 %4955 }
 0x349   : > { %9963 = vst [vmem:[#allocation50_spill] sm:$0xff] %v8319_v46  ;;  %v8321_v3 = vpop.permute.xlu0 %4960 }
 0x34a   : > { %9964 = vst [vmem:[#allocation22_spill] sm:$0xff] %v8321_v3  ;;  %5245 = vrot.lane.b32.xlu1 %v7886_v37, %s5456_s12 }
 0x34b   : > { %5250 = vrot.lane.b32.xlu0 %v5234_v12, %s5451_s26 }
 0x34c   : > { %v8326_v11 = vpop.permute.xlu1 %4965 }
 0x34d   : > { %9965 = vst [vmem:[#allocation6_spill] sm:$0xff] %v8326_v11  ;;  %v8328_v16 = vpop.permute.xlu0 %4970 }
 0x34e   : > { %9966 = vst [vmem:[#allocation35_spill] sm:$0xff] %v8328_v16  ;;  %5255 = vrot.lane.b32.xlu1 %v5254_v9, %s5451_s26 }
 0x34f   : > { %5260 = vrot.lane.b32.xlu0 %v7886_v37, %s5453_s7 }
 0x350   : > { %v8335_v1 = vpop.permute.xlu1 %4975 }
 0x351   : > { %9967 = vst [vmem:[#allocation32_spill] sm:$0xff] %v8335_v1  ;;  %v8337_v3 = vpop.permute.xlu0 %4985  ;;  %v9971_v1 = vld [vmem:[#allocation21_spill] sm:$0xff] }
 0x352   : > { %9968 = vst [vmem:[#allocation33_spill] sm:$0xff] %v8337_v3  ;;  %5265 = vrot.lane.b32.xlu1 %v7938_v22, %s5453_s7  ;;  %v2127_v11 = vrot.slane %v9971_v1, 7  ;;  %v2191_v46 = vrot.slane %v9971_v1, 1 }
 0x353   : > { %5270 = vrot.lane.b32.xlu0 %v5254_v9, %s5454_s10  ;;  %v9970_v9 = vld [vmem:[#allocation24_spill] sm:$0xff] }
 0x354   : > { %v8342_v12 = vpop.permute.xlu1 %4980  ;;  %v2111_v17 = vrot.slane %v9970_v9, 7 }
 0x355   : > { %9969 = vst [vmem:[#allocation3_spill] sm:$0xff] %v8342_v12  ;;  %v8344_v16 = vpop.permute.xlu0 %4990  ;;  %v2175_v12 = vrot.slane %v9970_v9, 1 }
 0x356   : > { %5275 = vrot.lane.b32.xlu1 %v5274_v5, %s5454_s10  ;;  %v2159_v35 = vsel %vm298_vm0, %v2127_v11, %v2111_v17  ;;  %v8381_v30 = vsel %vm298_vm0, %v2111_v17, %v2127_v11  ;;  %v4787_v11 = vunpack.i.l.bf16 %v8180_v25 }
 0x357   : > { %5280 = vrot.lane.b32.xlu0 %v7938_v22, %s5456_s12  ;;  %v2207_v9 = vsel %vm363_vm1, %v2175_v12, %v2191_v46  ;;  %9974 = vst [vmem:[#allocation37_spill] sm:$0xff] %v8381_v30 }
 0x358   : > { %v8353_v3 = vpop.permute.xlu1 %4995  ;;  %v8385_v47 = vsel %vm397_vm3, %v2207_v9, %v2159_v35 }
 0x359   : > { %v8351_v37 = vpop.permute.xlu0 %5000  ;;  %9975 = vst [vmem:[#allocation8_spill] sm:$0xff] %v8385_v47  ;;  %v8399_v17 = vpack.i.bf16 %v8381_v30, %v8385_v47  ;;  %v4793_v47 = vunpack.i.h.bf16 %v8183_v54 }
 0x35a   : > { %5285 = vrot.lane.b32.xlu1 %v8097_v55, %s5456_s12 }
 0x35b   : > { %5290 = vrot.lane.b32.xlu0 %v8097_v55, %s5450_s25 }
 0x35c   : > { %v8365_v33 = vpop.permute.xlu1 %5005 }
 0x35d   : > { %v8363_v22 = vpop.permute.xlu0 %5010 }
 0x35e   : > { %5295 = vrot.lane.b32.xlu1 %v5274_v5, %s5451_s26  ;;  %v2223_v5 = vsel %vm363_vm1, %v2191_v46, %v2175_v12  ;;  %v4788_v46 = vunpack.i.h.bf16 %v8180_v25  ;;  %v4802_v25 = vunpack.i.l.bf16 %v8193_v57 }
 0x35f   : > { %5300 = vrot.lane.b32.xlu0 %v5299_v43, %s5451_s26  ;;  %v2286_v35 = vsel %vm436_vm2, %v8381_v30, %v2223_v5  ;;  %v4803_v5 = vunpack.i.h.bf16 %v8193_v57  ;;  %v3126_v57 = vsel %vm1307_vm5, %v9939_v29, %v4793_v47  ;;  %v4997_v47 = vunpack.i.l.bf16 %v8353_v3 }
 0x360   : > { %v8377_v58 = vpop.permute.xlu1 %5015  ;;  %v8413_v12 = vpack.i.bf16 %v2286_v35, %v2207_v9  ;;  %v4993_v9 = vunpack.i.h.bf16 %v8344_v16  ;;  %v4992_v35 = vunpack.i.l.bf16 %v8344_v16  ;;  %v4808_v29 = vunpack.i.h.bf16 %v8198_v42 }
 0x361   : > { %v8375_v1 = vpop.permute.xlu0 %5020  ;;  %9973 = vst [vmem:[#allocation38_spill] sm:$0xff] %v8377_v58 }
 0x362   : > { %9972 = vst [vmem:[#allocation11_spill] sm:$0xff] %v8375_v1  ;;  %5305 = vrot.lane.b32.xlu1 %v8097_v55, %s5453_s7 }
 0x363   : > { %5310 = vrot.lane.b32.xlu0 %v8102_v50, %s5453_s7 }
 0x364   : > { %v8395_v39 = vpop.permute.xlu1 %5025 }
 0x365   : > { %v8393_v48 = vpop.permute.xlu0 %5030  ;;  %9977 = vst [vmem:[#allocation20_spill] sm:$0xff] %v8395_v39  ;;  %v9980_v39 = vld [vmem:[#allocation45_spill] sm:$0xff] }
 0x366   : > { %9976 = vst [vmem:[#allocation25_spill] sm:$0xff] %v8393_v48  ;;  %5315 = vrot.lane.b32.xlu1 %v5299_v43, %s5454_s10  ;;  %v4792_v48 = vunpack.i.l.bf16 %v8183_v54  ;;  %v4798_v43 = vunpack.i.h.bf16 %v8191_v7 }
 0x367   : > { %5320 = vrot.lane.b32.xlu0 %v8399_v17, %s5454_s10 }
 0x368   : > { %v8409_v28 = vpop.permute.xlu1 %5035  ;;  %v3125_v7 = vsel %vm1307_vm5, %v7891_v56, %v4792_v48  ;;  %v8439_v16 = vsel %vm1307_vm5, %v9941_v0, %v4798_v43  ;;  %v8451_v56 = vsel %vm1307_vm5, %v9942_v44, %v4803_v5  ;;  %v8455_v48 = vsel %vm1307_vm5, %v7954_v34, %v4802_v25 }
 0x369   : > { %v8407_v55 = vpop.permute.xlu0 %5040  ;;  %9979 = vst [vmem:[#allocation14_spill] sm:$0xff] %v8409_v28  ;;  %v3124_v28 = vsel %vm1307_vm5, %v9940_v10, %v4788_v46 }
 0x36a   : > { %9978 = vst [vmem:[#allocation34_spill] sm:$0xff] %v8407_v55  ;;  %5325 = vrot.lane.b32.xlu1 %v9930_v52, %s5455_s11  ;;  %v3123_v55 = vsel %vm1307_vm5, %v7927_v2, %v4787_v11  ;;  %v8447_v2 = vsel %vm1307_vm5, %v7943_v31, %v4797_v13  ;;  %v8460_v10 = vsel %vm1338_vm6, %v3124_v28, %v4993_v9  ;;  %v4998_v31 = vunpack.i.h.bf16 %v8353_v3 }
 0x36b   : > { %5330 = vrot.lane.b32.xlu0 %v9980_v39, %s5455_s11  ;;  %v8463_v0 = vsel %vm1338_vm6, %v3123_v55, %v4992_v35  ;;  %v4863_v13 = vunpack.i.h.bf16 %v8241_v38  ;;  %v4862_v28 = vunpack.i.l.bf16 %v8241_v38  ;;  %v4807_v3 = vunpack.i.l.bf16 %v8198_v42 }
 0x36c   : > { %v8427_v54 = vpop.permute.xlu1 %5045  ;;  %v4813_v55 = vunpack.i.h.bf16 %v8200_v51  ;;  %v3155_v9 = vsel %vm1338_vm6, %v3125_v7, %v4997_v47  ;;  %v3156_v35 = vsel %vm1338_vm6, %v3126_v57, %v4998_v31  ;;  %v8494_v47 = vsel %vm1307_vm5, %v9945_v49, %v4808_v29 }
 0x36d   : > { %v5051_v30 = vpop.permute.xlu0 %5050  ;;  %9981 = vst [vmem:[#allocation46_spill] sm:$0xff] %v8427_v54 }
 0x36e   : > { %v5053_v52 = vunpack.i.h.bf16 %v5051_v30  ;;  %v5052_v41 = vunpack.i.l.bf16 %v5051_v30  ;;  %5335 = vrot.lane.b32.xlu1 %v8102_v50, %s5456_s12 }
 0x36f   : > { %5340 = vrot.lane.b32.xlu0 %v8413_v12, %s5456_s12 }
 0x370   : > { %v5056_v46 = vpop.permute.xlu1 %5055  ;;  %v3184_v44 = vsel %vm1369_vm7, %v8460_v10, %v5053_v52  ;;  %v3183_v34 = vsel %vm1369_vm7, %v8463_v0, %v5052_v41  ;;  %v4867_v41 = vunpack.i.l.bf16 %v8246_v23 }
 0x371   : > { %v5061_v30 = vpop.permute.xlu0 %5060  ;;  %v5058_v11 = vunpack.i.h.bf16 %v5056_v46  ;;  %v5057_v43 = vunpack.i.l.bf16 %v5056_v46  ;;  %v3215_v38 = vsel %vm1402_vm8, %v3183_v34, %v4862_v28  ;;  %v3216_v52 = vsel %vm1402_vm8, %v3184_v44, %v4863_v13 }
 0x372   : > { %v5063_v5 = vunpack.i.h.bf16 %v5061_v30  ;;  %v5062_v25 = vunpack.i.l.bf16 %v5061_v30  ;;  %5345 = vrot.lane.b32.xlu1 %v8102_v50, %s5450_s25  ;;  %v4873_v34 = vunpack.i.h.bf16 %v8248_v53 }
 0x373   : > { %5350 = vrot.lane.b32.xlu0 %v8413_v12, %s5450_s25  ;;  %v3185_v30 = vsel %vm1369_vm7, %v3155_v9, %v5057_v43  ;;  %v3186_v50 = vsel %vm1369_vm7, %v3156_v35, %v5058_v11  ;;  %v8517_v9 = vsel %vm1307_vm5, %v7969_v24, %v4807_v3  ;;  %v4878_v35 = vunpack.i.h.bf16 %v8255_v8 }
 0x374   : > { %v5066_v54 = vpop.permute.xlu1 %5065  ;;  %v3248_v62 = vsel %vm1435_vm9, %v3216_v52, %v5063_v5  ;;  %v3247_v7 = vsel %vm1435_vm9, %v3215_v38, %v5062_v25  ;;  %v3217_v23 = vsel %vm1402_vm8, %v3185_v30, %v4867_v41  ;;  %v3218_v11 = vsel %vm1402_vm8, %v3186_v50, %v4868_v60 }
 0x375   : > { %v5071_v46 = vpop.permute.xlu0 %5070  ;;  %v5067_v58 = vunpack.i.l.bf16 %v5066_v54  ;;  %v5068_v57 = vunpack.i.h.bf16 %v5066_v54  ;;  %v4872_v54 = vunpack.i.l.bf16 %v8248_v53  ;;  %v4812_v25 = vunpack.i.l.bf16 %v8200_v51 }
 0x376   : > { %v5073_v1 = vunpack.i.h.bf16 %v5071_v46  ;;  %v5072_v42 = vunpack.i.l.bf16 %v5071_v46  ;;  %5355 = vrot.lane.b32.xlu1 %v8399_v17, %s5451_s26  ;;  %v4818_v3 = vunpack.i.h.bf16 %v8207_v45 }
 0x377   : > { %5360 = vrot.lane.b32.xlu0 %v8126_v27, %s5451_s26  ;;  %v3249_v43 = vsel %vm1435_vm9, %v3217_v23, %v5067_v58  ;;  %v5003_v23 = vunpack.i.h.bf16 %v8351_v37 }
 0x378   : > { %v3279_v31 = vsel %vm1468_vm10, %v3247_v7, %v5072_v42  ;;  %v3280_v44 = vsel %vm1468_vm10, %v3248_v62, %v5073_v1  ;;  %v5076_v17 = vpop.permute.xlu1 %5075  ;;  %v3250_v62 = vsel %vm1435_vm9, %v3218_v11, %v5068_v57  ;;  %v8523_v57 = vsel %vm1307_vm5, %v9950_v20, %v4813_v55 }
 0x379   : > { %v5081_v13 = vpop.permute.xlu0 %5080  ;;  %v5078_v49 = vunpack.i.h.bf16 %v5076_v17  ;;  %v5077_v29 = vunpack.i.l.bf16 %v5076_v17  ;;  %v3311_v60 = vsel %vm1501_vm11, %v3279_v31, %v4872_v54  ;;  %v3312_v53 = vsel %vm1501_vm11, %v3280_v44, %v4873_v34 }
 0x37a   : > { %v5083_v28 = vunpack.i.h.bf16 %v5081_v13  ;;  %v5082_v5 = vunpack.i.l.bf16 %v5081_v13  ;;  %5365 = vrot.lane.b32.xlu1 %v9980_v39, %s5452_s27  ;;  %v4877_v39 = vunpack.i.l.bf16 %v8255_v8  ;;  %v8532_v8 = vsel %vm1307_vm5, %v7980_v26, %v4812_v25 }
 0x37b   : > { %5370 = vrot.lane.b32.xlu0 %v8112_v21, %s5452_s27  ;;  %v3281_v58 = vsel %vm1468_vm10, %v3249_v43, %v5077_v29  ;;  %v3282_v1 = vsel %vm1468_vm10, %v3250_v62, %v5078_v49  ;;  %v4817_v55 = vunpack.i.l.bf16 %v8207_v45  ;;  %v5002_v34 = vunpack.i.l.bf16 %v8351_v37 }
 0x37c   : > { %v3343_v41 = vsel %vm1534_vm12, %v3311_v60, %v5082_v5  ;;  %v3344_v51 = vsel %vm1534_vm12, %v3312_v53, %v5083_v28  ;;  %v5086_v52 = vpop.permute.xlu1 %5085  ;;  %v3313_v31 = vsel %vm1501_vm11, %v3281_v58, %v4877_v39  ;;  %v3314_v24 = vsel %vm1501_vm11, %v3282_v1, %v4878_v35 }
 0x37d   : > { %v5091_v38 = vpop.permute.xlu0 %5090  ;;  %v3375_v30 = vpack.c.bf16 %v3344_v51, %v3343_v41  ;;  %v5088_v42 = vunpack.i.h.bf16 %v5086_v52  ;;  %v5087_v7 = vunpack.i.l.bf16 %v5086_v52  ;;  %v4883_v5 = vunpack.i.h.bf16 %v8257_v6 }
 0x37e   : > { %v5093_v46 = vunpack.i.h.bf16 %v5091_v38  ;;  %v5092_v50 = vunpack.i.l.bf16 %v5091_v38  ;;  %5375 = vrot.lane.b32.xlu1 %v8413_v12, %s5453_s7  ;;  %v4882_v12 = vunpack.i.l.bf16 %v8257_v6  ;;  %v4823_v37 = vunpack.i.h.bf16 %v8209_v14 }
 0x37f   : > { %5380 = vrot.lane.b32.xlu0 %v8128_v32, %s5453_s7  ;;  %4119 = vmatprep.mubr.msk.bf16.mxu1 %vm1604_vm13, %v3375_v30  ;;  %v3345_v44 = vsel %vm1534_vm12, %v3313_v31, %v5087_v7  ;;  %v3346_v20 = vsel %vm1534_vm12, %v3314_v24, %v5088_v42  ;;  %v4888_v25 = vunpack.i.h.bf16 %v8262_v61  ;;  %v3158_v6 = vsel %vm1338_vm6, %v8439_v16, %v5003_v23 }
 0x380   : > { %v3376_v54 = vpack.c.bf16 %v3346_v20, %v3345_v44  ;;  %v5096_v43 = vpop.permute.xlu1 %5095  ;;  %v3188_v26 = vsel %vm1369_vm7, %v8460_v10, %v5093_v46  ;;  %v3187_v13 = vsel %vm1369_vm7, %v8463_v0, %v5092_v50  ;;  %v4822_v10 = vunpack.i.l.bf16 %v8209_v14 }
 0x381   : > { %v5101_v11 = vpop.permute.xlu0 %5100  ;;  %v5098_v17 = vunpack.i.h.bf16 %v5096_v43  ;;  %v5097_v28 = vunpack.i.l.bf16 %v5096_v43  ;;  %v4887_v0 = vunpack.i.l.bf16 %v8262_v61  ;;  %v3157_v62 = vsel %vm1338_vm6, %v8447_v2, %v5002_v34 }
 0x382   : > { %v5103_v49 = vunpack.i.h.bf16 %v5101_v11  ;;  %v5102_v29 = vunpack.i.l.bf16 %v5101_v11  ;;  %4120 = vmatmul.mubr.msk.bf16.vlgmr.msra.gmra.mrb[0].mxu1 %vm1604_vm13, %v3376_v54  ;;  %5385 = vrot.lane.b32.xlu1 %v8126_v27, %s5454_s10  ;;  %v3220_v60 = vsel %vm1402_vm8, %v3188_v26, %v4883_v5  ;;  %v8569_v2 = vsel %vm1307_vm5, %v9952_v4, %v4818_v3 }
 0x383   : > { %5390 = vrot.lane.b32.xlu0 %v8112_v21, %s5455_s11  ;;  %v3219_v21 = vsel %vm1402_vm8, %v3187_v13, %v4882_v12  ;;  %v3190_v1 = vsel %vm1369_vm7, %v3158_v6, %v5098_v17  ;;  %v3189_v41 = vsel %vm1369_vm7, %v3157_v62, %v5097_v28  ;;  %v4893_v38 = vunpack.i.h.bf16 %v8264_v63 }
 0x384   : > { %v5106_v58 = vpop.permute.xlu1 %5105  ;;  %v3251_v27 = vsel %vm1435_vm9, %v3219_v21, %v5102_v29  ;;  %v3252_v35 = vsel %vm1435_vm9, %v3220_v60, %v5103_v49  ;;  %v4892_v46 = vunpack.i.l.bf16 %v8264_v63  ;;  %v4898_v50 = vunpack.i.h.bf16 %v8271_v15 }
 0x385   : > { %v5111_v53 = vpop.permute.xlu0 %5110  ;;  %v5108_v16 = vunpack.i.h.bf16 %v5106_v58  ;;  %v5107_v39 = vunpack.i.l.bf16 %v5106_v58  ;;  %v3221_v42 = vsel %vm1402_vm8, %v3189_v41, %v4887_v0  ;;  %v3222_v7 = vsel %vm1402_vm8, %v3190_v1, %v4888_v25 }
 0x386   : > { %v5113_v61 = vunpack.i.h.bf16 %v5111_v53  ;;  %v5112_v51 = vunpack.i.l.bf16 %v5111_v53  ;;  %5395 = vrot.lane.b32.xlu1 %v8128_v32, %s5456_s12  ;;  %v4897_v13 = vunpack.i.l.bf16 %v8271_v15  ;;  %v5008_v17 = vunpack.i.h.bf16 %v8365_v33 }
 0x387   : > { %v3253_v23 = vsel %vm1435_vm9, %v3221_v42, %v5107_v39  ;;  %v3254_v34 = vsel %vm1435_vm9, %v3222_v7, %v5108_v16  ;;  %v5007_v28 = vunpack.i.l.bf16 %v8365_v33  ;;  %v8595_v62 = vsel %vm1307_vm5, %v7998_v36, %v4817_v55 }
 0x388   : > { %v3283_v52 = vsel %vm1468_vm10, %v3251_v27, %v5112_v51  ;;  %v3284_v30 = vsel %vm1468_vm10, %v3252_v35, %v5113_v61  ;;  %v5116_v4 = vpop.permute.xlu1 %5115  ;;  %v8599_v15 = vsel %vm1307_vm5, %v9953_v40, %v4823_v37  ;;  %v4903_v60 = vunpack.i.h.bf16 %v8273_v18 }
 0x389   : > { %v5121_v31 = vpop.permute.xlu0 %5120  ;;  %v5118_v44 = vunpack.i.h.bf16 %v5116_v4  ;;  %v5117_v20 = vunpack.i.l.bf16 %v5116_v4  ;;  %v3315_v32 = vsel %vm1501_vm11, %v3283_v52, %v4892_v46  ;;  %v3316_v63 = vsel %vm1501_vm11, %v3284_v30, %v4893_v38  ;;  %v9982_v30 = vld [vmem:[#allocation48_spill] sm:$0xff] }
 0x38a   : > { %v5123_v24 = vunpack.i.h.bf16 %v5121_v31  ;;  %v5122_v3 = vunpack.i.l.bf16 %v5121_v31  ;;  %v5013_v53 = vunpack.i.h.bf16 %v8363_v22  ;;  %v5012_v36 = vunpack.i.l.bf16 %v8363_v22 }
 0x38b   : > { %v3285_v43 = vsel %vm1468_vm10, %v3253_v23, %v5117_v20  ;;  %v3286_v26 = vsel %vm1468_vm10, %v3254_v34, %v5118_v44  ;;  %v3160_v40 = vsel %vm1338_vm6, %v8451_v56, %v5008_v17  ;;  %v3159_v55 = vsel %vm1338_vm6, %v8455_v48, %v5007_v28  ;;  %v9983_v34 = vld [vmem:[#allocation19_spill] sm:$0xff] }
 0x38c   : > { %v3347_v54 = vsel %vm1534_vm12, %v3315_v32, %v5122_v3  ;;  %v3348_v11 = vsel %vm1534_vm12, %v3316_v63, %v5123_v24  ;;  %v5126_v49 = vpop.permute.xlu1 %5125  ;;  %v3317_v21 = vsel %vm1501_vm11, %v3285_v43, %v4897_v13  ;;  %v3318_v33 = vsel %vm1501_vm11, %v3286_v26, %v4898_v50 }
 0x38d   : > { %v3377_v5 = vpack.c.bf16 %v3348_v11, %v3347_v54  ;;  %v5131_v12 = vpop.permute.xlu0 %5130  ;;  %v5128_v0 = vunpack.i.h.bf16 %v5126_v49  ;;  %v5127_v6 = vunpack.i.l.bf16 %v5126_v49  ;;  %v4902_v16 = vunpack.i.l.bf16 %v8273_v18  ;;  %v9984_v11 = vld [vmem:[#allocation38_spill] sm:$0xff] }
 0x38e   : > { %v5133_v29 = vunpack.i.h.bf16 %v5131_v12  ;;  %v5132_v25 = vunpack.i.l.bf16 %v5131_v12  ;;  %v4908_v39 = vunpack.i.h.bf16 %v8278_v59  ;;  %v4907_v56 = vunpack.i.l.bf16 %v8278_v59 }
 0x38f   : > { %4123 = vmatprep.mubr.msk.bf16.mxu1 %vm1604_vm13, %v3377_v5  ;;  %v3349_v45 = vsel %vm1534_vm12, %v3317_v21, %v5127_v6  ;;  %v3350_v58 = vsel %vm1534_vm12, %v3318_v33, %v5128_v0  ;;  %v4913_v48 = vunpack.i.h.bf16 %v8280_v19  ;;  %v4912_v52 = vunpack.i.l.bf16 %v8280_v19 }
 0x390   : > { %v3378_v37 = vpack.c.bf16 %v3350_v58, %v3349_v45  ;;  %v5136_v41 = vpop.permute.xlu1 %5135  ;;  %v3191_v61 = vsel %vm1369_vm7, %v3159_v55, %v5132_v25  ;;  %v3192_v51 = vsel %vm1369_vm7, %v3160_v40, %v5133_v29  ;;  %v4918_v46 = vunpack.i.h.bf16 %v9982_v30  ;;  %v9985_v40 = vld [vmem:[#allocation11_spill] sm:$0xff] }
 0x391   : > { %v5141_v1 = vpop.permute.xlu0 %5140  ;;  %v5138_v27 = vunpack.i.h.bf16 %v5136_v41  ;;  %v5137_v35 = vunpack.i.l.bf16 %v5136_v41  ;;  %v3162_v50 = vsel %vm1338_vm6, %v8494_v47, %v5013_v53  ;;  %v3161_v18 = vsel %vm1338_vm6, %v8517_v9, %v5012_v36 }
 0x392   : > { %v5143_v22 = vunpack.i.h.bf16 %v5141_v1  ;;  %v5142_v38 = vunpack.i.l.bf16 %v5141_v1  ;;  %4124 = vmatmul.mubr.msk.bf16.gmra.mrb[4].mxu1 %vm1604_vm13, %v3378_v37  ;;  %v3223_v42 = vsel %vm1402_vm8, %v3191_v61, %v4902_v16  ;;  %v3224_v7 = vsel %vm1402_vm8, %v3192_v51, %v4903_v60 }
 0x393   : > { %v3194_v59 = vsel %vm1369_vm7, %v3162_v50, %v5138_v27  ;;  %v3193_v24 = vsel %vm1369_vm7, %v3161_v18, %v5137_v35  ;;  %v4917_v9 = vunpack.i.l.bf16 %v9982_v30  ;;  %v4923_v32 = vunpack.i.h.bf16 %v9983_v34 }
 0x394   : > { %v5146_v4 = vpop.permute.xlu1 %5145  ;;  %v3255_v44 = vsel %vm1435_vm9, %v3223_v42, %v5142_v38  ;;  %v3256_v20 = vsel %vm1435_vm9, %v3224_v7, %v5143_v22  ;;  %v5018_v43 = vunpack.i.h.bf16 %v9984_v11  ;;  %v5017_v26 = vunpack.i.l.bf16 %v9984_v11 }
 0x395   : > { %v5151_v31 = vpop.permute.xlu0 %5150  ;;  %v5148_v47 = vunpack.i.h.bf16 %v5146_v4  ;;  %v5147_v23 = vunpack.i.l.bf16 %v5146_v4  ;;  %v3225_v13 = vsel %vm1402_vm8, %v3193_v24, %v4907_v56  ;;  %v3226_v17 = vsel %vm1402_vm8, %v3194_v59, %v4908_v39  ;;  %v9987_v4 = vld [vmem:[#allocation29_spill] sm:$0xff] }
 0x396   : > { %v5153_v3 = vunpack.i.h.bf16 %v5151_v31  ;;  %v5152_v19 = vunpack.i.l.bf16 %v5151_v31  ;;  %v4922_v36 = vunpack.i.l.bf16 %v9983_v34  ;;  %v5023_v55 = vunpack.i.h.bf16 %v9985_v40 }
 0x397   : > { %v3257_v0 = vsel %vm1435_vm9, %v3225_v13, %v5147_v23  ;;  %v3258_v6 = vsel %vm1435_vm9, %v3226_v17, %v5148_v47  ;;  %v5022_v37 = vunpack.i.l.bf16 %v9985_v40  ;;  %v3164_v39 = vsel %vm1338_vm6, %v8523_v57, %v5018_v43  ;;  %v9986_v57 = vld [vmem:[#allocation26_spill] sm:$0xff]  ;;  %v9990_v13 = vld [vmem:[#allocation15_spill] sm:$0xff] }
 0x398   : > { %v3287_v63 = vsel %vm1468_vm10, %v3255_v44, %v5152_v19  ;;  %v3288_v54 = vsel %vm1468_vm10, %v3256_v20, %v5153_v3  ;;  %v5156_v5 = vpop.permute.xlu1 %5155  ;;  %v3163_v22 = vsel %vm1338_vm6, %v8532_v8, %v5017_v26  ;;  %v8666_v18 = vsel %vm1307_vm5, %v9986_v57, %v4822_v10  ;;  %v9988_v47 = vld [vmem:[#allocation18_spill] sm:$0xff] }
 0x399   : > { %v5161_v28 = vpop.permute.xlu0 %5160  ;;  %v5158_v29 = vunpack.i.h.bf16 %v5156_v5  ;;  %v5157_v25 = vunpack.i.l.bf16 %v5156_v5  ;;  %v3319_v21 = vsel %vm1501_vm11, %v3287_v63, %v4912_v52  ;;  %v3320_v33 = vsel %vm1501_vm11, %v3288_v54, %v4913_v48  ;;  %v9989_v63 = vld [vmem:[#allocation2_spill] sm:$0xff] }
 0x39a   : > { %v5163_v12 = vunpack.i.h.bf16 %v5161_v28  ;;  %v5162_v49 = vunpack.i.l.bf16 %v5161_v28  ;;  %v4928_v59 = vunpack.i.h.bf16 %v9987_v4  ;;  %v4927_v24 = vunpack.i.l.bf16 %v9987_v4 }
 0x39b   : > { %v3289_v45 = vsel %vm1468_vm10, %v3257_v0, %v5157_v25  ;;  %v3290_v58 = vsel %vm1468_vm10, %v3258_v6, %v5158_v29  ;;  %v3166_v14 = vsel %vm1338_vm6, %v8569_v2, %v5023_v55  ;;  %v3165_v10 = vsel %vm1338_vm6, %v8595_v62, %v5022_v37  ;;  %v9991_v6 = vld [vmem:[#allocation13_spill] sm:$0xff] }
 0x39c   : > { %v3351_v60 = vsel %vm1534_vm12, %v3319_v21, %v5162_v49  ;;  %v3352_v53 = vsel %vm1534_vm12, %v3320_v33, %v5163_v12  ;;  %v5166_v61 = vpop.permute.xlu1 %5165  ;;  %v3321_v38 = vsel %vm1501_vm11, %v3289_v45, %v4917_v9  ;;  %v3322_v56 = vsel %vm1501_vm11, %v3290_v58, %v4918_v46  ;;  %v9992_v33 = vld [vmem:[#allocation7_spill] sm:$0xff] }
 0x39d   : > { %v3379_v1 = vpack.c.bf16 %v3352_v53, %v3351_v60  ;;  %v5171_v41 = vpop.permute.xlu0 %5170  ;;  %v5168_v35 = vunpack.i.h.bf16 %v5166_v61  ;;  %v5167_v16 = vunpack.i.l.bf16 %v5166_v61  ;;  %v4828_v23 = vunpack.i.h.bf16 %v9988_v47 }
 0x39e   : > { %v5173_v51 = vunpack.i.h.bf16 %v5171_v41  ;;  %v5172_v27 = vunpack.i.l.bf16 %v5171_v41  ;;  %v4827_v9 = vunpack.i.l.bf16 %v9988_v47  ;;  %v4833_v54 = vunpack.i.h.bf16 %v9989_v63 }
 0x39f   : > { %4127 = vmatprep.mubr.msk.bf16.mxu1 %vm1604_vm13, %v3379_v1  ;;  %v3353_v30 = vsel %vm1534_vm12, %v3321_v38, %v5167_v16  ;;  %v3354_v50 = vsel %vm1534_vm12, %v3322_v56, %v5168_v35  ;;  %v4832_v11 = vunpack.i.l.bf16 %v9989_v63  ;;  %v4933_v17 = vunpack.i.h.bf16 %v9990_v13  ;;  %v9994_v16 = vld [vmem:[#allocation20_spill] sm:$0xff] }
 0x3a0   : > { %v3195_v48 = vsel %vm1369_vm7, %v3163_v22, %v5172_v27  ;;  %v3196_v52 = vsel %vm1369_vm7, %v3164_v39, %v5173_v51  ;;  %v3380_v8 = vpack.c.bf16 %v3354_v50, %v3353_v30  ;;  %v5176_v31 = vpop.permute.xlu1 %5175  ;;  %v4932_v28 = vunpack.i.l.bf16 %v9990_v13 }
 0x3a1   : > { %v5181_v42 = vpop.permute.xlu0 %5180  ;;  %v3227_v46 = vsel %vm1402_vm8, %v3195_v48, %v4922_v36  ;;  %v3228_v7 = vsel %vm1402_vm8, %v3196_v52, %v4923_v32  ;;  %v5178_v3 = vunpack.i.h.bf16 %v5176_v31  ;;  %v5177_v19 = vunpack.i.l.bf16 %v5176_v31  ;;  %v9993_v36 = vld [vmem:[#allocation12_spill] sm:$0xff] }
 0x3a2   : > { %v5183_v44 = vunpack.i.h.bf16 %v5181_v42  ;;  %v5182_v20 = vunpack.i.l.bf16 %v5181_v42  ;;  %4128 = vmatmul.mubr.msk.bf16.gmra.mrb[8].mxu1 %vm1604_vm13, %v3380_v8  ;;  %v3140_v21 = vsel %vm1307_vm5, %v9991_v6, %v4828_v23  ;;  %v4938_v60 = vunpack.i.h.bf16 %v9992_v33 }
 0x3a3   : > { %v3198_v34 = vsel %vm1369_vm7, %v3166_v14, %v5178_v3  ;;  %v3197_v32 = vsel %vm1369_vm7, %v3165_v10, %v5177_v19  ;;  %v4937_v58 = vunpack.i.l.bf16 %v9992_v33  ;;  %v4943_v40 = vunpack.i.h.bf16 %v9993_v36  ;;  %v9995_v19 = vld [vmem:[#allocation25_spill] sm:$0xff] }
 0x3a4   : > { %v5186_v43 = vpop.permute.xlu1 %5185  ;;  %v3229_v62 = vsel %vm1402_vm8, %v3197_v32, %v4927_v24  ;;  %v3230_v26 = vsel %vm1402_vm8, %v3198_v34, %v4928_v59  ;;  %v3259_v49 = vsel %vm1435_vm9, %v3227_v46, %v5182_v20  ;;  %v3260_v29 = vsel %vm1435_vm9, %v3228_v7, %v5183_v44 }
 0x3a5   : > { %v5191_v2 = vpop.permute.xlu0 %5190  ;;  %v5188_v25 = vunpack.i.h.bf16 %v5186_v43  ;;  %v5187_v0 = vunpack.i.l.bf16 %v5186_v43  ;;  %v5028_v39 = vunpack.i.h.bf16 %v9994_v16  ;;  %v5027_v22 = vunpack.i.l.bf16 %v9994_v16 }
 0x3a6   : > { %v5193_v5 = vunpack.i.h.bf16 %v5191_v2  ;;  %v5192_v12 = vunpack.i.l.bf16 %v5191_v2  ;;  %v4942_v57 = vunpack.i.l.bf16 %v9993_v36  ;;  %v5033_v14 = vunpack.i.h.bf16 %v9995_v19  ;;  %v9996_v2 = vld [vmem:[#allocation4_spill] sm:$0xff] }
 0x3a7   : > { %v3261_v38 = vsel %vm1435_vm9, %v3229_v62, %v5187_v0  ;;  %v3262_v56 = vsel %vm1435_vm9, %v3230_v26, %v5188_v25  ;;  %v5032_v10 = vunpack.i.l.bf16 %v9995_v19  ;;  %v3168_v44 = vsel %vm1338_vm6, %v8599_v15, %v5028_v39  ;;  %v10005_v19 = vld [vmem:[#allocation14_spill] sm:$0xff] }
 0x3a8   : > { %v3291_v53 = vsel %vm1468_vm10, %v3259_v49, %v5192_v12  ;;  %v3292_v45 = vsel %vm1468_vm10, %v3260_v29, %v5193_v5  ;;  %v5196_v41 = vpop.permute.xlu1 %5195  ;;  %v3167_v20 = vsel %vm1338_vm6, %v8666_v18, %v5027_v22  ;;  %v3139_v43 = vsel %vm1307_vm5, %v9996_v2, %v4827_v9  ;;  %v9998_v9 = vld [vmem:[#allocation40_spill] sm:$0xff] }
 0x3a9   : > { %v5201_v55 = vpop.permute.xlu0 %5200  ;;  %v3323_v37 = vsel %vm1501_vm11, %v3291_v53, %v4932_v28  ;;  %v3324_v1 = vsel %vm1501_vm11, %v3292_v45, %v4933_v17  ;;  %v5198_v27 = vunpack.i.h.bf16 %v5196_v41  ;;  %v5197_v35 = vunpack.i.l.bf16 %v5196_v41  ;;  %v9997_v17 = vld [vmem:[#allocation23_spill] sm:$0xff]  ;;  %v10002_v22 = vld [vmem:[#allocation36_spill] sm:$0xff] }
 0x3aa   : > { %v5203_v61 = vunpack.i.h.bf16 %v5201_v55  ;;  %v5202_v51 = vunpack.i.l.bf16 %v5201_v55  ;;  %v4948_v28 = vunpack.i.h.bf16 %v9997_v17  ;;  %v4947_v5 = vunpack.i.l.bf16 %v9997_v17 }
 0x3ab   : > { %v3293_v30 = vsel %vm1468_vm10, %v3261_v38, %v5197_v35  ;;  %v3294_v50 = vsel %vm1468_vm10, %v3262_v56, %v5198_v27  ;;  %v3170_v29 = vsel %vm1338_vm6, %v3140_v21, %v5033_v14  ;;  %v3169_v25 = vsel %vm1338_vm6, %v3139_v43, %v5032_v10  ;;  %v10000_v21 = vld [vmem:[#allocation47_spill] sm:$0xff]  ;;  %v10003_v56 = vld [vmem:[#allocation50_spill] sm:$0xff] }
 0x3ac   : > { %v3355_v48 = vsel %vm1534_vm12, %v3323_v37, %v5202_v51  ;;  %v3356_v52 = vsel %vm1534_vm12, %v3324_v1, %v5203_v61  ;;  %v5206_v46 = vpop.permute.xlu1 %5205  ;;  %v3325_v7 = vsel %vm1501_vm11, %v3293_v30, %v4937_v58  ;;  %v3326_v31 = vsel %vm1501_vm11, %v3294_v50, %v4938_v60  ;;  %v9999_v60 = vld [vmem:[#allocation16_spill] sm:$0xff] }
 0x3ad   : > { %v3381_v8 = vpack.c.bf16 %v3356_v52, %v3355_v48  ;;  %v5211_v42 = vpop.permute.xlu0 %5210  ;;  %v5208_v24 = vunpack.i.h.bf16 %v5206_v46  ;;  %v5207_v3 = vunpack.i.l.bf16 %v5206_v46  ;;  %v3142_v33 = vsel %vm1307_vm5, %v9998_v9, %v4833_v54  ;;  %v10001_v54 = vld [vmem:[#allocation28_spill] sm:$0xff] }
 0x3ae   : > { %v5213_v4 = vunpack.i.h.bf16 %v5211_v42  ;;  %v5212_v59 = vunpack.i.l.bf16 %v5211_v42  ;;  %v4838_v53 = vunpack.i.h.bf16 %v9999_v60  ;;  %v3141_v36 = vsel %vm1307_vm5, %v10000_v21, %v4832_v11 }
 0x3af   : > { %4131 = vmatprep.mubr.msk.bf16.mxu1 %vm1604_vm13, %v3381_v8  ;;  %v3357_v34 = vsel %vm1534_vm12, %v3325_v7, %v5207_v3  ;;  %v3358_v32 = vsel %vm1534_vm12, %v3326_v31, %v5208_v24  ;;  %v4953_v61 = vunpack.i.h.bf16 %v10001_v54  ;;  %v4952_v51 = vunpack.i.l.bf16 %v10001_v54 }
 0x3b0   : > { %v3199_v47 = vsel %vm1369_vm7, %v3167_v20, %v5212_v59  ;;  %v3200_v23 = vsel %vm1369_vm7, %v3168_v44, %v5213_v4  ;;  %v3382_v62 = vpack.c.bf16 %v3358_v32, %v3357_v34  ;;  %v5216_v18 = vpop.permute.xlu1 %5215  ;;  %v3144_v38 = vsel %vm1307_vm5, %v10002_v22, %v4838_v53 }
 0x3b1   : > { %v5221_v26 = vpop.permute.xlu0 %5220  ;;  %v3231_v15 = vsel %vm1402_vm8, %v3199_v47, %v4942_v57  ;;  %v3232_v13 = vsel %vm1402_vm8, %v3200_v23, %v4943_v40  ;;  %v5218_v12 = vunpack.i.h.bf16 %v5216_v18  ;;  %v5217_v49 = vunpack.i.l.bf16 %v5216_v18  ;;  %v10004_v57 = vld [vmem:[#allocation22_spill] sm:$0xff] }
 0x3b2   : > { %v5223_v0 = vunpack.i.h.bf16 %v5221_v26  ;;  %v5222_v6 = vunpack.i.l.bf16 %v5221_v26  ;;  %4132 = vmatmul.mubr.msk.bf16.gmra.mrb[12].mxu1 %vm1604_vm13, %v3382_v62  ;;  %v4837_v40 = vunpack.i.l.bf16 %v9999_v60  ;;  %v4958_v48 = vunpack.i.h.bf16 %v10003_v56 }
 0x3b3   : > { %v3202_v45 = vsel %vm1369_vm7, %v3170_v29, %v5218_v12  ;;  %v3201_v58 = vsel %vm1369_vm7, %v3169_v25, %v5217_v49  ;;  %v4957_v50 = vunpack.i.l.bf16 %v10003_v56  ;;  %v4963_v8 = vunpack.i.h.bf16 %v10004_v57  ;;  %v10006_v12 = vld [vmem:[#allocation34_spill] sm:$0xff] }
 0x3b4   : > { %v5226_v37 = vpop.permute.xlu1 %5225  ;;  %v3233_v1 = vsel %vm1402_vm8, %v3201_v58, %v4947_v5  ;;  %v3234_v41 = vsel %vm1402_vm8, %v3202_v45, %v4948_v28  ;;  %v3263_v16 = vsel %vm1435_vm9, %v3231_v15, %v5222_v6  ;;  %v3264_v63 = vsel %vm1435_vm9, %v3232_v13, %v5223_v0  ;;  %v10007_v45 = vld [vmem:[#allocation27_spill] sm:$0xff] }
 0x3b5   : > { %v5231_v55 = vpop.permute.xlu0 %5230  ;;  %v5228_v39 = vunpack.i.h.bf16 %v5226_v37  ;;  %v5227_v11 = vunpack.i.l.bf16 %v5226_v37  ;;  %v5038_v14 = vunpack.i.h.bf16 %v10005_v19  ;;  %v5037_v10 = vunpack.i.l.bf16 %v10005_v19 }
 0x3b6   : > { %v5233_v27 = vunpack.i.h.bf16 %v5231_v55  ;;  %v5232_v35 = vunpack.i.l.bf16 %v5231_v55  ;;  %v4962_v2 = vunpack.i.l.bf16 %v10004_v57  ;;  %v5043_v49 = vunpack.i.h.bf16 %v10006_v12 }
 0x3b7   : > { %v3265_v44 = vsel %vm1435_vm9, %v3233_v1, %v5227_v11  ;;  %v3266_v20 = vsel %vm1435_vm9, %v3234_v41, %v5228_v39  ;;  %v5042_v29 = vunpack.i.l.bf16 %v10006_v12  ;;  %v3172_v25 = vsel %vm1338_vm6, %v3142_v33, %v5038_v14  ;;  %v10008_v1 = vld [vmem:[#allocation6_spill] sm:$0xff] }
 0x3b8   : > { %v3295_v52 = vsel %vm1468_vm10, %v3263_v16, %v5232_v35  ;;  %v3296_v30 = vsel %vm1468_vm10, %v3264_v63, %v5233_v27  ;;  %v5236_v31 = vpop.permute.xlu1 %5235  ;;  %v3171_v0 = vsel %vm1338_vm6, %v3141_v36, %v5037_v10  ;;  %v3143_v58 = vsel %vm1307_vm5, %v10007_v45, %v4837_v40  ;;  %v10011_v12 = vld [vmem:[#allocation30_spill] sm:$0xff] }
 0x3b9   : > { %v5241_v42 = vpop.permute.xlu0 %5240  ;;  %v3327_v46 = vsel %vm1501_vm11, %v3295_v52, %v4952_v51  ;;  %v3328_v7 = vsel %vm1501_vm11, %v3296_v30, %v4953_v61  ;;  %v5238_v24 = vunpack.i.h.bf16 %v5236_v31  ;;  %v5237_v3 = vunpack.i.l.bf16 %v5236_v31  ;;  %v10009_v52 = vld [vmem:[#allocation35_spill] sm:$0xff] }
 0x3ba   : > { %v5243_v4 = vunpack.i.h.bf16 %v5241_v42  ;;  %v5242_v59 = vunpack.i.l.bf16 %v5241_v42  ;;  %v4968_v41 = vunpack.i.h.bf16 %v10008_v1  ;;  %v4967_v54 = vunpack.i.l.bf16 %v10008_v1 }
 0x3bb   : > { %v3297_v34 = vsel %vm1468_vm10, %v3265_v44, %v5237_v3  ;;  %v3298_v32 = vsel %vm1468_vm10, %v3266_v20, %v5238_v24  ;;  %v3174_v27 = vsel %vm1338_vm6, %v3144_v38, %v5043_v49  ;;  %v3173_v35 = vsel %vm1338_vm6, %v3143_v58, %v5042_v29 }
 0x3bc   : > { %v3359_v47 = vsel %vm1534_vm12, %v3327_v46, %v5242_v59  ;;  %v3360_v23 = vsel %vm1534_vm12, %v3328_v7, %v5243_v4  ;;  %v5246_v26 = vpop.permute.xlu1 %5245  ;;  %v3329_v15 = vsel %vm1501_vm11, %v3297_v34, %v4957_v50  ;;  %v3330_v13 = vsel %vm1501_vm11, %v3298_v32, %v4958_v48 }
 0x3bd   : > { %v3383_v43 = vpack.c.bf16 %v3360_v23, %v3359_v47  ;;  %v5251_v62 = vpop.permute.xlu0 %5250  ;;  %v5248_v28 = vunpack.i.h.bf16 %v5246_v26  ;;  %v5247_v5 = vunpack.i.l.bf16 %v5246_v26  ;;  %v4973_v30 = vunpack.i.h.bf16 %v10009_v52  ;;  %v10010_v47 = vld [vmem:[#allocation32_spill] sm:$0xff] }
 0x3be   : > { %v5253_v18 = vunpack.i.h.bf16 %v5251_v62  ;;  %v5252_v17 = vunpack.i.l.bf16 %v5251_v62  ;;  %v4972_v38 = vunpack.i.l.bf16 %v10009_v52  ;;  %v4978_v23 = vunpack.i.h.bf16 %v10010_v47 }
 0x3bf   : > { %4135 = vmatprep.mubr.msk.bf16.mxu1 %vm1604_vm13, %v3383_v43  ;;  %v3361_v60 = vsel %vm1534_vm12, %v3329_v15, %v5247_v5  ;;  %v3362_v53 = vsel %vm1534_vm12, %v3330_v13, %v5248_v28  ;;  %v4977_v34 = vunpack.i.l.bf16 %v10010_v47  ;;  %v4843_v49 = vunpack.i.h.bf16 %v10011_v12 }
 0x3c0   : > { %v3203_v6 = vsel %vm1369_vm7, %v3171_v0, %v5252_v17  ;;  %v3204_v9 = vsel %vm1369_vm7, %v3172_v25, %v5253_v18  ;;  %v3384_v21 = vpack.c.bf16 %v3362_v53, %v3361_v60  ;;  %v5256_v36 = vpop.permute.xlu1 %5255  ;;  %v4842_v29 = vunpack.i.l.bf16 %v10011_v12 }
 0x3c1   : > { %v5261_v55 = vpop.permute.xlu0 %5260  ;;  %v3235_v37 = vsel %vm1402_vm8, %v3203_v6, %v4962_v2  ;;  %v3236_v33 = vsel %vm1402_vm8, %v3204_v9, %v4963_v8  ;;  %v5258_v61 = vunpack.i.h.bf16 %v5256_v36  ;;  %v5257_v51 = vunpack.i.l.bf16 %v5256_v36  ;;  %v10012_v6 = vld [vmem:[#allocation46_spill] sm:$0xff]  ;;  %v10014_v36 = vld [vmem:[#allocation44_spill] sm:$0xff] }
 0x3c2   : > { %v5263_v16 = vunpack.i.h.bf16 %v5261_v55  ;;  %v5262_v63 = vunpack.i.l.bf16 %v5261_v55  ;;  %4136 = vmatmul.mubr.msk.bf16.gmra.mrb[16].mxu1 %vm1604_vm13, %v3384_v21  ;;  %v5048_v9 = vunpack.i.h.bf16 %v10012_v6  ;;  %v5047_v60 = vunpack.i.l.bf16 %v10012_v6 }
 0x3c3   : > { %v3206_v40 = vsel %vm1369_vm7, %v3174_v27, %v5258_v61  ;;  %v3205_v39 = vsel %vm1369_vm7, %v3173_v35, %v5257_v51  ;;  %v3145_v1 = vsel %vm1307_vm5, %v10014_v36, %v4842_v29  ;;  %v10015_v61 = vld [vmem:[#allocation3_spill] sm:$0xff] }
 0x3c4   : > { %v5266_v22 = vpop.permute.xlu1 %5265  ;;  %v3237_v56 = vsel %vm1402_vm8, %v3205_v39, %v4967_v54  ;;  %v3238_v48 = vsel %vm1402_vm8, %v3206_v40, %v4968_v41  ;;  %v3267_v8 = vsel %vm1435_vm9, %v3235_v37, %v5262_v63  ;;  %v3268_v42 = vsel %vm1435_vm9, %v3236_v33, %v5263_v16  ;;  %v10013_v37 = vld [vmem:[#allocation10_spill] sm:$0xff]  ;;  %v10016_v39 = vld [vmem:[#allocation41_spill] sm:$0xff] }
 0x3c5   : > { %v5271_v11 = vpop.permute.xlu0 %5270  ;;  %v5268_v46 = vunpack.i.h.bf16 %v5266_v22  ;;  %v5267_v7 = vunpack.i.l.bf16 %v5266_v22  ;;  %v3146_v33 = vsel %vm1307_vm5, %v10013_v37, %v4843_v49  ;;  %v4983_v51 = vunpack.i.h.bf16 %v10015_v61 }
 0x3c6   : > { %v5273_v50 = vunpack.i.h.bf16 %v5271_v11  ;;  %v5272_v57 = vunpack.i.l.bf16 %v5271_v11  ;;  %v4982_v27 = vunpack.i.l.bf16 %v10015_v61  ;;  %v3176_v35 = vsel %vm1338_vm6, %v3146_v33, %v5048_v9 }
 0x3c7   : > { %v3269_v32 = vsel %vm1435_vm9, %v3237_v56, %v5267_v7  ;;  %v3270_v2 = vsel %vm1435_vm9, %v3238_v48, %v5268_v46  ;;  %v3175_v16 = vsel %vm1338_vm6, %v3145_v1, %v5047_v60  ;;  %v4848_v11 = vunpack.i.h.bf16 %v10016_v39  ;;  %v10018_v7 = vld [vmem:[#allocation5_spill] sm:$0xff] }
 0x3c8   : > { %v3299_v31 = vsel %vm1468_vm10, %v3267_v8, %v5272_v57  ;;  %v3300_v4 = vsel %vm1468_vm10, %v3268_v42, %v5273_v50  ;;  %v5276_v19 = vpop.permute.xlu1 %5275  ;;  %v4847_v22 = vunpack.i.l.bf16 %v10016_v39  ;;  %v10017_v42 = vld [vmem:[#allocation31_spill] sm:$0xff] }
 0x3c9   : > { %v5281_v59 = vpop.permute.xlu0 %5280  ;;  %v3331_v24 = vsel %vm1501_vm11, %v3299_v31, %v4972_v38  ;;  %v3332_v3 = vsel %vm1501_vm11, %v3300_v4, %v4973_v30  ;;  %v5278_v44 = vunpack.i.h.bf16 %v5276_v19  ;;  %v5277_v20 = vunpack.i.l.bf16 %v5276_v19  ;;  %v10019_v19 = vld [vmem:[#allocation33_spill] sm:$0xff] }
 0x3ca   : > { %v5283_v14 = vunpack.i.h.bf16 %v5281_v59  ;;  %v5282_v10 = vunpack.i.l.bf16 %v5281_v59  ;;  %v3148_v46 = vsel %vm1307_vm5, %v10017_v42, %v4848_v11  ;;  %v3147_v31 = vsel %vm1307_vm5, %v10018_v7, %v4847_v22 }
 0x3cb   : > { %v3301_v26 = vsel %vm1468_vm10, %v3269_v32, %v5277_v20  ;;  %v3302_v15 = vsel %vm1468_vm10, %v3270_v2, %v5278_v44 }
 0x3cc   : > { %v3363_v43 = vsel %vm1534_vm12, %v3331_v24, %v5282_v10  ;;  %v3364_v62 = vsel %vm1534_vm12, %v3332_v3, %v5283_v14  ;;  %v5286_v17 = vpop.permute.xlu1 %5285  ;;  %v3333_v28 = vsel %vm1501_vm11, %v3301_v26, %v4977_v34  ;;  %v3334_v5 = vsel %vm1501_vm11, %v3302_v15, %v4978_v23 }
 0x3cd   : > { %v3385_v13 = vpack.c.bf16 %v3364_v62, %v3363_v43  ;;  %v5291_v18 = vpop.permute.xlu0 %5290  ;;  %v5288_v25 = vunpack.i.h.bf16 %v5286_v17  ;;  %v5287_v0 = vunpack.i.l.bf16 %v5286_v17  ;;  %v4988_v14 = vunpack.i.h.bf16 %v10019_v19 }
 0x3ce   : > { %v5293_v38 = vunpack.i.h.bf16 %v5291_v18  ;;  %v5292_v50 = vunpack.i.l.bf16 %v5291_v18  ;;  %v4987_v10 = vunpack.i.l.bf16 %v10019_v19  ;;  %v10023_v19 = vld [vmem:[#allocation42_spill] sm:$0xff] }
 0x3cf   : > { %4139 = vmatprep.mubr.msk.bf16.mxu1 %vm1604_vm13, %v3385_v13  ;;  %v3365_v53 = vsel %vm1534_vm12, %v3333_v28, %v5287_v0  ;;  %v3366_v45 = vsel %vm1534_vm12, %v3334_v5, %v5288_v25 }
 0x3d0   : > { %v3386_v58 = vpack.c.bf16 %v3366_v45, %v3365_v53  ;;  %v5296_v55 = vpop.permute.xlu1 %5295  ;;  %v3178_v24 = vsel %vm1338_vm6, %v3148_v46, %v5293_v38  ;;  %v3177_v3 = vsel %vm1338_vm6, %v3147_v31, %v5292_v50  ;;  %v10021_v38 = vld [vmem:[#allocation17_spill] sm:$0xff] }
 0x3d1   : > { %v5301_v21 = vpop.permute.xlu0 %5300  ;;  %v5298_v41 = vunpack.i.h.bf16 %v5296_v55  ;;  %v5297_v54 = vunpack.i.l.bf16 %v5296_v55  ;;  %v4858_v50 = vunpack.i.h.bf16 %v10021_v38 }
 0x3d2   : > { %4140 = vmatmul.mubr.msk.bf16.gmra.mrb[20].mxu1 %vm1604_vm13, %v3386_v58  ;;  %v5303_v57 = vunpack.i.h.bf16 %v5301_v21  ;;  %v5302_v8 = vunpack.i.l.bf16 %v5301_v21 }
 0x3d3   : > { %v3207_v63 = vsel %vm1369_vm7, %v3175_v16, %v5297_v54  ;;  %v3208_v40 = vsel %vm1369_vm7, %v3176_v35, %v5298_v41 }
 0x3d4   : > { %v5306_v48 = vpop.permute.xlu1 %5305  ;;  %v3239_v52 = vsel %vm1402_vm8, %v3207_v63, %v4982_v27  ;;  %v3240_v30 = vsel %vm1402_vm8, %v3208_v40, %v4983_v51  ;;  %v3209_v44 = vsel %vm1369_vm7, %v3177_v3, %v5302_v8  ;;  %v3210_v20 = vsel %vm1369_vm7, %v3178_v24, %v5303_v57  ;;  %v10022_v24 = vld [vmem:[#allocation43_spill] sm:$0xff] }
 0x3d5   : > { %v5311_v56 = vpop.permute.xlu0 %5310  ;;  %v5308_v34 = vunpack.i.h.bf16 %v5306_v48  ;;  %v5307_v32 = vunpack.i.l.bf16 %v5306_v48  ;;  %v3241_v18 = vsel %vm1402_vm8, %v3209_v44, %v4987_v10  ;;  %v3242_v17 = vsel %vm1402_vm8, %v3210_v20, %v4988_v14  ;;  %v10020_v48 = vld [vmem:[#allocation49_spill] sm:$0xff] }
 0x3d6   : > { %v5313_v47 = vunpack.i.h.bf16 %v5311_v56  ;;  %v5312_v23 = vunpack.i.l.bf16 %v5311_v56  ;;  %v4857_v57 = vunpack.i.l.bf16 %v10021_v38  ;;  %v10024_v20 = vld [vmem:[#allocation37_spill] sm:$0xff] }
 0x3d7   : > { %v3271_v0 = vsel %vm1435_vm9, %v3239_v52, %v5307_v32  ;;  %v3272_v6 = vsel %vm1435_vm9, %v3240_v30, %v5308_v34  ;;  %v4853_v52 = vunpack.i.h.bf16 %v10020_v48  ;;  %v4852_v30 = vunpack.i.l.bf16 %v10020_v48 }
 0x3d8   : > { %v5316_v59 = vpop.permute.xlu1 %5315  ;;  %v3273_v29 = vsel %vm1435_vm9, %v3241_v18, %v5312_v23  ;;  %v3274_v25 = vsel %vm1435_vm9, %v3242_v17, %v5313_v47  ;;  %v3152_v47 = vsel %vm1307_vm5, %v10024_v20, %v4858_v50  ;;  %v10025_v23 = vld [vmem:[#allocation8_spill] sm:$0xff] }
 0x3d9   : > { %v8833_v4 = vpop.permute.xlu0 %5320  ;;  %v5318_v62 = vunpack.i.h.bf16 %v5316_v59  ;;  %v5317_v26 = vunpack.i.l.bf16 %v5316_v59  ;;  %v3150_v3 = vsel %vm1307_vm5, %v10022_v24, %v4853_v52  ;;  %v3149_v14 = vsel %vm1307_vm5, %v10023_v19, %v4852_v30 }
 0x3da   : > { %v5323_v2 = vunpack.i.h.bf16 %v8833_v4  ;;  %v5322_v43 = vunpack.i.l.bf16 %v8833_v4  ;;  %v3151_v34 = vsel %vm1307_vm5, %v10025_v23, %v4857_v57 }
 0x3db   : > { %v3303_v53 = vsel %vm1468_vm10, %v3271_v0, %v5317_v26  ;;  %v3304_v45 = vsel %vm1468_vm10, %v3272_v6, %v5318_v62 }
 0x3dc   : > { %v5326_v13 = vpop.permute.xlu1 %5325  ;;  %v3305_v9 = vsel %vm1468_vm10, %v3273_v29, %v5322_v43  ;;  %v3306_v60 = vsel %vm1468_vm10, %v3274_v25, %v5323_v2 }
 0x3dd   : > { %v8843_v15 = vpop.permute.xlu0 %5330  ;;  %v5328_v12 = vunpack.i.h.bf16 %v5326_v13  ;;  %v5327_v49 = vunpack.i.l.bf16 %v5326_v13 }
 0x3de   : > { %v5333_v28 = vunpack.i.h.bf16 %v8843_v15  ;;  %v5332_v5 = vunpack.i.l.bf16 %v8843_v15 }
 0x3df   : > { %v3335_v54 = vsel %vm1501_vm11, %v3303_v53, %v5327_v49  ;;  %v3336_v61 = vsel %vm1501_vm11, %v3304_v45, %v5328_v12 }
 0x3e0   : > { %v5336_v21 = vpop.permute.xlu1 %5335  ;;  %v3337_v1 = vsel %vm1501_vm11, %v3305_v9, %v5332_v5  ;;  %v3338_v41 = vsel %vm1501_vm11, %v3306_v60, %v5333_v28 }
 0x3e1   : > { %v8861_v58 = vpop.permute.xlu0 %5340  ;;  %v5338_v33 = vunpack.i.h.bf16 %v5336_v21  ;;  %v5337_v36 = vunpack.i.l.bf16 %v5336_v21 }
 0x3e2   : > { %v5343_v55 = vunpack.i.h.bf16 %v8861_v58  ;;  %v5342_v37 = vunpack.i.l.bf16 %v8861_v58  ;;  %v8940_v58 = vld [vmem:[%s9412_s4] ss:$0 sm:$0xff] }
 0x3e3   : > { %v3367_v35 = vsel %vm1534_vm12, %v3335_v54, %v5337_v36  ;;  %v3368_v16 = vsel %vm1534_vm12, %v3336_v61, %v5338_v33 }
 0x3e4   : > { %v3369_v51 = vsel %vm1534_vm12, %v3337_v1, %v5342_v37  ;;  %v3370_v27 = vsel %vm1534_vm12, %v3338_v41, %v5343_v55  ;;  %v3387_v40 = vpack.c.bf16 %v3368_v16, %v3367_v35  ;;  %v5346_v11 = vpop.permute.xlu1 %5345 }
 0x3e5   : > { %v3388_v63 = vpack.c.bf16 %v3370_v27, %v3369_v51  ;;  %v5351_v39 = vpop.permute.xlu0 %5350  ;;  %v5348_v32 = vunpack.i.h.bf16 %v5346_v11  ;;  %v5347_v62 = vunpack.i.l.bf16 %v5346_v11 }
 0x3e6   : > { %4143 = vmatprep.mubr.msk.bf16.mxu1 %vm1604_vm13, %v3387_v40  ;;  %v5353_v8 = vunpack.i.h.bf16 %v5351_v39  ;;  %v5352_v42 = vunpack.i.l.bf16 %v5351_v39 }
 0x3e7   : > { %4144 = vmatmul.mubr.msk.bf16.gmra.mrb[24].mxu1 %vm1604_vm13, %v3388_v63  ;;  %v3180_v41 = vsel %vm1338_vm6, %v3150_v3, %v5348_v32  ;;  %v3179_v54 = vsel %vm1338_vm6, %v3149_v14, %v5347_v62 }
 0x3e8   : > { %v5356_v56 = vpop.permute.xlu1 %5355  ;;  %v3182_v26 = vsel %vm1338_vm6, %v3152_v47, %v5353_v8  ;;  %v3181_v13 = vsel %vm1338_vm6, %v3151_v34, %v5352_v42 }
 0x3e9   : > { %v5361_v22 = vpop.permute.xlu0 %5360  ;;  %v5358_v18 = vunpack.i.h.bf16 %v5356_v56  ;;  %v5357_v17 = vunpack.i.l.bf16 %v5356_v56 }
 0x3ea   : > { %v5363_v31 = vunpack.i.h.bf16 %v5361_v22  ;;  %v5362_v59 = vunpack.i.l.bf16 %v5361_v22 }
 0x3eb   : > { %v3211_v51 = vsel %vm1369_vm7, %v3179_v54, %v5357_v17  ;;  %v3212_v27 = vsel %vm1369_vm7, %v3180_v41, %v5358_v18 }
 0x3ec   : > { %v5366_v7 = vpop.permute.xlu1 %5365  ;;  %v3213_v49 = vsel %vm1369_vm7, %v3181_v13, %v5362_v59  ;;  %v3214_v29 = vsel %vm1369_vm7, %v3182_v26, %v5363_v31 }
 0x3ed   : > { %v5371_v46 = vpop.permute.xlu0 %5370  ;;  %v5368_v53 = vunpack.i.h.bf16 %v5366_v7  ;;  %v5367_v45 = vunpack.i.l.bf16 %v5366_v7 }
 0x3ee   : > { %v5373_v10 = vunpack.i.h.bf16 %v5371_v46  ;;  %v5372_v44 = vunpack.i.l.bf16 %v5371_v46 }
 0x3ef   : > { %v3243_v40 = vsel %vm1402_vm8, %v3211_v51, %v5367_v45  ;;  %v3244_v39 = vsel %vm1402_vm8, %v3212_v27, %v5368_v53 }
 0x3f0   : > { %v5376_v6 = vpop.permute.xlu1 %5375  ;;  %v3245_v9 = vsel %vm1402_vm8, %v3213_v49, %v5372_v44  ;;  %v3246_v60 = vsel %vm1402_vm8, %v3214_v29, %v5373_v10 }
 0x3f1   : > { %v5381_v12 = vpop.permute.xlu0 %5380  ;;  %v5378_v36 = vunpack.i.h.bf16 %v5376_v6  ;;  %v5377_v1 = vunpack.i.l.bf16 %v5376_v6 }
 0x3f2   : > { %v5383_v25 = vunpack.i.h.bf16 %v5381_v12  ;;  %v5382_v0 = vunpack.i.l.bf16 %v5381_v12 }
 0x3f3   : > { %v3275_v56 = vsel %vm1435_vm9, %v3243_v40, %v5377_v1  ;;  %v3276_v48 = vsel %vm1435_vm9, %v3244_v39, %v5378_v36 }
 0x3f4   : > { %v3277_v21 = vsel %vm1435_vm9, %v3245_v9, %v5382_v0  ;;  %v3278_v33 = vsel %vm1435_vm9, %v3246_v60, %v5383_v25  ;;  %v5386_v63 = vpop.permute.xlu1 %5385 }
 0x3f5   : > { %v5391_v61 = vpop.permute.xlu0 %5390  ;;  %v3309_v35 = vsel %vm1468_vm10, %v3277_v21, %v5322_v43  ;;  %v3310_v16 = vsel %vm1468_vm10, %v3278_v33, %v5323_v2  ;;  %v5388_v11 = vunpack.i.h.bf16 %v5386_v63  ;;  %v5387_v22 = vunpack.i.l.bf16 %v5386_v63 }
 0x3f6   : > { %v5393_v52 = vunpack.i.h.bf16 %v5391_v61  ;;  %v5392_v30 = vunpack.i.l.bf16 %v5391_v61  ;;  %v3341_v4 = vsel %vm1501_vm11, %v3309_v35, %v5332_v5  ;;  %v3342_v2 = vsel %vm1501_vm11, %v3310_v16, %v5333_v28 }
 0x3f7   : > { %v3307_v38 = vsel %vm1468_vm10, %v3275_v56, %v5387_v22  ;;  %v3308_v43 = vsel %vm1468_vm10, %v3276_v48, %v5388_v11  ;;  %v3373_v7 = vsel %vm1534_vm12, %v3341_v4, %v5342_v37  ;;  %v3374_v31 = vsel %vm1534_vm12, %v3342_v2, %v5343_v55 }
 0x3f8   : > { %v5396_v50 = vpop.permute.xlu1 %5395  ;;  %v3339_v42 = vsel %vm1501_vm11, %v3307_v38, %v5392_v30  ;;  %v3340_v46 = vsel %vm1501_vm11, %v3308_v43, %v5393_v52  ;;  %v3390_v59 = vpack.c.bf16 %v3374_v31, %v3373_v7 }
 0x3f9   : > { %v5398_v57 = vunpack.i.h.bf16 %v5396_v50  ;;  %v5397_v8 = vunpack.i.l.bf16 %v5396_v50 }
 0x3fb   : > { %v3371_v5 = vsel %vm1534_vm12, %v3339_v42, %v5397_v8  ;;  %v3372_v15 = vsel %vm1534_vm12, %v3340_v46, %v5398_v57 }
 0x3fc   : > { %v3389_v28 = vpack.c.bf16 %v3372_v15, %v3371_v5 }
 0x3fe   : > { %4147 = vmatprep.mubr.msk.bf16.mxu1 %vm1604_vm13, %v3389_v28 }
 0x3ff   : > { %4148 = vmatmul.mubr.msk.bf16.gmra.mrb[28].mxu1 %vm1604_vm13, %v3390_v59 }
 0x455   : > { %v4121_v24 = vpop.f32.mrb[0].mxu1 }
 0x456   : > { %v3497_v3 = vpop.f32.mrb[1].mxu1  ;;  %v8951_v44 = vadd.f32 %v4121_v24, %v8940_v58 }
 0x457   : > { %v4122_v19 = vpop.f32.mrb[2].mxu1  ;;  %v8946_v37 = vadd.f32 %v8940_v58, %v3497_v3 }
 0x458   : > { %v3500_v14 = vpop.f32.mrb[3].mxu1  ;;  %v3696_v13 = vmul.f32 %v8951_v44, %v8951_v44  ;;  %v8964_v17 = vadd.f32 %v4122_v19, %v8940_v58  ;;  %v3627_v0 = vsel %vm1307_vm5, %v8951_v44, 0.0 }
 0x459   : > { %v8943_v55 = vadd.f32 %v8940_v58, %v3500_v14  ;;  %v3694_v20 = vmul.f32 %v8946_v37, %v8946_v37  ;;  %v3624_v23 = vsel %vm1307_vm5, %v8946_v37, 0.0 }
 0x45a   : > { %v3729_v9 = vsel %vm1307_vm5, %v3696_v13, 0.0  ;;  %v3697_v60 = vmul.f32 %v8964_v17, %v8964_v17  ;;  %v3629_v33 = vsel %vm1307_vm5, %v8964_v17, 0.0 }
 0x45b   : > { %v3695_v10 = vmul.f32 %v8943_v55, %v8943_v55  ;;  %v3625_v47 = vsel %vm1307_vm5, %v8943_v55, 0.0  ;;  %v3726_v18 = vsel %vm1307_vm5, %v3694_v20, 0.0 }
 0x45c   : > { %v3626_v62 = vadd.f32 %v3625_v47, %v3624_v23  ;;  %v3731_v41 = vsel %vm1307_vm5, %v3697_v60, 0.0 }
 0x45d   : > { %v3727_v34 = vsel %vm1307_vm5, %v3695_v10, 0.0 }
 0x45e   : > { %v3728_v29 = vadd.f32 %v3727_v34, %v3726_v18  ;;  %v3628_v6 = vadd.f32 %v3627_v0, %v3626_v62 }
 0x460   : > { %v3730_v21 = vadd.f32 %v3729_v9, %v3728_v29  ;;  %v3630_v1 = vadd.f32 %v3629_v33, %v3628_v6 }
 0x462   : > { %v3732_v27 = vadd.f32 %v3731_v41, %v3730_v21 }
 0x465   : > { %v4125_v32 = vpop.f32.mrb[4].mxu1 }
 0x466   : > { %v3513_v26 = vpop.f32.mrb[5].mxu1  ;;  %v8988_v35 = vadd.f32 %v4125_v32, %v8940_v58 }
 0x467   : > { %v8967_v12 = vadd.f32 %v8940_v58, %v3513_v26  ;;  %v4126_v49 = vpop.f32.mrb[6].mxu1 }
 0x468   : > { %v3516_v25 = vpop.f32.mrb[7].mxu1  ;;  %v3700_v11 = vmul.f32 %v8988_v35, %v8988_v35  ;;  %v8996_v22 = vadd.f32 %v4126_v49, %v8940_v58  ;;  %v3635_v30 = vsel %vm1307_vm5, %v8988_v35, 0.0 }
 0x469   : > { %v3698_v53 = vmul.f32 %v8967_v12, %v8967_v12  ;;  %v8977_v45 = vadd.f32 %v8940_v58, %v3516_v25  ;;  %v3631_v36 = vsel %vm1307_vm5, %v8967_v12, 0.0 }
 0x46a   : > { %v3632_v51 = vadd.f32 %v3631_v36, %v3630_v1  ;;  %v3737_v50 = vsel %vm1307_vm5, %v3700_v11, 0.0  ;;  %v3701_v57 = vmul.f32 %v8996_v22, %v8996_v22  ;;  %v3637_v7 = vsel %vm1307_vm5, %v8996_v22, 0.0 }
 0x46b   : > { %v3733_v54 = vsel %vm1307_vm5, %v3698_v53, 0.0  ;;  %v3699_v61 = vmul.f32 %v8977_v45, %v8977_v45  ;;  %v3633_v16 = vsel %vm1307_vm5, %v8977_v45, 0.0 }
 0x46c   : > { %v3734_v63 = vadd.f32 %v3733_v54, %v3732_v27  ;;  %v3634_v39 = vadd.f32 %v3633_v16, %v3632_v51  ;;  %v3739_v15 = vsel %vm1307_vm5, %v3701_v57, 0.0 }
 0x46d   : > { %v3735_v40 = vsel %vm1307_vm5, %v3699_v61, 0.0 }
 0x46e   : > { %v3736_v48 = vadd.f32 %v3735_v40, %v3734_v63  ;;  %v3636_v4 = vadd.f32 %v3635_v30, %v3634_v39 }
 0x470   : > { %v3738_v46 = vadd.f32 %v3737_v50, %v3736_v48  ;;  %v3638_v5 = vadd.f32 %v3637_v7, %v3636_v4 }
 0x472   : > { %v3740_v3 = vadd.f32 %v3739_v15, %v3738_v46 }
 0x475   : > { %v4129_v56 = vpop.f32.mrb[8].mxu1 }
 0x476   : > { %v3529_v52 = vpop.f32.mrb[9].mxu1  ;;  %v9020_v19 = vadd.f32 %v4129_v56, %v8940_v58 }
 0x477   : > { %v9001_v38 = vadd.f32 %v8940_v58, %v3529_v52  ;;  %v4130_v43 = vpop.f32.mrb[10].mxu1 }
 0x478   : > { %v3532_v2 = vpop.f32.mrb[11].mxu1  ;;  %v3704_v23 = vmul.f32 %v9020_v19, %v9020_v19  ;;  %v9028_v34 = vadd.f32 %v4130_v43, %v8940_v58  ;;  %v3643_v62 = vsel %vm1307_vm5, %v9020_v19, 0.0 }
 0x479   : > { %v3702_v8 = vmul.f32 %v9001_v38, %v9001_v38  ;;  %v9009_v42 = vadd.f32 %v8940_v58, %v3532_v2  ;;  %v3639_v31 = vsel %vm1307_vm5, %v9001_v38, 0.0 }
 0x47a   : > { %v3640_v24 = vadd.f32 %v3639_v31, %v3638_v5  ;;  %v3745_v49 = vsel %vm1307_vm5, %v3704_v23, 0.0  ;;  %v3705_v29 = vmul.f32 %v9028_v34, %v9028_v34  ;;  %v3645_v60 = vsel %vm1307_vm5, %v9028_v34, 0.0 }
 0x47b   : > { %v3741_v28 = vsel %vm1307_vm5, %v3702_v8, 0.0  ;;  %v3703_v59 = vmul.f32 %v9009_v42, %v9009_v42  ;;  %v3641_v14 = vsel %vm1307_vm5, %v9009_v42, 0.0 }
 0x47c   : > { %v3742_v10 = vadd.f32 %v3741_v28, %v3740_v3  ;;  %v3642_v47 = vadd.f32 %v3641_v14, %v3640_v24  ;;  %v3747_v1 = vsel %vm1307_vm5, %v3705_v29, 0.0 }
 0x47d   : > { %v3743_v20 = vsel %vm1307_vm5, %v3703_v59, 0.0 }
 0x47e   : > { %v3744_v32 = vadd.f32 %v3743_v20, %v3742_v10  ;;  %v3644_v13 = vadd.f32 %v3643_v62, %v3642_v47 }
 0x480   : > { %v3746_v6 = vadd.f32 %v3745_v49, %v3744_v32  ;;  %v3646_v36 = vadd.f32 %v3645_v60, %v3644_v13 }
 0x482   : > { %v3748_v51 = vadd.f32 %v3747_v1, %v3746_v6 }
 0x485   : > { %v4133_v26 = vpop.f32.mrb[12].mxu1 }
 0x486   : > { %v3545_v18 = vpop.f32.mrb[13].mxu1  ;;  %v9052_v27 = vadd.f32 %v4133_v26, %v8940_v58 }
 0x487   : > { %v9036_v25 = vadd.f32 %v8940_v58, %v3545_v18  ;;  %v4134_v0 = vpop.f32.mrb[14].mxu1 }
 0x488   : > { %v3548_v9 = vpop.f32.mrb[15].mxu1  ;;  %v9058_v39 = vadd.f32 %v4134_v0, %v8940_v58  ;;  %v3708_v56 = vmul.f32 %v9052_v27, %v9052_v27  ;;  %v3651_v52 = vsel %vm1307_vm5, %v9052_v27, 0.0 }
 0x489   : > { %v3647_v53 = vsel %vm1307_vm5, %v9036_v25, 0.0  ;;  %v3706_v21 = vmul.f32 %v9036_v25, %v9036_v25  ;;  %v9045_v33 = vadd.f32 %v8940_v58, %v3548_v9 }
 0x48a   : > { %v3648_v61 = vadd.f32 %v3647_v53, %v3646_v36  ;;  %v3709_v30 = vmul.f32 %v9058_v39, %v9058_v39  ;;  %v3753_v4 = vsel %vm1307_vm5, %v3708_v56, 0.0  ;;  %v3653_v8 = vsel %vm1307_vm5, %v9058_v39, 0.0 }
 0x48b   : > { %v3749_v41 = vsel %vm1307_vm5, %v3706_v21, 0.0  ;;  %v3707_v54 = vmul.f32 %v9045_v33, %v9045_v33  ;;  %v3649_v16 = vsel %vm1307_vm5, %v9045_v33, 0.0 }
 0x48c   : > { %v3750_v63 = vadd.f32 %v3749_v41, %v3748_v51  ;;  %v3650_v11 = vadd.f32 %v3649_v16, %v3648_v61  ;;  %v3755_v5 = vsel %vm1307_vm5, %v3709_v30, 0.0 }
 0x48d   : > { %v3751_v40 = vsel %vm1307_vm5, %v3707_v54, 0.0 }
 0x48e   : > { %v3752_v48 = vadd.f32 %v3751_v40, %v3750_v63  ;;  %v3652_v43 = vadd.f32 %v3651_v52, %v3650_v11 }
 0x490   : > { %v3754_v50 = vadd.f32 %v3753_v4, %v3752_v48  ;;  %v3654_v15 = vadd.f32 %v3653_v8, %v3652_v43 }
 0x492   : > { %v3756_v20 = vadd.f32 %v3755_v5, %v3754_v50 }
 0x495   : > { %v4137_v2 = vpop.f32.mrb[16].mxu1 }
 0x496   : > { %v3561_v57 = vpop.f32.mrb[17].mxu1  ;;  %v9070_v46 = vadd.f32 %v4137_v2, %v8940_v58 }
 0x497   : > { %v9073_v7 = vadd.f32 %v8940_v58, %v3561_v57  ;;  %v4138_v31 = vpop.f32.mrb[18].mxu1 }
 0x498   : > { %v3564_v28 = vpop.f32.mrb[19].mxu1  ;;  %v9081_v3 = vadd.f32 %v4138_v31, %v8940_v58  ;;  %v3712_v47 = vmul.f32 %v9070_v46, %v9070_v46  ;;  %v3659_v18 = vsel %vm1307_vm5, %v9070_v46, 0.0 }
 0x499   : > { %v3655_v59 = vsel %vm1307_vm5, %v9073_v7, 0.0  ;;  %v3710_v24 = vmul.f32 %v9073_v7, %v9073_v7  ;;  %v9084_v14 = vadd.f32 %v8940_v58, %v3564_v28 }
 0x49a   : > { %v3656_v10 = vadd.f32 %v3655_v59, %v3654_v15  ;;  %v3713_v49 = vmul.f32 %v9081_v3, %v9081_v3  ;;  %v3761_v9 = vsel %vm1307_vm5, %v3712_v47, 0.0  ;;  %v3661_v60 = vsel %vm1307_vm5, %v9081_v3, 0.0 }
 0x49b   : > { %v3757_v23 = vsel %vm1307_vm5, %v3710_v24, 0.0  ;;  %v3657_v32 = vsel %vm1307_vm5, %v9084_v14, 0.0  ;;  %v3711_v62 = vmul.f32 %v9084_v14, %v9084_v14 }
 0x49c   : > { %v3758_v26 = vadd.f32 %v3757_v23, %v3756_v20  ;;  %v3658_v13 = vadd.f32 %v3657_v32, %v3656_v10  ;;  %v3763_v36 = vsel %vm1307_vm5, %v3713_v49, 0.0 }
 0x49d   : > { %v3759_v29 = vsel %vm1307_vm5, %v3711_v62, 0.0 }
 0x49e   : > { %v3660_v0 = vadd.f32 %v3659_v18, %v3658_v13  ;;  %v3760_v6 = vadd.f32 %v3759_v29, %v3758_v26 }
 0x4a0   : > { %v3762_v53 = vadd.f32 %v3761_v9, %v3760_v6  ;;  %v3662_v21 = vadd.f32 %v3661_v60, %v3660_v0 }
 0x4a2   : > { %v3764_v1 = vadd.f32 %v3763_v36, %v3762_v53 }
 0x4a5   : > { %v4141_v41 = vpop.f32.mrb[20].mxu1 }
 0x4a6   : > { %v3577_v54 = vpop.f32.mrb[21].mxu1  ;;  %v9103_v61 = vadd.f32 %v4141_v41, %v8940_v58 }
 0x4a7   : > { %v9106_v51 = vadd.f32 %v8940_v58, %v3577_v54  ;;  %v4142_v16 = vpop.f32.mrb[22].mxu1 }
 0x4a8   : > { %v3580_v63 = vpop.f32.mrb[23].mxu1  ;;  %v9113_v56 = vadd.f32 %v4142_v16, %v8940_v58  ;;  %v3716_v30 = vmul.f32 %v9103_v61, %v9103_v61  ;;  %v3667_v8 = vsel %vm1307_vm5, %v9103_v61, 0.0 }
 0x4a9   : > { %v3663_v40 = vsel %vm1307_vm5, %v9106_v51, 0.0  ;;  %v3714_v11 = vmul.f32 %v9106_v51, %v9106_v51  ;;  %v9116_v48 = vadd.f32 %v8940_v58, %v3580_v63 }
 0x4aa   : > { %v3664_v52 = vadd.f32 %v3663_v40, %v3662_v21  ;;  %v3717_v31 = vmul.f32 %v9113_v56, %v9113_v56  ;;  %v3769_v59 = vsel %vm1307_vm5, %v3716_v30, 0.0  ;;  %v3669_v24 = vsel %vm1307_vm5, %v9113_v56, 0.0 }
 0x4ab   : > { %v3765_v43 = vsel %vm1307_vm5, %v3714_v11, 0.0  ;;  %v3665_v4 = vsel %vm1307_vm5, %v9116_v48, 0.0  ;;  %v3715_v2 = vmul.f32 %v9116_v48, %v9116_v48 }
 0x4ac   : > { %v3766_v50 = vadd.f32 %v3765_v43, %v3764_v1  ;;  %v3666_v57 = vadd.f32 %v3665_v4, %v3664_v52  ;;  %v3771_v47 = vsel %vm1307_vm5, %v3717_v31, 0.0 }
 0x4ad   : > { %v3767_v5 = vsel %vm1307_vm5, %v3715_v2, 0.0 }
 0x4ae   : > { %v3668_v15 = vadd.f32 %v3667_v8, %v3666_v57  ;;  %v3768_v28 = vadd.f32 %v3767_v5, %v3766_v50 }
 0x4b0   : > { %v3770_v10 = vadd.f32 %v3769_v59, %v3768_v28  ;;  %v3670_v20 = vadd.f32 %v3669_v24, %v3668_v15 }
 0x4b2   : > { %v3772_v23 = vadd.f32 %v3771_v47, %v3770_v10 }
 0x4ba   : > { %v4145_v32 = vpop.f32.mrb[24].mxu1 }
 0x4bb   : > { %v3593_v62 = vpop.f32.mrb[25].mxu1  ;;  %v9135_v26 = vadd.f32 %v4145_v32, %v8940_v58 }
 0x4bc   : > { %v9138_v13 = vadd.f32 %v8940_v58, %v3593_v62  ;;  %v4146_v18 = vpop.f32.mrb[26].mxu1 }
 0x4bd   : > { %v3596_v49 = vpop.f32.mrb[27].mxu1  ;;  %v9145_v6 = vadd.f32 %v4146_v18, %v8940_v58  ;;  %v3720_v53 = vmul.f32 %v9135_v26, %v9135_v26  ;;  %v3675_v16 = vsel %vm1307_vm5, %v9135_v26, 0.0 }
 0x4be   : > { %v3671_v29 = vsel %vm1307_vm5, %v9138_v13, 0.0  ;;  %v3718_v0 = vmul.f32 %v9138_v13, %v9138_v13  ;;  %v9148_v9 = vadd.f32 %v8940_v58, %v3596_v49 }
 0x4bf   : > { %v3672_v60 = vadd.f32 %v3671_v29, %v3670_v20  ;;  %v3721_v63 = vmul.f32 %v9145_v6, %v9145_v6  ;;  %v3777_v30 = vsel %vm1307_vm5, %v3720_v53, 0.0  ;;  %v3677_v43 = vsel %vm1307_vm5, %v9145_v6, 0.0 }
 0x4c0   : > { %v3773_v21 = vsel %vm1307_vm5, %v3718_v0, 0.0  ;;  %v3673_v36 = vsel %vm1307_vm5, %v9148_v9, 0.0  ;;  %v3719_v1 = vmul.f32 %v9148_v9, %v9148_v9 }
 0x4c1   : > { %v3774_v41 = vadd.f32 %v3773_v21, %v3772_v23  ;;  %v3674_v54 = vadd.f32 %v3673_v36, %v3672_v60  ;;  %v3779_v50 = vsel %vm1307_vm5, %v3721_v63, 0.0 }
 0x4c2   : > { %v3775_v40 = vsel %vm1307_vm5, %v3719_v1, 0.0 }
 0x4c3   : > { %v3676_v11 = vadd.f32 %v3675_v16, %v3674_v54  ;;  %v3776_v52 = vadd.f32 %v3775_v40, %v3774_v41 }
 0x4c5   : > { %v3778_v4 = vadd.f32 %v3777_v30, %v3776_v52  ;;  %v3678_v2 = vadd.f32 %v3677_v43, %v3676_v11 }
 0x4c7   : > { %v3780_v57 = vadd.f32 %v3779_v50, %v3778_v4 }
 0x4d2   : > { %v4149_v8 = vpop.f32.mrb[28].mxu1 }
 0x4d3   : > { %v3609_v31 = vpop.f32.mrb[29].mxu1  ;;  %v9167_v5 = vadd.f32 %v4149_v8, %v8940_v58 }
 0x4d4   : > { %v9170_v15 = vadd.f32 %v8940_v58, %v3609_v31  ;;  %v4150_v28 = vpop.f32.mrb[30].mxu1 }
 0x4d5   : > { %v3612_v59 = vpop.f32.mrb[31].mxu1  ;;  %v9177_v20 = vadd.f32 %v4150_v28, %v8940_v58  ;;  %v3724_v32 = vmul.f32 %v9167_v5, %v9167_v5  ;;  %v3683_v60 = vsel %vm1307_vm5, %v9167_v5, 0.0 }
 0x4d6   : > { %v3679_v24 = vsel %vm1307_vm5, %v9170_v15, 0.0  ;;  %v3722_v10 = vmul.f32 %v9170_v15, %v9170_v15  ;;  %v9180_v47 = vadd.f32 %v8940_v58, %v3612_v59 }
 0x4d7   : > { %v3680_v23 = vadd.f32 %v3679_v24, %v3678_v2  ;;  %v3725_v58 = vmul.f32 %v9177_v20, %v9177_v20  ;;  %v3785_v1 = vsel %vm1307_vm5, %v3724_v32, 0.0  ;;  %v3685_v41 = vsel %vm1307_vm5, %v9177_v20, 0.0 }
 0x4d8   : > { %v3781_v62 = vsel %vm1307_vm5, %v3722_v10, 0.0  ;;  %v3681_v18 = vsel %vm1307_vm5, %v9180_v47, 0.0  ;;  %v3723_v49 = vmul.f32 %v9180_v47, %v9180_v47 }
 0x4d9   : > { %v3782_v29 = vadd.f32 %v3781_v62, %v3780_v57  ;;  %v3682_v0 = vadd.f32 %v3681_v18, %v3680_v23  ;;  %v3787_v63 = vsel %vm1307_vm5, %v3725_v58, 0.0 }
 0x4da   : > { %v3783_v53 = vsel %vm1307_vm5, %v3723_v49, 0.0 }
 0x4db   : > { %v3684_v21 = vadd.f32 %v3683_v60, %v3682_v0  ;;  %v3784_v36 = vadd.f32 %v3783_v53, %v3782_v29 }
 0x4dd   : > { %v3686_v54 = vadd.f32 %v3685_v41, %v3684_v21  ;;  %v3786_v16 = vadd.f32 %v3785_v1, %v3784_v36 }
 0x4df   : > { %v3687_v40 = vrot.slane %v3686_v54, 4  ;;  %v3788_v11 = vadd.f32 %v3787_v63, %v3786_v16 }
 0x4e1   : > { %v3688_v52 = vadd.f32 %v3687_v40, %v3686_v54  ;;  %v3789_v30 = vrot.slane %v3788_v11, 4 }
 0x4e3   : > { %v3689_v43 = vrot.slane %v3688_v52, 2  ;;  %v3790_v4 = vadd.f32 %v3789_v30, %v3788_v11 }
 0x4e5   : > { %v3690_v2 = vadd.f32 %v3689_v43, %v3688_v52  ;;  %v3791_v50 = vrot.slane %v3790_v4, 2 }
 0x4e7   : > { %v3691_v57 = vrot.slane %v3690_v2, 1  ;;  %v3792_v8 = vadd.f32 %v3791_v50, %v3790_v4 }
 0x4e9   : > { %v3692_v31 = vadd.f32 %v3691_v57, %v3690_v2  ;;  %v3793_v28 = vrot.slane %v3792_v8, 1 }
 0x4eb   : > { %v9198_v59 = vmul.f32 0.00390625, %v3692_v31  ;;  %v3794_v24 = vadd.f32 %v3793_v28, %v3792_v8 }
 0x4ed   : > { %v3795_v10 = vmul.f32 0.00390625, %v3794_v24  ;;  %v3796_v23 = vmul.f32 %v9198_v59, %v9198_v59  ;;  %v3819_v18 = vsub.f32 %v9070_v46, %v9198_v59  ;;  %v3820_v49 = vsub.f32 %v9081_v3, %v9198_v59 }
 0x4ee   : > { %v3821_v0 = vsub.f32 %v9106_v51, %v9198_v59  ;;  %v3822_v60 = vsub.f32 %v9116_v48, %v9198_v59  ;;  %v3823_v58 = vsub.f32 %v9103_v61, %v9198_v59  ;;  %v3824_v53 = vsub.f32 %v9113_v56, %v9198_v59 }
 0x4ef   : > { %v3797_v32 = vsub.f32 %v3795_v10, %v3796_v23  ;;  %v3825_v21 = vsub.f32 %v9138_v13, %v9198_v59  ;;  %v3826_v46 = vsub.f32 %v9148_v9, %v9198_v59  ;;  %v3827_v3 = vsub.f32 %v9135_v26, %v9198_v59 }
 0x4f0   : > { %v3828_v51 = vsub.f32 %v9145_v6, %v9198_v59  ;;  %v3829_v48 = vsub.f32 %v9170_v15, %v9198_v59  ;;  %v3830_v61 = vsub.f32 %v9180_v47, %v9198_v59  ;;  %v3831_v56 = vsub.f32 %v9167_v5, %v9198_v59 }
 0x4f1   : > { %v3798_v62 = vmax.f32 %v3797_v32, 0.0  ;;  %v3832_v13 = vsub.f32 %v9177_v20, %v9198_v59  ;;  %v3801_v9 = vsub.f32 %v8946_v37, %v9198_v59  ;;  %v3802_v26 = vsub.f32 %v8943_v55, %v9198_v59 }
 0x4f2   : > { %v3803_v6 = vsub.f32 %v8951_v44, %v9198_v59  ;;  %v3804_v15 = vsub.f32 %v8964_v17, %v9198_v59  ;;  %v3805_v47 = vsub.f32 %v8967_v12, %v9198_v59  ;;  %v3806_v5 = vsub.f32 %v8977_v45, %v9198_v59 }
 0x4f3   : > { %v3799_v29 = vadd.f32 1e-05, %v3798_v62  ;;  %v3807_v20 = vsub.f32 %v8988_v35, %v9198_v59  ;;  %v3808_v37 = vsub.f32 %v8996_v22, %v9198_v59  ;;  %v3809_v55 = vsub.f32 %v9001_v38, %v9198_v59 }
 0x4f4   : > { %v3810_v44 = vsub.f32 %v9009_v42, %v9198_v59  ;;  %v3811_v17 = vsub.f32 %v9020_v19, %v9198_v59  ;;  %v3812_v12 = vsub.f32 %v9028_v34, %v9198_v59  ;;  %v3813_v45 = vsub.f32 %v9036_v25, %v9198_v59 }
 0x4f5   : > { %5407 = vrsqrt.f32 %v3799_v29  ;;  %v3814_v35 = vsub.f32 %v9045_v33, %v9198_v59  ;;  %v3815_v22 = vsub.f32 %v9052_v27, %v9198_v59  ;;  %v3816_v38 = vsub.f32 %v9058_v39, %v9198_v59  ;;  %v5409_v29 = vld [vmem:[%s5503_s23] sm:$0xff] }
 0x4f6   : > { %v3817_v42 = vsub.f32 %v9073_v7, %v9198_v59  ;;  %v3818_v19 = vsub.f32 %v9084_v14, %v9198_v59 }
 0x4ff   : > { %v5408_v36 = vpop.eup %5407 }
 0x500   : > { %v3833_v34 = vmul.f32 %v5408_v36, %v3801_v9  ;;  %v3834_v1 = vmul.f32 %v5408_v36, %v3802_v26  ;;  %v3835_v41 = vmul.f32 %v5408_v36, %v3803_v6  ;;  %v3836_v25 = vmul.f32 %v5408_v36, %v3804_v15  ;;  %v5416_v26 = vld [vmem:[%s5503_s23 + $0x38] sm:$0xff]  ;;  %v5417_v15 = vld [vmem:[%s5503_s23 + $0x40] sm:$0xff] }
 0x501   : > { %v3837_v54 = vmul.f32 %v5408_v36, %v3805_v47  ;;  %v3838_v16 = vmul.f32 %v5408_v36, %v3806_v5  ;;  %v3839_v33 = vmul.f32 %v5408_v36, %v3807_v20  ;;  %v3840_v63 = vmul.f32 %v5408_v36, %v3808_v37  ;;  %v5418_v5 = vld [vmem:[%s5503_s23 + $0x48] sm:$0xff]  ;;  %v5419_v37 = vld [vmem:[%s5503_s23 + $0x50] sm:$0xff] }
 0x502   : > { %v3841_v40 = vmul.f32 %v5408_v36, %v3809_v55  ;;  %v3842_v11 = vmul.f32 %v5408_v36, %v3810_v44  ;;  %v3843_v27 = vmul.f32 %v5408_v36, %v3811_v17  ;;  %v3844_v52 = vmul.f32 %v5408_v36, %v3812_v12  ;;  %v5420_v44 = vld [vmem:[%s5503_s23 + $0x58] sm:$0xff]  ;;  %v5421_v12 = vld [vmem:[%s5503_s23 + $0x60] sm:$0xff] }
 0x503   : > { %v3845_v30 = vmul.f32 %v5408_v36, %v3813_v45  ;;  %v3846_v39 = vmul.f32 %v5408_v36, %v3814_v35  ;;  %v3847_v43 = vmul.f32 %v5408_v36, %v3815_v22  ;;  %v3848_v7 = vmul.f32 %v5408_v36, %v3816_v38  ;;  %v5422_v35 = vld [vmem:[%s5503_s23 + $0x68] sm:$0xff]  ;;  %v5423_v22 = vld [vmem:[%s5503_s23 + $0x70] sm:$0xff] }
 0x504   : > { %v3849_v4 = vmul.f32 %v5408_v36, %v3817_v42  ;;  %v3850_v2 = vmul.f32 %v5408_v36, %v3818_v19  ;;  %v3851_v14 = vmul.f32 %v5408_v36, %v3819_v18  ;;  %v3852_v50 = vmul.f32 %v5408_v36, %v3820_v49  ;;  %v5424_v42 = vld [vmem:[%s5503_s23 + $0x78] sm:$0xff] }
 0x505   : > { %v9266_v57 = vmul.f32 %v5408_v36, %v3821_v0  ;;  %v9268_v8 = vmul.f32 %v5408_v36, %v3822_v60  ;;  %v9270_v31 = vmul.f32 %v5408_v36, %v3823_v58  ;;  %v9272_v28 = vmul.f32 %v5408_v36, %v3824_v53  ;;  %v5410_v60 = vld [vmem:[%s5503_s23 + $0x8] sm:$0xff]  ;;  %v5411_v53 = vld [vmem:[%s5503_s23 + $0x10] sm:$0xff] }
 0x506   : > { %v9274_v59 = vmul.f32 %v5408_v36, %v3825_v21  ;;  %v9276_v24 = vmul.f32 %v5408_v36, %v3826_v46  ;;  %v9278_v10 = vmul.f32 %v5408_v36, %v3827_v3  ;;  %v9280_v23 = vmul.f32 %v5408_v36, %v3828_v51  ;;  %v5412_v46 = vld [vmem:[%s5503_s23 + $0x18] sm:$0xff]  ;;  %v5413_v51 = vld [vmem:[%s5503_s23 + $0x20] sm:$0xff] }
 0x507   : > { %v9289_v32 = vmul.f32 %v5408_v36, %v3829_v48  ;;  %v9291_v62 = vmul.f32 %v5408_v36, %v3830_v61  ;;  %v9293_v18 = vmul.f32 %v5408_v36, %v3831_v56  ;;  %v9295_v49 = vmul.f32 %v5408_v36, %v3832_v13  ;;  %v5414_v61 = vld [vmem:[%s5503_s23 + $0x28] sm:$0xff]  ;;  %v5415_v13 = vld [vmem:[%s5503_s23 + $0x30] sm:$0xff] }
 0x508   : > { %v3865_v0 = vadd.f32 %v5409_v29, %v3833_v34  ;;  %v3866_v58 = vadd.f32 %v5410_v60, %v3834_v1  ;;  %v3867_v21 = vadd.f32 %v5411_v53, %v3835_v41  ;;  %v3868_v3 = vadd.f32 %v5412_v46, %v3836_v25  ;;  %v5425_v34 = vld [vmem:[%s5503_s23 + $0x80] sm:$0xff]  ;;  %v5426_v41 = vld [vmem:[%s5503_s23 + $0x88] sm:$0xff]  ;;  %v5439_v29 = vld [vmem:[%s5503_s23 + $0xf0] sm:$0xff] }
 0x509   : > { %v3869_v48 = vadd.f32 %v5413_v51, %v3837_v54  ;;  %v3870_v56 = vadd.f32 %v5414_v61, %v3838_v16  ;;  %v3871_v9 = vadd.f32 %v5415_v13, %v3839_v33  ;;  %v3872_v6 = vadd.f32 %v5416_v26, %v3840_v63  ;;  %v5427_v54 = vld [vmem:[%s5503_s23 + $0x90] sm:$0xff]  ;;  %v5428_v33 = vld [vmem:[%s5503_s23 + $0x98] sm:$0xff] }
 0x50a   : > { %v3873_v47 = vadd.f32 %v5417_v15, %v3841_v40  ;;  %v3874_v20 = vadd.f32 %v5418_v5, %v3842_v11  ;;  %v3875_v55 = vadd.f32 %v5419_v37, %v3843_v27  ;;  %v3876_v17 = vadd.f32 %v5420_v44, %v3844_v52  ;;  %3897 = vst.msk [vmem:[%s9287_s29] sm:$0xff] %vm1307_vm5, %v3865_v0  ;;  %v5429_v40 = vld [vmem:[%s5503_s23 + $0xa0] sm:$0xff]  ;;  %v5430_v27 = vld [vmem:[%s5503_s23 + $0xa8] sm:$0xff]  ;;  %v5440_v60 = vld [vmem:[%s5503_s23 + $0xf8] sm:$0xff] }
 0x50b   : > { %3898 = vst.msk [vmem:[%s9287_s29 + $0x8] sm:$0xff] %vm1307_vm5, %v3866_v58  ;;  %3899 = vst.msk [vmem:[%s9287_s29 + $0x10] sm:$0xff] %vm1307_vm5, %v3867_v21  ;;  %v3877_v45 = vadd.f32 %v5421_v12, %v3845_v30  ;;  %v3878_v36 = vadd.f32 %v5422_v35, %v3846_v39  ;;  %v3879_v38 = vadd.f32 %v5423_v22, %v3847_v43  ;;  %v5431_v30 = vld [vmem:[%s5503_s23 + $0xb0] sm:$0xff]  ;;  %v5432_v43 = vld [vmem:[%s5503_s23 + $0xb8] sm:$0xff] }
 0x50c   : > { %3900 = vst.msk [vmem:[%s9287_s29 + $0x18] sm:$0xff] %vm1307_vm5, %v3868_v3  ;;  %v3880_v19 = vadd.f32 %v5424_v42, %v3848_v7  ;;  %3901 = vst.msk [vmem:[%s9287_s29 + $0x20] sm:$0xff] %vm1307_vm5, %v3869_v48  ;;  %v3881_v1 = vadd.f32 %v5425_v34, %v3849_v4  ;;  %v3882_v25 = vadd.f32 %v5426_v41, %v3850_v2  ;;  %v5433_v4 = vld [vmem:[%s5503_s23 + $0xc0] sm:$0xff] }
 0x50d   : > { %3902 = vst.msk [vmem:[%s9287_s29 + $0x28] sm:$0xff] %vm1307_vm5, %v3870_v56  ;;  %3903 = vst.msk [vmem:[%s9287_s29 + $0x30] sm:$0xff] %vm1307_vm5, %v3871_v9  ;;  %v3883_v16 = vadd.f32 %v5427_v54, %v3851_v14  ;;  %v3884_v63 = vadd.f32 %v5428_v33, %v3852_v50  ;;  %v3885_v11 = vadd.f32 %v5429_v40, %v9266_v57  ;;  %v5434_v14 = vld [vmem:[%s5503_s23 + $0xc8] sm:$0xff]  ;;  %v5435_v57 = vld [vmem:[%s5503_s23 + $0xd0] sm:$0xff] }
 0x50e   : > { %3904 = vst.msk [vmem:[%s9287_s29 + $0x38] sm:$0xff] %vm1307_vm5, %v3872_v6  ;;  %3905 = vst.msk [vmem:[%s9287_s29 + $0x40] sm:$0xff] %vm1307_vm5, %v3873_v47  ;;  %v3886_v52 = vadd.f32 %v5430_v27, %v9268_v8  ;;  %v3887_v39 = vadd.f32 %v5431_v30, %v9270_v31  ;;  %v3888_v7 = vadd.f32 %v5432_v43, %v9272_v28  ;;  %v5436_v31 = vld [vmem:[%s5503_s23 + $0xd8] sm:$0xff] }
 0x50f   : > { %3906 = vst.msk [vmem:[%s9287_s29 + $0x48] sm:$0xff] %vm1307_vm5, %v3874_v20  ;;  %3907 = vst.msk [vmem:[%s9287_s29 + $0x50] sm:$0xff] %vm1307_vm5, %v3875_v55  ;;  %v3889_v2 = vadd.f32 %v5433_v4, %v9274_v59  ;;  %v3890_v50 = vadd.f32 %v5434_v14, %v9276_v24  ;;  %v3891_v8 = vadd.f32 %v5435_v57, %v9278_v10  ;;  %v5437_v59 = vld [vmem:[%s5503_s23 + $0xe0] sm:$0xff]  ;;  %v5438_v10 = vld [vmem:[%s5503_s23 + $0xe8] sm:$0xff] }
 0x510   : > { %3908 = vst.msk [vmem:[%s9287_s29 + $0x58] sm:$0xff] %vm1307_vm5, %v3876_v17  ;;  %3909 = vst.msk [vmem:[%s9287_s29 + $0x60] sm:$0xff] %vm1307_vm5, %v3877_v45  ;;  %v3892_v28 = vadd.f32 %v5436_v31, %v9280_v23  ;;  %v3893_v24 = vadd.f32 %v5437_v59, %v9289_v32  ;;  %v3894_v23 = vadd.f32 %v5438_v10, %v9291_v62 }
 0x511   : > { %3910 = vst.msk [vmem:[%s9287_s29 + $0x68] sm:$0xff] %vm1307_vm5, %v3878_v36  ;;  %3911 = vst.msk [vmem:[%s9287_s29 + $0x70] sm:$0xff] %vm1307_vm5, %v3879_v38  ;;  %v3895_v0 = vadd.f32 %v5439_v29, %v9293_v18  ;;  %v3896_v58 = vadd.f32 %v5440_v60, %v9295_v49 }
 0x512   : > { %3912 = vst.msk [vmem:[%s9287_s29 + $0x78] sm:$0xff] %vm1307_vm5, %v3880_v19  ;;  %3913 = vst.msk [vmem:[%s9287_s29 + $0x80] sm:$0xff] %vm1307_vm5, %v3881_v1 }
 0x513   : > { %3914 = vst.msk [vmem:[%s9287_s29 + $0x88] sm:$0xff] %vm1307_vm5, %v3882_v25  ;;  %3915 = vst.msk [vmem:[%s9287_s29 + $0x90] sm:$0xff] %vm1307_vm5, %v3883_v16 }
 0x514   : > { %3916 = vst.msk [vmem:[%s9287_s29 + $0x98] sm:$0xff] %vm1307_vm5, %v3884_v63  ;;  %3917 = vst.msk [vmem:[%s9287_s29 + $0xa0] sm:$0xff] %vm1307_vm5, %v3885_v11 }
 0x515   : > { %3918 = vst.msk [vmem:[%s9287_s29 + $0xa8] sm:$0xff] %vm1307_vm5, %v3886_v52  ;;  %3919 = vst.msk [vmem:[%s9287_s29 + $0xb0] sm:$0xff] %vm1307_vm5, %v3887_v39 }
 0x516   : > { %3920 = vst.msk [vmem:[%s9287_s29 + $0xb8] sm:$0xff] %vm1307_vm5, %v3888_v7  ;;  %3921 = vst.msk [vmem:[%s9287_s29 + $0xc0] sm:$0xff] %vm1307_vm5, %v3889_v2 }
 0x517   : > { %3922 = vst.msk [vmem:[%s9287_s29 + $0xc8] sm:$0xff] %vm1307_vm5, %v3890_v50  ;;  %3923 = vst.msk [vmem:[%s9287_s29 + $0xd0] sm:$0xff] %vm1307_vm5, %v3891_v8 }
 0x518   : > { %3924 = vst.msk [vmem:[%s9287_s29 + $0xd8] sm:$0xff] %vm1307_vm5, %v3892_v28  ;;  %3925 = vst.msk [vmem:[%s9287_s29 + $0xe0] sm:$0xff] %vm1307_vm5, %v3893_v24 }
 0x519   : > { %3926 = vst.msk [vmem:[%s9287_s29 + $0xe8] sm:$0xff] %vm1307_vm5, %v3894_v23  ;;  %3927 = vst.msk [vmem:[%s9287_s29 + $0xf0] sm:$0xff] %vm1307_vm5, %v3895_v0 }
 0x51a   : > { %3928 = vst.msk [vmem:[%s9287_s29 + $0xf8] sm:$0xff] %vm1307_vm5, %v3896_v58 }
 0x51b PF: > { %s15_s18 = sadd.s32 1, %s5447_s18  }
 0x51c   : > { %p12_p4 = scmp.ge.s32.totalorder %s15_s18, 4  }
 0x51e   :  { %14 = sbr.rel (!%p12_p4) target bundleno = 1 (0x1), region = 70 }

</bundles_post_ra>
